<compile_context>
chip_gen: v7x
topology: tpu7x:2x2x1
jax: 0.10.0
libtpu: 0.0.40
codegen_flags: <defaults>
</compile_context>

<pallas_src>
import jax
import jax.numpy as jnp
from jax.experimental import pallas as pl
from jax.experimental.pallas import tpu as pltpu

_LANE = 128
_VMEM_BUDGET_BYTES = 40 << 20   # conservative: fits v7x's 64 MiB physical VMEM with headroom


def _round_up(n: int, m: int) -> int:
    return ((n + m - 1) // m) * m


def _make_kernel(num_layers: int, res_cols: int):
    """Kernel body for a ResidualLinearBlock with `num_layers` LinearBlocks.

    Refs: x_ref, w0_cat, b0_cat, w_1, b_1, ..., w_{L-1}, b_{L-1}, out_ref.
    w0_cat fuses the lane-padded adaptive/residual projection (first `res_cols` output
    columns) with the BN-folded, lane-padded layer-0 weights (remaining columns).
    """

    def kernel(x_ref, *refs):
        out_ref = refs[-1]
        p = refs[:-1]
        out_w = out_ref.shape[-1]

        x = x_ref[...]
        if x.dtype != jnp.bfloat16:            # producers may already hand us bf16
            x = x.astype(jnp.bfloat16)         # MXU inputs bf16, accumulate f32

        # Fused layer-0 + adaptive matmul (shared LHS x); `cat` is fully lane-dense.
        cat = jnp.dot(x, p[0][...], preferred_element_type=jnp.float32) + p[1][...]
        res = cat[:, :out_w]                   # adaptive_layer(x) at its TRUE width (small)
        h = jnp.maximum(cat[:, res_cols:], 0.0)   # layer-0 Linear + ReLU (BN folded, padded)

        for i in range(1, num_layers):
            w = p[2 * i][...]                  # (pad_in_i, pad_out_i) bf16
            b = p[2 * i + 1][...]              # (1, pad_out_i)        f32
            h = jnp.dot(h.astype(jnp.bfloat16), w, preferred_element_type=jnp.float32) + b
            if i < num_layers - 1:
                h = jnp.maximum(h, 0.0)        # ReLU on all but the last LinearBlock

        out_ref[...] = jnp.maximum(h + res, 0.0).astype(out_ref.dtype)   # final ReLU

    return kernel


def residual_linear_block_forward(x, layer_params, adaptive_params, *,
                                  batch_tile=512,
                                  vmem_budget_bytes=_VMEM_BUDGET_BYTES):
    """x: (B, in_features). layer_params: list of (scale, shift, W, b) with W as (in, out).
    adaptive_params: (Wa, ba) with Wa as (in, out). Returns (B, out_features)."""
    num_layers = len(layer_params)
    assert num_layers >= 2, "ResidualLinearBlock requires at least 2 layers"

    B, d_in = x.shape
    wa, ba = adaptive_params
    out_dim = wa.shape[1]

    # ---- glue: fold BatchNorm1d (eval) into each Linear --------------------------------
    folded = []
    for (scale, shift, w, b) in layer_params:
        wf = w * scale.reshape(-1, 1)          # scale over the d_in rows of W
        bf = b + shift @ w                     # (1, d_out)
        folded.append((wf, bf))

    # ---- zero-pad hidden widths to lane multiples of 128 (lane-dense intermediates);
    #      the final layer keeps its TRUE output width (smaller writeback, no wrapper slice)
    padded = []
    prev_out_pad = d_in                        # layer-0 input width == x width (full-dim block)
    for i, (wf, bf) in enumerate(folded):
        r, c = wf.shape
        c_pad = c if i == num_layers - 1 else _round_up(c, _LANE)
        wp = jnp.pad(wf, ((0, prev_out_pad - r), (0, c_pad - c)))
        bp = jnp.pad(bf, ((0, 0), (0, c_pad - c)))
        padded.append((wp, bp))
        prev_out_pad = c_pad

    # ---- fuse the adaptive (residual) matmul into the layer-0 matmul -------------------
    # Residual columns first and lane-padded so the layer-0 slice starts at a 128 multiple.
    res_cols = _round_up(out_dim, _LANE)
    wa_p = jnp.pad(wa, ((0, 0), (0, res_cols - out_dim)))
    ba_p = jnp.pad(ba, ((0, 0), (0, res_cols - out_dim)))
    w0, b0 = padded[0]
    w0_cat = jnp.concatenate([wa_p, w0], axis=1)
    b0_cat = jnp.concatenate([ba_p, b0], axis=1)

    # Weights in bf16 for the MXU; biases stay f32 (accumulation is f32).
    params = [w0_cat.astype(jnp.bfloat16), b0_cat.astype(jnp.float32)]
    for (wp, bp) in padded[1:]:
        params += [wp.astype(jnp.bfloat16), bp.astype(jnp.float32)]
    param_bytes = sum(int(p.size) * p.dtype.itemsize for p in params)
    hidden_widths = [p.shape[1] for p in params[::2]]          # padded output widths
    cat_w = w0_cat.shape[1]

    # ---- batch tile: as large as the VMEM budget allows; >= 2 grid steps for v7x -------
    x_itemsize = x.dtype.itemsize

    def vmem_estimate(tb):
        est = 2 * param_bytes                                  # params (worst case: 2 buffers)
        est += 2 * tb * d_in * x_itemsize                      # x tile (double-buffered)
        est += 2 * tb * out_dim * 4                            # out tile (double-buffered)
        widest = max(hidden_widths + [cat_w])
        est += tb * cat_w * 4                                  # f32 `cat`
        est += tb * widest * 6                                 # f32 h + bf16 copy of h
        est += tb * out_dim * 4                                # f32 res
        return est

    tb = min(batch_tile, _round_up(B, 8))
    if _round_up(B, tb) // tb < 2 and B >= 512:
        # v7x has 2 TensorCores sharing the "parallel" batch axis: keep >= 2 grid steps
        # whenever each step still gets >= 256 rows (v5e/v6e single-TC: harmless).
        tb = _round_up(pl.cdiv(B, 2), 8)
    while vmem_estimate(tb) > vmem_budget_bytes and tb > 8:
        tb = max(8, _round_up(tb // 2, 8))

    b_pad = _round_up(B, tb)
    x_p = jnp.pad(x, ((0, b_pad - B), (0, 0))) if b_pad != B else x
    grid = (b_pad // tb,)
    vmem_limit = int(min(vmem_budget_bytes, max(4 * vmem_estimate(tb), 16 << 20)))

    kernel = _make_kernel(num_layers, res_cols)
    out_shape = jax.ShapeDtypeStruct((b_pad, out_dim), x.dtype)

    def run(single_buffer_params: bool):
        param_specs = []
        for p in params:
            if single_buffer_params:
                # Constant index_map: block never changes -> one resident buffer is enough.
                spec = pl.BlockSpec(p.shape, lambda i: (0, 0),
                                    pipeline_mode=pl.Buffered(1))
            else:
                spec = pl.BlockSpec(p.shape, lambda i: (0, 0))
            param_specs.append(spec)
        return pl.pallas_call(
            kernel,
            out_shape=out_shape,
            grid=grid,
            in_specs=[pl.BlockSpec((tb, d_in), lambda i: (i, 0))] + param_specs,
            out_specs=pl.BlockSpec((tb, out_dim), lambda i: (i, 0)),
            compiler_params=pltpu.CompilerParams(
                dimension_semantics=("parallel",),
                vmem_limit_bytes=vmem_limit),
        )(x_p, *params)

    use_single = hasattr(pl, "Buffered")
    try:
        out = run(use_single)
    except Exception:
        if not use_single:
            raise
        out = run(False)       # fall back to default double-buffered resident params

    return out[:B] if b_pad != B else out


def _init_params(key, units):
    """Deterministic synthetic parameters matching the PyTorch module's shapes."""
    eps = 1e-5
    num_layers = len(units) - 1
    layer_params = []
    for i in range(num_layers):
        d_in, d_out = units[i], units[i + 1]
        key, k_w, k_b, k_g, k_be, k_m, k_v = jax.random.split(key, 7)
        # nn.Linear(d_in, d_out): weight (d_out, d_in) -> stored transposed (d_in, d_out)
        w = jax.random.normal(k_w, (d_in, d_out), jnp.float32) * 0.1
        b = jax.random.normal(k_b, (1, d_out), jnp.float32) * 0.1
        # nn.BatchNorm1d(d_in) eval-mode affine fold
        gamma = 1.0 + 0.1 * jax.random.normal(k_g, (1, d_in), jnp.float32)
        beta = 0.1 * jax.random.normal(k_be, (1, d_in), jnp.float32)
        r_mean = 0.1 * jax.random.normal(k_m, (1, d_in), jnp.float32)
        r_var = jax.random.uniform(k_v, (1, d_in), jnp.float32, 0.5, 1.5)
        scale = gamma / jnp.sqrt(r_var + eps)
        shift = beta - r_mean * scale
        layer_params.append((scale, shift, w, b))
    key, k_aw, k_ab = jax.random.split(key, 3)
    d_in, d_out = units[0], units[-1]
    wa = jax.random.normal(k_aw, (d_in, d_out), jnp.float32) * 0.1
    ba = jax.random.normal(k_ab, (1, d_out), jnp.float32) * 0.1
    return layer_params, (wa, ba)


def _reference_forward(x, layer_params, adaptive_params):
    """Pure-JAX f32 reference matching the PyTorch forward (eval mode)."""
    num_layers = len(layer_params)
    y = x
    h = x
    for i, (scale, shift, w, b) in enumerate(layer_params):
        h = h * scale + shift
        h = h @ w + b
        if i < num_layers - 1:
            h = jnp.maximum(h, 0.0)
    wa, ba = adaptive_params
    return jnp.maximum(h + (y @ wa + ba), 0.0)


if __name__ == "__main__":
    # ResidualLinearBlock(output=16, in_features=32, num_layers=3,
    #                     units=[32, 64, 48, 16], activation='relu', dropout=None)
    units = [32, 64, 48, 16]
    batch = 1024   # 2 grid steps of 512 rows: exercises the larger batch tile and keeps
                   # >= 2 "parallel" steps so v7x's two TensorCores both get work

    key = jax.random.PRNGKey(0)
    key, kx = jax.random.split(key)
    x = jax.random.normal(kx, (batch, units[0]), jnp.float32)

    layer_params, adaptive_params = _init_params(key, units)

    out = residual_linear_block_forward(x, layer_params, adaptive_params)
    out = jax.block_until_ready(out)

    ref = _reference_forward(x, layer_params, adaptive_params)
    assert out.shape == (batch, units[-1])
    # MXU inputs are bf16 (activations re-rounded between layers); accumulation stays f32.
    # Error compounds with depth, hence the loosened tolerance vs the pure-f32 reference.
    assert jnp.allclose(out, ref, atol=5e-2, rtol=5e-2), "Pallas kernel mismatch vs JAX reference"

    print("KERNEL_OK")
</pallas_src>

<mosaic_0001>
module attributes {stable_mosaic.version = 11 : i64} {
  func.func @kernel(%arg0: i32, %arg1: memref<512x32xf32, #tpu.memory_space<vmem>>, %arg2: memref<32x256xbf16, #tpu.memory_space<vmem>>, %arg3: memref<1x256xf32, #tpu.memory_space<vmem>>, %arg4: memref<128x128xbf16, #tpu.memory_space<vmem>>, %arg5: memref<1x128xf32, #tpu.memory_space<vmem>>, %arg6: memref<128x16xbf16, #tpu.memory_space<vmem>>, %arg7: memref<1x16xf32, #tpu.memory_space<vmem>>, %arg8: memref<512x16xf32, #tpu.memory_space<vmem>>) attributes {dimension_semantics = [#tpu.dimension_semantics<parallel>], iteration_bounds = array<i64: 2>, scalar_prefetch = 0 : i64, scratch_operands = 0 : i64, tpu.core_type = #tpu.core_type<tc>, window_params = [{transform_indices = @transform_0, window_bounds = array<i64: 512, 32>}, {pipeline_mode = #tpu.pipeline_mode<synchronous>, transform_indices = @transform_1, window_bounds = array<i64: 32, 256>}, {pipeline_mode = #tpu.pipeline_mode<synchronous>, transform_indices = @transform_2, window_bounds = array<i64: 1, 256>}, {pipeline_mode = #tpu.pipeline_mode<synchronous>, transform_indices = @transform_3, window_bounds = array<i64: 128, 128>}, {pipeline_mode = #tpu.pipeline_mode<synchronous>, transform_indices = @transform_4, window_bounds = array<i64: 1, 128>}, {pipeline_mode = #tpu.pipeline_mode<synchronous>, transform_indices = @transform_5, window_bounds = array<i64: 128, 16>}, {pipeline_mode = #tpu.pipeline_mode<synchronous>, transform_indices = @transform_6, window_bounds = array<i64: 1, 16>}, {transform_indices = @transform_7, window_bounds = array<i64: 512, 16>}]} {
    %c0 = arith.constant 0 : index
    %c0_0 = arith.constant 0 : index
    %0 = vector.load %arg1[%c0, %c0_0] : memref<512x32xf32, #tpu.memory_space<vmem>>, vector<512x32xf32>
    %1 = arith.truncf %0 : vector<512x32xf32> to vector<512x32xbf16>
    %c0_1 = arith.constant 0 : index
    %c0_2 = arith.constant 0 : index
    %2 = vector.load %arg2[%c0_1, %c0_2] : memref<32x256xbf16, #tpu.memory_space<vmem>>, vector<32x256xbf16>
    %cst = arith.constant dense<0.000000e+00> : vector<512x256xf32>
    %3 = tpu.matmul %1, %2, %cst {dimension_numbers = #tpu.dot_dimension_numbers<[1], [0], [0], [1], [0, 0, 1, 1], [], []>} : vector<512x32xbf16>, vector<32x256xbf16>, vector<512x256xf32> -> vector<512x256xf32>
    %c0_3 = arith.constant 0 : index
    %c0_4 = arith.constant 0 : index
    %4 = vector.load %arg3[%c0_3, %c0_4] : memref<1x256xf32, #tpu.memory_space<vmem>>, vector<1x256xf32>
    %5 = vector.broadcast %4 : vector<1x256xf32> to vector<512x256xf32>
    %6 = arith.addf %3, %5 : vector<512x256xf32>
    %7 = vector.extract_strided_slice %6 {offsets = [0, 0], sizes = [512, 16], strides = [1, 1]} : vector<512x256xf32> to vector<512x16xf32>
    %8 = vector.extract_strided_slice %6 {offsets = [0, 128], sizes = [512, 128], strides = [1, 1]} : vector<512x256xf32> to vector<512x128xf32>
    %cst_5 = arith.constant 0.000000e+00 : f32
    %9 = vector.broadcast %cst_5 : f32 to vector<512x128xf32>
    %10 = arith.maximumf %8, %9 : vector<512x128xf32>
    %c0_6 = arith.constant 0 : index
    %c0_7 = arith.constant 0 : index
    %11 = vector.load %arg4[%c0_6, %c0_7] : memref<128x128xbf16, #tpu.memory_space<vmem>>, vector<128x128xbf16>
    %c0_8 = arith.constant 0 : index
    %c0_9 = arith.constant 0 : index
    %12 = vector.load %arg5[%c0_8, %c0_9] : memref<1x128xf32, #tpu.memory_space<vmem>>, vector<1x128xf32>
    %13 = arith.truncf %10 : vector<512x128xf32> to vector<512x128xbf16>
    %cst_10 = arith.constant dense<0.000000e+00> : vector<512x128xf32>
    %14 = tpu.matmul %13, %11, %cst_10 {dimension_numbers = #tpu.dot_dimension_numbers<[1], [0], [0], [1], [0, 0, 1, 1], [], []>} : vector<512x128xbf16>, vector<128x128xbf16>, vector<512x128xf32> -> vector<512x128xf32>
    %15 = vector.broadcast %12 : vector<1x128xf32> to vector<512x128xf32>
    %16 = arith.addf %14, %15 : vector<512x128xf32>
    %cst_11 = arith.constant 0.000000e+00 : f32
    %17 = vector.broadcast %cst_11 : f32 to vector<512x128xf32>
    %18 = arith.maximumf %16, %17 : vector<512x128xf32>
    %c0_12 = arith.constant 0 : index
    %c0_13 = arith.constant 0 : index
    %19 = vector.load %arg6[%c0_12, %c0_13] : memref<128x16xbf16, #tpu.memory_space<vmem>>, vector<128x16xbf16>
    %c0_14 = arith.constant 0 : index
    %c0_15 = arith.constant 0 : index
    %20 = vector.load %arg7[%c0_14, %c0_15] : memref<1x16xf32, #tpu.memory_space<vmem>>, vector<1x16xf32>
    %21 = arith.truncf %18 : vector<512x128xf32> to vector<512x128xbf16>
    %cst_16 = arith.constant dense<0.000000e+00> : vector<512x16xf32>
    %22 = tpu.matmul %21, %19, %cst_16 {dimension_numbers = #tpu.dot_dimension_numbers<[1], [0], [0], [1], [0, 0, 1, 1], [], []>} : vector<512x128xbf16>, vector<128x16xbf16>, vector<512x16xf32> -> vector<512x16xf32>
    %23 = vector.broadcast %20 : vector<1x16xf32> to vector<512x16xf32>
    %24 = arith.addf %22, %23 : vector<512x16xf32>
    %25 = arith.addf %24, %7 : vector<512x16xf32>
    %cst_17 = arith.constant 0.000000e+00 : f32
    %26 = vector.broadcast %cst_17 : f32 to vector<512x16xf32>
    %27 = arith.maximumf %25, %26 : vector<512x16xf32>
    %c0_18 = arith.constant 0 : index
    %c0_19 = arith.constant 0 : index
    %28 = vector.load %arg8[%c0_18, %c0_19] : memref<512x16xf32, #tpu.memory_space<vmem>>, vector<512x16xf32>
    tpu.vector_store %arg8[%c0_18, %c0_19], %27 {strides = array<i32>} : memref<512x16xf32, #tpu.memory_space<vmem>>, vector<512x16xf32>,
    return
  }
  func.func @transform_0(%arg0: i32) -> (i32, i32) {
    %c0_i32 = arith.constant 0 : i32
    %c0_i32_0 = arith.constant 0 : i32
    return %arg0, %c0_i32 : i32, i32
  }
  func.func @transform_1(%arg0: i32) -> (i32, i32) {
    %c0_i32 = arith.constant 0 : i32
    %c0_i32_0 = arith.constant 0 : i32
    %c0_i32_1 = arith.constant 0 : i32
    return %c0_i32, %c0_i32_0 : i32, i32
  }
  func.func @transform_2(%arg0: i32) -> (i32, i32) {
    %c0_i32 = arith.constant 0 : i32
    %c0_i32_0 = arith.constant 0 : i32
    %c0_i32_1 = arith.constant 0 : i32
    return %c0_i32, %c0_i32_0 : i32, i32
  }
  func.func @transform_3(%arg0: i32) -> (i32, i32) {
    %c0_i32 = arith.constant 0 : i32
    %c0_i32_0 = arith.constant 0 : i32
    %c0_i32_1 = arith.constant 0 : i32
    return %c0_i32, %c0_i32_0 : i32, i32
  }
  func.func @transform_4(%arg0: i32) -> (i32, i32) {
    %c0_i32 = arith.constant 0 : i32
    %c0_i32_0 = arith.constant 0 : i32
    %c0_i32_1 = arith.constant 0 : i32
    return %c0_i32, %c0_i32_0 : i32, i32
  }
  func.func @transform_5(%arg0: i32) -> (i32, i32) {
    %c0_i32 = arith.constant 0 : i32
    %c0_i32_0 = arith.constant 0 : i32
    %c0_i32_1 = arith.constant 0 : i32
    return %c0_i32, %c0_i32_0 : i32, i32
  }
  func.func @transform_6(%arg0: i32) -> (i32, i32) {
    %c0_i32 = arith.constant 0 : i32
    %c0_i32_0 = arith.constant 0 : i32
    %c0_i32_1 = arith.constant 0 : i32
    return %c0_i32, %c0_i32_0 : i32, i32
  }
  func.func @transform_7(%arg0: i32) -> (i32, i32) {
    %c0_i32 = arith.constant 0 : i32
    %c0_i32_0 = arith.constant 0 : i32
    return %arg0, %c0_i32 : i32, i32
  }
}

module attributes {stable_mosaic.version = 11 : i64} {
  func.func @kernel(%arg0: i32, %arg1: memref<512x32xf32, #tpu.memory_space<vmem>>, %arg2: memref<32x256xbf16, #tpu.memory_space<vmem>>, %arg3: memref<1x256xf32, #tpu.memory_space<vmem>>, %arg4: memref<128x128xbf16, #tpu.memory_space<vmem>>, %arg5: memref<1x128xf32, #tpu.memory_space<vmem>>, %arg6: memref<128x16xbf16, #tpu.memory_space<vmem>>, %arg7: memref<1x16xf32, #tpu.memory_space<vmem>>, %arg8: memref<512x16xf32, #tpu.memory_space<vmem>>) attributes {dimension_semantics = [#tpu.dimension_semantics<parallel>], iteration_bounds = array<i64: 2>, scalar_prefetch = 0 : i64, scratch_operands = 0 : i64, tpu.core_type = #tpu.core_type<tc>, window_params = [{transform_indices = @transform_0, window_bounds = array<i64: 512, 32>}, {pipeline_mode = #tpu.pipeline_mode<synchronous>, transform_indices = @transform_1, window_bounds = array<i64: 32, 256>}, {pipeline_mode = #tpu.pipeline_mode<synchronous>, transform_indices = @transform_2, window_bounds = array<i64: 1, 256>}, {pipeline_mode = #tpu.pipeline_mode<synchronous>, transform_indices = @transform_3, window_bounds = array<i64: 128, 128>}, {pipeline_mode = #tpu.pipeline_mode<synchronous>, transform_indices = @transform_4, window_bounds = array<i64: 1, 128>}, {pipeline_mode = #tpu.pipeline_mode<synchronous>, transform_indices = @transform_5, window_bounds = array<i64: 128, 16>}, {pipeline_mode = #tpu.pipeline_mode<synchronous>, transform_indices = @transform_6, window_bounds = array<i64: 1, 16>}, {transform_indices = @transform_7, window_bounds = array<i64: 512, 16>}]} {
    %c0 = arith.constant 0 : index
    %c0_0 = arith.constant 0 : index
    %0 = vector.load %arg1[%c0, %c0_0] : memref<512x32xf32, #tpu.memory_space<vmem>>, vector<512x32xf32>
    %1 = arith.truncf %0 : vector<512x32xf32> to vector<512x32xbf16>
    %c0_1 = arith.constant 0 : index
    %c0_2 = arith.constant 0 : index
    %2 = vector.load %arg2[%c0_1, %c0_2] : memref<32x256xbf16, #tpu.memory_space<vmem>>, vector<32x256xbf16>
    %cst = arith.constant dense<0.000000e+00> : vector<512x256xf32>
    %3 = tpu.matmul %1, %2, %cst {dimension_numbers = #tpu.dot_dimension_numbers<[1], [0], [0], [1], [0, 0, 1, 1], [], []>} : vector<512x32xbf16>, vector<32x256xbf16>, vector<512x256xf32> -> vector<512x256xf32>
    %c0_3 = arith.constant 0 : index
    %c0_4 = arith.constant 0 : index
    %4 = vector.load %arg3[%c0_3, %c0_4] : memref<1x256xf32, #tpu.memory_space<vmem>>, vector<1x256xf32>
    %5 = vector.broadcast %4 : vector<1x256xf32> to vector<512x256xf32>
    %6 = arith.addf %3, %5 : vector<512x256xf32>
    %7 = vector.extract_strided_slice %6 {offsets = [0, 0], sizes = [512, 16], strides = [1, 1]} : vector<512x256xf32> to vector<512x16xf32>
    %8 = vector.extract_strided_slice %6 {offsets = [0, 128], sizes = [512, 128], strides = [1, 1]} : vector<512x256xf32> to vector<512x128xf32>
    %cst_5 = arith.constant 0.000000e+00 : f32
    %9 = vector.broadcast %cst_5 : f32 to vector<512x128xf32>
    %10 = arith.maximumf %8, %9 : vector<512x128xf32>
    %c0_6 = arith.constant 0 : index
    %c0_7 = arith.constant 0 : index
    %11 = vector.load %arg4[%c0_6, %c0_7] : memref<128x128xbf16, #tpu.memory_space<vmem>>, vector<128x128xbf16>
    %c0_8 = arith.constant 0 : index
    %c0_9 = arith.constant 0 : index
    %12 = vector.load %arg5[%c0_8, %c0_9] : memref<1x128xf32, #tpu.memory_space<vmem>>, vector<1x128xf32>
    %13 = arith.truncf %10 : vector<512x128xf32> to vector<512x128xbf16>
    %cst_10 = arith.constant dense<0.000000e+00> : vector<512x128xf32>
    %14 = tpu.matmul %13, %11, %cst_10 {dimension_numbers = #tpu.dot_dimension_numbers<[1], [0], [0], [1], [0, 0, 1, 1], [], []>} : vector<512x128xbf16>, vector<128x128xbf16>, vector<512x128xf32> -> vector<512x128xf32>
    %15 = vector.broadcast %12 : vector<1x128xf32> to vector<512x128xf32>
    %16 = arith.addf %14, %15 : vector<512x128xf32>
    %cst_11 = arith.constant 0.000000e+00 : f32
    %17 = vector.broadcast %cst_11 : f32 to vector<512x128xf32>
    %18 = arith.maximumf %16, %17 : vector<512x128xf32>
    %c0_12 = arith.constant 0 : index
    %c0_13 = arith.constant 0 : index
    %19 = vector.load %arg6[%c0_12, %c0_13] : memref<128x16xbf16, #tpu.memory_space<vmem>>, vector<128x16xbf16>
    %c0_14 = arith.constant 0 : index
    %c0_15 = arith.constant 0 : index
    %20 = vector.load %arg7[%c0_14, %c0_15] : memref<1x16xf32, #tpu.memory_space<vmem>>, vector<1x16xf32>
    %21 = arith.truncf %18 : vector<512x128xf32> to vector<512x128xbf16>
    %cst_16 = arith.constant dense<0.000000e+00> : vector<512x16xf32>
    %22 = tpu.matmul %21, %19, %cst_16 {dimension_numbers = #tpu.dot_dimension_numbers<[1], [0], [0], [1], [0, 0, 1, 1], [], []>} : vector<512x128xbf16>, vector<128x16xbf16>, vector<512x16xf32> -> vector<512x16xf32>
    %23 = vector.broadcast %20 : vector<1x16xf32> to vector<512x16xf32>
    %24 = arith.addf %22, %23 : vector<512x16xf32>
    %25 = arith.addf %24, %7 : vector<512x16xf32>
    %cst_17 = arith.constant 0.000000e+00 : f32
    %26 = vector.broadcast %cst_17 : f32 to vector<512x16xf32>
    %27 = arith.maximumf %25, %26 : vector<512x16xf32>
    %c0_18 = arith.constant 0 : index
    %c0_19 = arith.constant 0 : index
    %28 = vector.load %arg8[%c0_18, %c0_19] : memref<512x16xf32, #tpu.memory_space<vmem>>, vector<512x16xf32>
    tpu.vector_store %arg8[%c0_18, %c0_19], %27 {strides = array<i32>} : memref<512x16xf32, #tpu.memory_space<vmem>>, vector<512x16xf32>,
    return
  }
  func.func @transform_0(%arg0: i32) -> (i32, i32) {
    %c0_i32 = arith.constant 0 : i32
    %c0_i32_0 = arith.constant 0 : i32
    return %arg0, %c0_i32 : i32, i32
  }
  func.func @transform_1(%arg0: i32) -> (i32, i32) {
    %c0_i32 = arith.constant 0 : i32
    %c0_i32_0 = arith.constant 0 : i32
    %c0_i32_1 = arith.constant 0 : i32
    return %c0_i32, %c0_i32_0 : i32, i32
  }
  func.func @transform_2(%arg0: i32) -> (i32, i32) {
    %c0_i32 = arith.constant 0 : i32
    %c0_i32_0 = arith.constant 0 : i32
    %c0_i32_1 = arith.constant 0 : i32
    return %c0_i32, %c0_i32_0 : i32, i32
  }
  func.func @transform_3(%arg0: i32) -> (i32, i32) {
    %c0_i32 = arith.constant 0 : i32
    %c0_i32_0 = arith.constant 0 : i32
    %c0_i32_1 = arith.constant 0 : i32
    return %c0_i32, %c0_i32_0 : i32, i32
  }
  func.func @transform_4(%arg0: i32) -> (i32, i32) {
    %c0_i32 = arith.constant 0 : i32
    %c0_i32_0 = arith.constant 0 : i32
    %c0_i32_1 = arith.constant 0 : i32
    return %c0_i32, %c0_i32_0 : i32, i32
  }
  func.func @transform_5(%arg0: i32) -> (i32, i32) {
    %c0_i32 = arith.constant 0 : i32
    %c0_i32_0 = arith.constant 0 : i32
    %c0_i32_1 = arith.constant 0 : i32
    return %c0_i32, %c0_i32_0 : i32, i32
  }
  func.func @transform_6(%arg0: i32) -> (i32, i32) {
    %c0_i32 = arith.constant 0 : i32
    %c0_i32_0 = arith.constant 0 : i32
    %c0_i32_1 = arith.constant 0 : i32
    return %c0_i32, %c0_i32_0 : i32, i32
  }
  func.func @transform_7(%arg0: i32) -> (i32, i32) {
    %c0_i32 = arith.constant 0 : i32
    %c0_i32_0 = arith.constant 0 : i32
    return %arg0, %c0_i32 : i32, i32
  }
}

</mosaic_0001>

<bundles_post_ra>
// kernel: tpu_custom_call.1
= control target key start
LH: loop header
LB: loop body
LE: loop exit
PB: predicated region body
PF: predicated region fallthrough
CT: control target
= control target key end

     0   :  { %s2427_s24 = smov 0   ;;  %s3244_s0 = inlined_call_operand.vmem [shape: f32[1024,32], index: 0, kind: input, shape index: {}]   ;;  %s3245_s1 = inlined_call_operand.vmem [shape: bf16[32,256], index: 1, kind: input, shape index: {}]   ;;  %s3246_s2 = inlined_call_operand.vmem [shape: f32[1,256], index: 2, kind: input, shape index: {}]   ;;  %s3247_s3 = inlined_call_operand.vmem [shape: bf16[128,128], index: 3, kind: input, shape index: {}]   ;;  %s3248_s4 = inlined_call_operand.vmem [shape: f32[1,128], index: 4, kind: input, shape index: {}]   ;;  %s3249_s5 = inlined_call_operand.vmem [shape: bf16[128,16], index: 5, kind: input, shape index: {}]   ;;  %s3250_s6 = inlined_call_operand.vmem [shape: f32[1,16], index: 6, kind: input, shape index: {}]   ;;  %s3251_s7 = inlined_call_operand.vmem [shape: f32[1024,16], index: 7, kind: output, shape index: {}]  }
   0x1 LB: > { %s2026_s25 = sadd.s32 4294967295, %s2384_s24   ;;  %p2030_p0 = scmp.ge.s32.totalorder %s2384_s24, 1  ;;  %s2384_s24 = sphi %s2427_s24, %s17_s24  }
   0x2   : > { %p238_p1 = scmp.lt.s32.totalorder %s2384_s24, 3 }
   0x4   : > { %p239_p2 = pnand %p2030_p0, %p238_p1 }
   0x6   : > { %242 = sbr.rel (%p239_p2) target bundleno = 935 (0x3a7), region = 48 }
   0xd   : > { %v2356_v0 = vld [vmem:[%s3245_s1 + $0x4] ss:$8 sps:$4 sm:$0xff]   ;;  %s2031_s28 = sshll.u32 %s2026_s25, 6  ;;  %v2358_v1 = vld [vmem:[%s3245_s1] ss:$8 sps:$4 sm:$0xff]   ;;  %v2386_v2 = vmov 0   ;;  %v385_v42 = vlaneseq }
   0xe   : > { %544 = vmatprep.mubr.bf16.mxu0 %v2386_v2  ;;  %p271_p3 = scmp.lt.s32.totalorder %s2031_s28, 127  ;;  %512 = vmatprep.subr.bf16.mxu0 %v2356_v0  ;;  %v2359_v3 = vld [vmem:[%s3245_s1 + $0x14] ss:$8 sps:$4 sm:$0xff]   ;;  %v2361_v4 = vld [vmem:[%s3245_s1 + $0x10] ss:$8 sps:$4 sm:$0xff]   ;;  %v2362_v5 = vld [vmem:[%s3247_s3] sm:$0xff]  }
   0xf   : > { %513 = vmatpush1.bf16.msra.mxu0 %v2358_v1  ;;  %v2363_v6 = vld [vmem:[%s3247_s3 + $0x8] sm:$0xff]   ;;  %2331 = vmatprep.subr.bf16.mxu1 %v2362_v5  ;;  %vm415_vm0 = vcmask 261120   ;;  %v2364_v19 = vld [vmem:[%s3247_s3 + $0x10] sm:$0xff]   ;;  %v2365_v32 = vld [vmem:[%s3247_s3 + $0x18] sm:$0xff]   ;;  %v2512_v43 = vshrl.u32 %v385_v42, 7  ;;  %vm1905_vm1 = vcmask 130048  }
  0x10   : > { %s3301_s28 = smov (!%p271_p3, %s2031_s28), 127  ;;  %514 = vmatprep.subr.bf16.mxu0 %v2359_v3  ;;  %2339 = vmatpush3.bf16.msra.mxu1 %v2362_v5  ;;  %v2518_v44 = vld [vmem:[%s3246_s2] sm:$0x3]  ;;  %v2367_v57 = vld [vmem:[%s3247_s3 + $0x28] sm:$0xff]   ;;  %v2368_v60 = vld [vmem:[%s3247_s3 + $0x30] sm:$0xff]  }
  0x11   : > { %s2032_s16 = sshll.u32 %s3301_s28, 3  ;;  %2332 = vmatprep.subr.bf16.mxu1 %v2363_v6  ;;  %v387_v45 = vsub.s32 0, %v2512_v43  ;;  %v2366_v53 = vld [vmem:[%s3247_s3 + $0x20] sm:$0xff]   ;;  %v2369_v62 = vld [vmem:[%s3247_s3 + $0x38] sm:$0xff]  }
  0x12   : > { %s2462_s19 = scalar_lea.vmem %s3244_s0, %s2032_s16  ;;  %s2930_s15 = scalar_lea.vmem %s3251_s7, %s2032_s16 }
  0x13   : > { %515 = vmatpush1.bf16.msra.mxu0 %v2361_v4  ;;  %v283_v7 = vld [vmem:[%s2462_s19] sm:$0xff]  ;;  %v284_v8 = vld [vmem:[%s2462_s19 + $0x8] sm:$0xff]  ;;  %v285_v10 = vld [vmem:[%s2462_s19 + $0x10] sm:$0xff]  ;;  %v2525_v48 = vrot.slane %v2518_v44, %v387_v45 }
  0x14   : > { %v347_v9 = vpack.c.bf16 %v284_v8, %v283_v7  ;;  %2171 = vmatprep.subr.bf16.mxu0 %v2362_v5  ;;  %2340 = vmatpush3.bf16.msra.mxu1 %v2363_v6  ;;  %v286_v11 = vld [vmem:[%s2462_s19 + $0x18] sm:$0xff]  ;;  %v287_v13 = vld [vmem:[%s2462_s19 + $0x20] sm:$0xff]  ;;  %v288_v14 = vld [vmem:[%s2462_s19 + $0x28] sm:$0xff] }
  0x15   : > { %v348_v12 = vpack.c.bf16 %v286_v11, %v285_v10  ;;  %v349_v15 = vpack.c.bf16 %v288_v14, %v287_v13  ;;  %v289_v16 = vld [vmem:[%s2462_s19 + $0x30] sm:$0xff]  ;;  %v290_v17 = vld [vmem:[%s2462_s19 + $0x38] sm:$0xff]  ;;  %v291_v20 = vld [vmem:[%s2462_s19 + $0x40] sm:$0xff]  ;;  %2333 = vmatprep.subr.bf16.mxu1 %v2364_v19 }
  0x16   : > { %2039 = vmatmul.mubr.msk.bf16.vlgmr.msra.gmra.mrb[0].mxu0 %vm415_vm0, %v347_v9  ;;  %v350_v18 = vpack.c.bf16 %v290_v17, %v289_v16  ;;  %v292_v21 = vld [vmem:[%s2462_s19 + $0x48] sm:$0xff]  ;;  %v293_v23 = vld [vmem:[%s2462_s19 + $0x50] sm:$0xff]  ;;  %v294_v24 = vld [vmem:[%s2462_s19 + $0x58] sm:$0xff] }
  0x17   : > { %554 = vmatprep.mubr.bf16.mxu0 %v2386_v2  ;;  %2172 = vmatpush3.bf16.msra.mxu0 %v2362_v5  ;;  %v351_v22 = vpack.c.bf16 %v292_v21, %v291_v20  ;;  %v352_v25 = vpack.c.bf16 %v294_v24, %v293_v23  ;;  %v295_v26 = vld [vmem:[%s2462_s19 + $0x60] sm:$0xff]  ;;  %v296_v27 = vld [vmem:[%s2462_s19 + $0x68] sm:$0xff]  ;;  %v297_v29 = vld [vmem:[%s2462_s19 + $0x70] sm:$0xff] }
  0x18   : > { %2173 = vmatprep.subr.bf16.mxu0 %v2363_v6  ;;  %2341 = vmatpush3.bf16.msra.mxu1 %v2364_v19  ;;  %v353_v28 = vpack.c.bf16 %v296_v27, %v295_v26  ;;  %v298_v30 = vld [vmem:[%s2462_s19 + $0x78] sm:$0xff]  ;;  %v299_v33 = vld [vmem:[%s2462_s19 + $0x80] sm:$0xff]  ;;  %v300_v34 = vld [vmem:[%s2462_s19 + $0x88] sm:$0xff] }
  0x19   : > { %v354_v31 = vpack.c.bf16 %v298_v30, %v297_v29  ;;  %2334 = vmatprep.subr.bf16.mxu1 %v2365_v32  ;;  %v355_v35 = vpack.c.bf16 %v300_v34, %v299_v33  ;;  %v301_v36 = vld [vmem:[%s2462_s19 + $0x90] sm:$0xff]  ;;  %v302_v37 = vld [vmem:[%s2462_s19 + $0x98] sm:$0xff]  ;;  %v303_v39 = vld [vmem:[%s2462_s19 + $0xa0] sm:$0xff] }
  0x1a   : > { %v356_v38 = vpack.c.bf16 %v302_v37, %v301_v36  ;;  %v304_v40 = vld [vmem:[%s2462_s19 + $0xa8] sm:$0xff]  ;;  %v305_v46 = vld [vmem:[%s2462_s19 + $0xb0] sm:$0xff]  ;;  %v306_v47 = vld [vmem:[%s2462_s19 + $0xb8] sm:$0xff]  ;;  %v391_v36 = vsub.s32 1, %v2512_v43 }
  0x1b   : > { %2174 = vmatpush3.bf16.msra.mxu0 %v2363_v6  ;;  %v357_v41 = vpack.c.bf16 %v304_v40, %v303_v39  ;;  %v358_v49 = vpack.c.bf16 %v306_v47, %v305_v46  ;;  %v307_v50 = vld [vmem:[%s2462_s19 + $0xc0] sm:$0xff]  ;;  %v308_v51 = vld [vmem:[%s2462_s19 + $0xc8] sm:$0xff]  ;;  %v309_v54 = vld [vmem:[%s2462_s19 + $0xd0] sm:$0xff] }
  0x1c   : > { %2175 = vmatprep.subr.bf16.mxu0 %v2364_v19  ;;  %2342 = vmatpush3.bf16.msra.mxu1 %v2365_v32  ;;  %v359_v52 = vpack.c.bf16 %v308_v51, %v307_v50  ;;  %v310_v55 = vld [vmem:[%s2462_s19 + $0xd8] sm:$0xff]  ;;  %v311_v58 = vld [vmem:[%s2462_s19 + $0xe0] sm:$0xff]  ;;  %v312_v59 = vld [vmem:[%s2462_s19 + $0xe8] sm:$0xff]  ;;  %v2602_v37 = vrot.slane %v2518_v44, %v391_v36 }
  0x1d   : > { %2335 = vmatprep.subr.bf16.mxu1 %v2366_v53  ;;  %v360_v56 = vpack.c.bf16 %v310_v55, %v309_v54  ;;  %v361_v61 = vpack.c.bf16 %v312_v59, %v311_v58  ;;  %v313_v63 = vld [vmem:[%s2462_s19 + $0xf0] sm:$0xff]  ;;  %v314_v0 = vld [vmem:[%s2462_s19 + $0xf8] sm:$0xff]  ;;  %v315_v3 = vld [vmem:[%s2462_s19 + $0x100] sm:$0xff] }
  0x1e   : > { %2040 = vmatmul.mubr.msk.bf16.gmra.mrb[4].mxu0 %vm415_vm0, %v348_v12  ;;  %v362_v1 = vpack.c.bf16 %v314_v0, %v313_v63  ;;  %v316_v4 = vld [vmem:[%s2462_s19 + $0x108] sm:$0xff]  ;;  %v317_v6 = vld [vmem:[%s2462_s19 + $0x110] sm:$0xff]  ;;  %v318_v7 = vld [vmem:[%s2462_s19 + $0x118] sm:$0xff] }
  0x1f   : > { %564 = vmatprep.mubr.bf16.mxu0 %v2386_v2  ;;  %2176 = vmatpush3.bf16.msra.mxu0 %v2364_v19  ;;  %v363_v5 = vpack.c.bf16 %v316_v4, %v315_v3  ;;  %v364_v8 = vpack.c.bf16 %v318_v7, %v317_v6  ;;  %v319_v9 = vld [vmem:[%s2462_s19 + $0x120] sm:$0xff]  ;;  %v320_v10 = vld [vmem:[%s2462_s19 + $0x128] sm:$0xff]  ;;  %v321_v12 = vld [vmem:[%s2462_s19 + $0x130] sm:$0xff] }
  0x20   : > { %2177 = vmatprep.subr.bf16.mxu0 %v2365_v32  ;;  %2343 = vmatpush3.bf16.msra.mxu1 %v2366_v53  ;;  %v365_v11 = vpack.c.bf16 %v320_v10, %v319_v9  ;;  %v322_v13 = vld [vmem:[%s2462_s19 + $0x138] sm:$0xff]  ;;  %v324_v16 = vld [vmem:[%s2462_s19 + $0x148] sm:$0xff]  ;;  %v327_v21 = vld [vmem:[%s2462_s19 + $0x160] sm:$0xff] }
  0x21   : > { %2336 = vmatprep.subr.bf16.mxu1 %v2367_v57  ;;  %v366_v14 = vpack.c.bf16 %v322_v13, %v321_v12  ;;  %v326_v19 = vld [vmem:[%s2462_s19 + $0x158] sm:$0xff]  ;;  %v329_v24 = vld [vmem:[%s2462_s19 + $0x170] sm:$0xff]  ;;  %v331_v27 = vld [vmem:[%s2462_s19 + $0x180] sm:$0xff] }
  0x22   : > { %v333_v30 = vld [vmem:[%s2462_s19 + $0x190] sm:$0xff]  ;;  %v335_v33 = vld [vmem:[%s2462_s19 + $0x1a0] sm:$0xff]  ;;  %v336_v34 = vld [vmem:[%s2462_s19 + $0x1a8] sm:$0xff] }
  0x23   : > { %2178 = vmatpush3.bf16.msra.mxu0 %v2365_v32  ;;  %v338_v39 = vld [vmem:[%s2462_s19 + $0x1b8] sm:$0xff]  ;;  %v339_v50 = vld [vmem:[%s2462_s19 + $0x1c0] sm:$0xff]  ;;  %v340_v51 = vld [vmem:[%s2462_s19 + $0x1c8] sm:$0xff] }
  0x24   : > { %2179 = vmatprep.subr.bf16.mxu0 %v2366_v53  ;;  %2344 = vmatpush3.bf16.msra.mxu1 %v2367_v57  ;;  %v375_v55 = vpack.c.bf16 %v340_v51, %v339_v50  ;;  %v342_v63 = vld [vmem:[%s2462_s19 + $0x1d8] sm:$0xff]  ;;  %v344_v12 = vld [vmem:[%s2462_s19 + $0x1e8] sm:$0xff] }
  0x25   : > { %2337 = vmatprep.subr.bf16.mxu1 %v2368_v60 }
  0x26   : > { %2041 = vmatmul.mubr.msk.bf16.gmra.mrb[8].mxu0 %vm415_vm0, %v349_v15  ;;  %v323_v15 = vld [vmem:[%s2462_s19 + $0x140] sm:$0xff] }
  0x27   : > { %574 = vmatprep.mubr.bf16.mxu0 %v2386_v2  ;;  %2180 = vmatpush3.bf16.msra.mxu0 %v2366_v53  ;;  %v367_v17 = vpack.c.bf16 %v324_v16, %v323_v15 }
  0x28   : > { %2181 = vmatprep.subr.bf16.mxu0 %v2367_v57  ;;  %2345 = vmatpush3.bf16.msra.mxu1 %v2368_v60 }
  0x29   : > { %2338 = vmatprep.subr.bf16.mxu1 %v2369_v62 }
  0x2b   : > { %2182 = vmatpush3.bf16.msra.mxu0 %v2367_v57 }
  0x2c   : > { %2183 = vmatprep.subr.bf16.mxu0 %v2368_v60  ;;  %2346 = vmatpush3.bf16.msra.mxu1 %v2369_v62 }
  0x2e   : > { %2042 = vmatmul.mubr.msk.bf16.gmra.mrb[12].mxu0 %vm415_vm0, %v350_v18  ;;  %v325_v18 = vld [vmem:[%s2462_s19 + $0x150] sm:$0xff] }
  0x2f   : > { %584 = vmatprep.mubr.bf16.mxu0 %v2386_v2  ;;  %2184 = vmatpush3.bf16.msra.mxu0 %v2368_v60  ;;  %v368_v20 = vpack.c.bf16 %v326_v19, %v325_v18 }
  0x30   : > { %2185 = vmatprep.subr.bf16.mxu0 %v2369_v62 }
  0x33   : > { %2186 = vmatpush3.bf16.msra.mxu0 %v2369_v62  ;;  %v341_v62 = vld [vmem:[%s2462_s19 + $0x1d0] sm:$0xff] }
  0x34   : > { %v376_v4 = vpack.c.bf16 %v342_v63, %v341_v62 }
  0x36   : > { %2043 = vmatmul.mubr.msk.bf16.gmra.mrb[16].mxu0 %vm415_vm0, %v351_v22  ;;  %v328_v22 = vld [vmem:[%s2462_s19 + $0x168] sm:$0xff] }
  0x37   : > { %594 = vmatprep.mubr.bf16.mxu0 %v2386_v2  ;;  %v369_v23 = vpack.c.bf16 %v328_v22, %v327_v21 }
  0x3e   : > { %2044 = vmatmul.mubr.msk.bf16.gmra.mrb[20].mxu0 %vm415_vm0, %v352_v25  ;;  %v330_v25 = vld [vmem:[%s2462_s19 + $0x178] sm:$0xff] }
  0x3f   : > { %604 = vmatprep.mubr.bf16.mxu0 %v2386_v2  ;;  %v370_v26 = vpack.c.bf16 %v330_v25, %v329_v24  ;;  %v346_v24 = vld [vmem:[%s2462_s19 + $0x1f8] sm:$0xff] }
  0x46   : > { %2045 = vmatmul.mubr.msk.bf16.gmra.mrb[24].mxu0 %vm415_vm0, %v353_v28  ;;  %v332_v28 = vld [vmem:[%s2462_s19 + $0x188] sm:$0xff] }
  0x47   : > { %614 = vmatprep.mubr.bf16.mxu0 %v2386_v2  ;;  %v371_v29 = vpack.c.bf16 %v332_v28, %v331_v27 }
  0x4e   : > { %2046 = vmatmul.mubr.msk.bf16.gmra.mrb[28].mxu0 %vm415_vm0, %v354_v31  ;;  %v334_v31 = vld [vmem:[%s2462_s19 + $0x198] sm:$0xff] }
  0x4f   : > { %624 = vmatprep.mubr.bf16.mxu0 %v2386_v2  ;;  %v372_v32 = vpack.c.bf16 %v334_v31, %v333_v30 }
  0x56   : > { %2047 = vmatmul.mubr.msk.bf16.gmra.mrb[32].mxu0 %vm415_vm0, %v355_v35  ;;  %v373_v35 = vpack.c.bf16 %v336_v34, %v335_v33 }
  0x57   : > { %634 = vmatprep.mubr.bf16.mxu0 %v2386_v2 }
  0x5e   : > { %2048 = vmatmul.mubr.msk.bf16.gmra.mrb[36].mxu0 %vm415_vm0, %v356_v38  ;;  %v337_v38 = vld [vmem:[%s2462_s19 + $0x1b0] sm:$0xff] }
  0x5f   : > { %644 = vmatprep.mubr.bf16.mxu0 %v2386_v2  ;;  %v374_v42 = vpack.c.bf16 %v338_v39, %v337_v38 }
  0x66   : > { %2049 = vmatmul.mubr.msk.bf16.gmra.mrb[40].mxu0 %vm415_vm0, %v357_v41 }
  0x67   : > { %654 = vmatprep.mubr.bf16.mxu0 %v2386_v2 }
  0x6e   : > { %2050 = vmatmul.mubr.msk.bf16.gmra.mrb[44].mxu0 %vm415_vm0, %v358_v49 }
  0x6f   : > { %664 = vmatprep.mubr.bf16.mxu0 %v2386_v2 }
  0x76   : > { %2051 = vmatmul.mubr.msk.bf16.gmra.mrb[48].mxu0 %vm415_vm0, %v359_v52 }
  0x77   : > { %674 = vmatprep.mubr.bf16.mxu0 %v2386_v2 }
  0x7e   : > { %2052 = vmatmul.mubr.msk.bf16.gmra.mrb[52].mxu0 %vm415_vm0, %v360_v56 }
  0x7f   : > { %684 = vmatprep.mubr.bf16.mxu0 %v2386_v2 }
  0x86   : > { %2053 = vmatmul.mubr.msk.bf16.gmra.mrb[56].mxu0 %vm415_vm0, %v361_v61 }
  0x87   : > { %694 = vmatprep.mubr.bf16.mxu0 %v2386_v2 }
  0x8e   : > { %2054 = vmatmul.mubr.msk.bf16.gmra.mrb[60].mxu0 %vm415_vm0, %v362_v1 }
  0x8f   : > { %704 = vmatprep.mubr.bf16.mxu0 %v2386_v2 }
  0x96   : > { %2055 = vmatmul.mubr.msk.bf16.gmra.mrb[64].mxu0 %vm415_vm0, %v363_v5 }
  0x97   : > { %714 = vmatprep.mubr.bf16.mxu0 %v2386_v2 }
  0x9e   : > { %2056 = vmatmul.mubr.msk.bf16.gmra.mrb[68].mxu0 %vm415_vm0, %v364_v8 }
  0x9f   : > { %724 = vmatprep.mubr.bf16.mxu0 %v2386_v2 }
  0xa6   : > { %2057 = vmatmul.mubr.msk.bf16.gmra.mrb[72].mxu0 %vm415_vm0, %v365_v11  ;;  %v343_v11 = vld [vmem:[%s2462_s19 + $0x1e0] sm:$0xff] }
  0xa7   : > { %734 = vmatprep.mubr.bf16.mxu0 %v2386_v2  ;;  %v377_v16 = vpack.c.bf16 %v344_v12, %v343_v11 }
  0xae   : > { %2058 = vmatmul.mubr.msk.bf16.gmra.mrb[76].mxu0 %vm415_vm0, %v366_v14 }
  0xaf   : > { %744 = vmatprep.mubr.bf16.mxu0 %v2386_v2 }
  0xb6   : > { %2059 = vmatmul.mubr.msk.bf16.gmra.mrb[80].mxu0 %vm415_vm0, %v367_v17 }
  0xb7   : > { %754 = vmatprep.mubr.bf16.mxu0 %v2386_v2 }
  0xbe   : > { %2060 = vmatmul.mubr.msk.bf16.gmra.mrb[84].mxu0 %vm415_vm0, %v368_v20 }
  0xbf   : > { %764 = vmatprep.mubr.bf16.mxu0 %v2386_v2 }
  0xc6   : > { %2061 = vmatmul.mubr.msk.bf16.gmra.mrb[88].mxu0 %vm415_vm0, %v369_v23  ;;  %v345_v23 = vld [vmem:[%s2462_s19 + $0x1f0] sm:$0xff] }
  0xc7   : > { %774 = vmatprep.mubr.bf16.mxu0 %v2386_v2  ;;  %v378_v28 = vpack.c.bf16 %v346_v24, %v345_v23 }
  0xce   : > { %2062 = vmatmul.mubr.msk.bf16.gmra.mrb[92].mxu0 %vm415_vm0, %v370_v26 }
  0xcf   : > { %784 = vmatprep.mubr.bf16.mxu0 %v2386_v2 }
  0xd6   : > { %2063 = vmatmul.mubr.msk.bf16.gmra.mrb[96].mxu0 %vm415_vm0, %v371_v29 }
  0xd7   : > { %794 = vmatprep.mubr.bf16.mxu0 %v2386_v2 }
  0xde   : > { %2064 = vmatmul.mubr.msk.bf16.gmra.mrb[100].mxu0 %vm415_vm0, %v372_v32 }
  0xdf   : > { %804 = vmatprep.mubr.bf16.mxu0 %v2386_v2 }
  0xe6   : > { %2065 = vmatmul.mubr.msk.bf16.gmra.mrb[104].mxu0 %vm415_vm0, %v373_v35 }
  0xe7   : > { %814 = vmatprep.mubr.bf16.mxu0 %v2386_v2 }
  0xe9   : > { %v2607_v40 = vpop.f32.mrb[0].mxu0 }
  0xea   : > { %v548_v41 = vpop.f32.mrb[1].mxu0 }
  0xeb   : > { %v549_v45 = vadd.f32 %v548_v41, %v2602_v37  ;;  %v2610_v46 = vpop.f32.mrb[2].mxu0 }
  0xec   : > { %v552_v43 = vpop.f32.mrb[3].mxu0 }
  0xed   : > { %v553_v47 = vadd.f32 %v552_v43, %v2602_v37  ;;  %v865_v44 = vmax.f32 %v549_v45, 0.0 }
  0xee   : > { %2066 = vmatmul.mubr.msk.bf16.gmra.mrb[108].mxu0 %vm415_vm0, %v374_v42 }
  0xef   : > { %v866_v49 = vmax.f32 %v553_v47, 0.0  ;;  %824 = vmatprep.mubr.bf16.mxu0 %v2386_v2 }
  0xf1   : > { %v946_v52 = vpack.c.bf16 %v866_v49, %v865_v44  ;;  %v2617_v53 = vpop.f32.mrb[4].mxu0 }
  0xf2   : > { %v558_v54 = vpop.f32.mrb[5].mxu0 }
  0xf3   : > { %v559_v56 = vadd.f32 %v558_v54, %v2602_v37  ;;  %v2620_v57 = vpop.f32.mrb[6].mxu0 }
  0xf4   : > { %v562_v58 = vpop.f32.mrb[7].mxu0 }
  0xf5   : > { %v563_v59 = vadd.f32 %v562_v58, %v2602_v37  ;;  %v867_v60 = vmax.f32 %v559_v56, 0.0 }
  0xf6   : > { %2067 = vmatmul.mubr.msk.bf16.gmra.mrb[112].mxu0 %vm415_vm0, %v375_v55 }
  0xf7   : > { %v868_v61 = vmax.f32 %v563_v59, 0.0  ;;  %834 = vmatprep.mubr.bf16.mxu0 %v2386_v2 }
  0xf9   : > { %v947_v0 = vpack.c.bf16 %v868_v61, %v867_v60  ;;  %v2627_v1 = vpop.f32.mrb[8].mxu0 }
  0xfa   : > { %v568_v3 = vpop.f32.mrb[9].mxu0 }
  0xfb   : > { %v569_v5 = vadd.f32 %v568_v3, %v2602_v37  ;;  %v2630_v6 = vpop.f32.mrb[10].mxu0 }
  0xfc   : > { %v572_v7 = vpop.f32.mrb[11].mxu0 }
  0xfd   : > { %v573_v8 = vadd.f32 %v572_v7, %v2602_v37  ;;  %v869_v9 = vmax.f32 %v569_v5, 0.0 }
  0xfe   : > { %2068 = vmatmul.mubr.msk.bf16.gmra.mrb[116].mxu0 %vm415_vm0, %v376_v4 }
  0xff   : > { %v870_v10 = vmax.f32 %v573_v8, 0.0  ;;  %844 = vmatprep.mubr.bf16.mxu0 %v2386_v2 }
 0x101   : > { %v2637_v13 = vpop.f32.mrb[12].mxu0  ;;  %v948_v14 = vpack.c.bf16 %v870_v10, %v869_v9 }
 0x102   : > { %v578_v15 = vpop.f32.mrb[13].mxu0 }
 0x103   : > { %v579_v17 = vadd.f32 %v578_v15, %v2602_v37  ;;  %v2640_v18 = vpop.f32.mrb[14].mxu0  ;;  %2191 = vmatprep.mubr.bf16.mxu1 %v948_v14 }
 0x104   : > { %v582_v19 = vpop.f32.mrb[15].mxu0 }
 0x105   : > { %v583_v20 = vadd.f32 %v582_v19, %v2602_v37  ;;  %v871_v21 = vmax.f32 %v579_v17, 0.0 }
 0x106   : > { %2069 = vmatmul.mubr.msk.bf16.gmra.mrb[120].mxu0 %vm415_vm0, %v377_v16 }
 0x107   : > { %v872_v22 = vmax.f32 %v583_v20, 0.0  ;;  %854 = vmatprep.mubr.bf16.mxu0 %v2386_v2 }
 0x109   : > { %v949_v25 = vpack.c.bf16 %v872_v22, %v871_v21  ;;  %v2647_v26 = vpop.f32.mrb[16].mxu0 }
 0x10a   : > { %v588_v27 = vpop.f32.mrb[17].mxu0 }
 0x10b   : > { %v589_v29 = vadd.f32 %v588_v27, %v2602_v37  ;;  %v2650_v30 = vpop.f32.mrb[18].mxu0  ;;  %2192 = vmatmul.mubr.bf16.vlgmr.msra.gmra.mrb[0].mxu1 %v949_v25 }
 0x10c   : > { %v592_v31 = vpop.f32.mrb[19].mxu0 }
 0x10d   : > { %v593_v32 = vadd.f32 %v592_v31, %v2602_v37  ;;  %v873_v33 = vmax.f32 %v589_v29, 0.0 }
 0x10e   : > { %2070 = vmatmul.mubr.msk.bf16.gmra.mrb[124].mxu0 %vm415_vm0, %v378_v28 }
 0x10f   : > { %v874_v34 = vmax.f32 %v593_v32, 0.0  ;;  %2187 = vmatprep.mubr.bf16.mxu0 %v946_v52 }
 0x111   : > { %v950_v2 = vpack.c.bf16 %v874_v34, %v873_v33  ;;  %v2654_v35 = vpop.f32.mrb[20].mxu0 }
 0x112   : > { %v598_v36 = vpop.f32.mrb[21].mxu0 }
 0x113   : > { %v599_v38 = vadd.f32 %v598_v36, %v2602_v37  ;;  %v2657_v39 = vpop.f32.mrb[22].mxu0  ;;  %2195 = vmatprep.mubr.bf16.mxu1 %v950_v2 }
 0x114   : > { %v602_v41 = vpop.f32.mrb[23].mxu0 }
 0x115   : > { %v603_v42 = vadd.f32 %v602_v41, %v2602_v37  ;;  %v875_v45 = vmax.f32 %v599_v38, 0.0 }
 0x116   : > { %2188 = vmatmul.mubr.bf16.vlgmr.msra.gmra.mrb[128].mxu0 %v947_v0 }
 0x117   : > { %v876_v43 = vmax.f32 %v603_v42, 0.0 }
 0x119   : > { %v951_v47 = vpack.c.bf16 %v876_v43, %v875_v45  ;;  %v2660_v44 = vpop.f32.mrb[24].mxu0 }
 0x11a   : > { %v608_v49 = vpop.f32.mrb[25].mxu0 }
 0x11b   : > { %v609_v50 = vadd.f32 %v608_v49, %v2602_v37  ;;  %v2663_v51 = vpop.f32.mrb[26].mxu0  ;;  %2196 = vmatmul.mubr.bf16.gmra.mrb[4].mxu1 %v951_v47 }
 0x11c   : > { %v612_v52 = vpop.f32.mrb[27].mxu0 }
 0x11d   : > { %v613_v54 = vadd.f32 %v612_v52, %v2602_v37  ;;  %v877_v55 = vmax.f32 %v609_v50, 0.0 }
 0x11f   : > { %v878_v56 = vmax.f32 %v613_v54, 0.0 }
 0x121   : > { %v952_v58 = vpack.c.bf16 %v878_v56, %v877_v55  ;;  %v2666_v59 = vpop.f32.mrb[28].mxu0 }
 0x122   : > { %v618_v60 = vpop.f32.mrb[29].mxu0 }
 0x123   : > { %v619_v61 = vadd.f32 %v618_v60, %v2602_v37  ;;  %v2669_v62 = vpop.f32.mrb[30].mxu0  ;;  %2199 = vmatprep.mubr.bf16.mxu1 %v952_v58 }
 0x124   : > { %v622_v63 = vpop.f32.mrb[31].mxu0 }
 0x125   : > { %v623_v0 = vadd.f32 %v622_v63, %v2602_v37  ;;  %v879_v3 = vmax.f32 %v619_v61, 0.0 }
 0x127   : > { %v880_v4 = vmax.f32 %v623_v0, 0.0 }
 0x129   : > { %v953_v5 = vpack.c.bf16 %v880_v4, %v879_v3  ;;  %v2672_v7 = vpop.f32.mrb[32].mxu0 }
 0x12a   : > { %v628_v8 = vpop.f32.mrb[33].mxu0 }
 0x12b   : > { %v629_v9 = vadd.f32 %v628_v8, %v2602_v37  ;;  %v2675_v10 = vpop.f32.mrb[34].mxu0  ;;  %2200 = vmatmul.mubr.bf16.gmra.mrb[8].mxu1 %v953_v5 }
 0x12c   : > { %v632_v11 = vpop.f32.mrb[35].mxu0 }
 0x12d   : > { %v633_v12 = vadd.f32 %v632_v11, %v2602_v37  ;;  %v881_v14 = vmax.f32 %v629_v9, 0.0  ;;  %v2370_v9 = vld [vmem:[%s3249_s5] sm:$0xff]  }
 0x12e   : > { %2251 = vmatprep.subr.bf16.mxu1 %v2370_v9 }
 0x12f   : > { %v882_v15 = vmax.f32 %v633_v12, 0.0  ;;  %2252 = vmatpush3.bf16.msra.mxu1 %v2370_v9 }
 0x131   : > { %v954_v16 = vpack.c.bf16 %v882_v15, %v881_v14  ;;  %v2678_v17 = vpop.f32.mrb[36].mxu0 }
 0x132   : > { %v638_v19 = vpop.f32.mrb[37].mxu0 }
 0x133   : > { %v639_v20 = vadd.f32 %v638_v19, %v2602_v37  ;;  %v2681_v21 = vpop.f32.mrb[38].mxu0  ;;  %2203 = vmatprep.mubr.bf16.mxu1 %v954_v16  ;;  %v2371_v16 = vld [vmem:[%s3249_s5 + $0x8] sm:$0xff]  }
 0x134   : > { %v642_v22 = vpop.f32.mrb[39].mxu0  ;;  %2253 = vmatprep.subr.bf16.mxu1 %v2371_v16 }
 0x135   : > { %v643_v23 = vadd.f32 %v642_v22, %v2602_v37  ;;  %v883_v24 = vmax.f32 %v639_v20, 0.0  ;;  %2254 = vmatpush3.bf16.msra.mxu1 %v2371_v16 }
 0x137   : > { %v884_v25 = vmax.f32 %v643_v23, 0.0 }
 0x139   : > { %v955_v27 = vpack.c.bf16 %v884_v25, %v883_v24  ;;  %v2684_v28 = vpop.f32.mrb[40].mxu0  ;;  %v2372_v25 = vld [vmem:[%s3249_s5 + $0x10] sm:$0xff]  }
 0x13a   : > { %v648_v29 = vpop.f32.mrb[41].mxu0  ;;  %2255 = vmatprep.subr.bf16.mxu1 %v2372_v25 }
 0x13b   : > { %v649_v31 = vadd.f32 %v648_v29, %v2602_v37  ;;  %v2687_v32 = vpop.f32.mrb[42].mxu0  ;;  %2204 = vmatmul.mubr.bf16.gmra.mrb[12].mxu1 %v955_v27 }
 0x13c   : > { %v652_v33 = vpop.f32.mrb[43].mxu0  ;;  %2256 = vmatpush3.bf16.msra.mxu1 %v2372_v25 }
 0x13d   : > { %v653_v34 = vadd.f32 %v652_v33, %v2602_v37  ;;  %v885_v2 = vmax.f32 %v649_v31, 0.0 }
 0x13f   : > { %v886_v36 = vmax.f32 %v653_v34, 0.0  ;;  %v2373_v34 = vld [vmem:[%s3249_s5 + $0x18] sm:$0xff]  }
 0x140   : > { %2257 = vmatprep.subr.bf16.mxu1 %v2373_v34 }
 0x141   : > { %v956_v38 = vpack.c.bf16 %v886_v36, %v885_v2  ;;  %v2690_v41 = vpop.f32.mrb[44].mxu0  ;;  %2258 = vmatpush3.bf16.msra.mxu1 %v2373_v34 }
 0x142   : > { %v658_v42 = vpop.f32.mrb[45].mxu0 }
 0x143   : > { %v659_v45 = vadd.f32 %v658_v42, %v2602_v37  ;;  %v2693_v43 = vpop.f32.mrb[46].mxu0  ;;  %2207 = vmatprep.mubr.bf16.mxu1 %v956_v38 }
 0x144   : > { %v662_v47 = vpop.f32.mrb[47].mxu0 }
 0x145   : > { %v663_v49 = vadd.f32 %v662_v47, %v2602_v37  ;;  %v887_v50 = vmax.f32 %v659_v45, 0.0  ;;  %v2374_v47 = vld [vmem:[%s3249_s5 + $0x20] sm:$0xff]  }
 0x146   : > { %2259 = vmatprep.subr.bf16.mxu1 %v2374_v47 }
 0x147   : > { %v888_v52 = vmax.f32 %v663_v49, 0.0  ;;  %2260 = vmatpush3.bf16.msra.mxu1 %v2374_v47 }
 0x149   : > { %v957_v54 = vpack.c.bf16 %v888_v52, %v887_v50  ;;  %v2696_v55 = vpop.f32.mrb[48].mxu0 }
 0x14a   : > { %v668_v56 = vpop.f32.mrb[49].mxu0 }
 0x14b   : > { %v669_v58 = vadd.f32 %v668_v56, %v2602_v37  ;;  %v2699_v60 = vpop.f32.mrb[50].mxu0  ;;  %2208 = vmatmul.mubr.bf16.gmra.mrb[16].mxu1 %v957_v54  ;;  %v2375_v56 = vld [vmem:[%s3249_s5 + $0x28] sm:$0xff]  }
 0x14c   : > { %v672_v61 = vpop.f32.mrb[51].mxu0  ;;  %2261 = vmatprep.subr.bf16.mxu1 %v2375_v56 }
 0x14d   : > { %v673_v63 = vadd.f32 %v672_v61, %v2602_v37  ;;  %v889_v0 = vmax.f32 %v669_v58, 0.0  ;;  %2262 = vmatpush3.bf16.msra.mxu1 %v2375_v56 }
 0x14f   : > { %v890_v3 = vmax.f32 %v673_v63, 0.0 }
 0x151   : > { %v958_v4 = vpack.c.bf16 %v890_v3, %v889_v0  ;;  %v2702_v5 = vpop.f32.mrb[52].mxu0 }
 0x152   : > { %v678_v8 = vpop.f32.mrb[53].mxu0 }
 0x153   : > { %v679_v11 = vadd.f32 %v678_v8, %v2602_v37  ;;  %v2708_v12 = vpop.f32.mrb[54].mxu0  ;;  %2211 = vmatprep.mubr.bf16.mxu1 %v958_v4  ;;  %v2376_v4 = vld [vmem:[%s3249_s5 + $0x30] sm:$0xff]  }
 0x154   : > { %v682_v14 = vpop.f32.mrb[55].mxu0  ;;  %2263 = vmatprep.subr.bf16.mxu1 %v2376_v4 }
 0x155   : > { %v683_v15 = vadd.f32 %v682_v14, %v2602_v37  ;;  %v891_v19 = vmax.f32 %v679_v11, 0.0  ;;  %2264 = vmatpush3.bf16.msra.mxu1 %v2376_v4 }
 0x157   : > { %v892_v20 = vmax.f32 %v683_v15, 0.0  ;;  %v2377_v15 = vld [vmem:[%s3249_s5 + $0x38] sm:$0xff]  }
 0x158   : > { %2265 = vmatprep.subr.bf16.mxu1 %v2377_v15 }
 0x159   : > { %v959_v22 = vpack.c.bf16 %v892_v20, %v891_v19  ;;  %v2714_v23 = vpop.f32.mrb[56].mxu0  ;;  %2266 = vmatpush3.bf16.msra.mxu1 %v2377_v15 }
 0x15a   : > { %v688_v24 = vpop.f32.mrb[57].mxu0 }
 0x15b   : > { %v689_v27 = vadd.f32 %v688_v24, %v2602_v37  ;;  %v2720_v29 = vpop.f32.mrb[58].mxu0  ;;  %2212 = vmatmul.mubr.bf16.gmra.mrb[20].mxu1 %v959_v22 }
 0x15c   : > { %v692_v31 = vpop.f32.mrb[59].mxu0 }
 0x15d   : > { %v693_v33 = vadd.f32 %v692_v31, %v2602_v37  ;;  %v893_v2 = vmax.f32 %v689_v27, 0.0 }
 0x15f   : > { %v894_v36 = vmax.f32 %v693_v33, 0.0 }
 0x161   : > { %v960_v38 = vpack.c.bf16 %v894_v36, %v893_v2  ;;  %v2726_v42 = vpop.f32.mrb[60].mxu0 }
 0x162   : > { %v698_v45 = vpop.f32.mrb[61].mxu0 }
 0x163   : > { %v699_v49 = vadd.f32 %v698_v45, %v2602_v37  ;;  %v2732_v50 = vpop.f32.mrb[62].mxu0  ;;  %2215 = vmatprep.mubr.bf16.mxu1 %v960_v38 }
 0x164   : > { %v702_v52 = vpop.f32.mrb[63].mxu0 }
 0x165   : > { %v703_v54 = vadd.f32 %v702_v52, %v2602_v37  ;;  %v895_v58 = vmax.f32 %v699_v49, 0.0 }
 0x167   : > { %v896_v61 = vmax.f32 %v703_v54, 0.0 }
 0x169   : > { %v961_v63 = vpack.c.bf16 %v896_v61, %v895_v58  ;;  %v2738_v0 = vpop.f32.mrb[64].mxu0 }
 0x16a   : > { %v708_v3 = vpop.f32.mrb[65].mxu0 }
 0x16b   : > { %v709_v8 = vadd.f32 %v708_v3, %v2602_v37  ;;  %v2744_v9 = vpop.f32.mrb[66].mxu0  ;;  %2216 = vmatmul.mubr.bf16.gmra.mrb[24].mxu1 %v961_v63 }
 0x16c   : > { %v712_v11 = vpop.f32.mrb[67].mxu0 }
 0x16d   : > { %v713_v14 = vadd.f32 %v712_v11, %v2602_v37  ;;  %v897_v16 = vmax.f32 %v709_v8, 0.0 }
 0x16f   : > { %v898_v19 = vmax.f32 %v713_v14, 0.0 }
 0x171   : > { %v962_v20 = vpack.c.bf16 %v898_v19, %v897_v16  ;;  %v2750_v22 = vpop.f32.mrb[68].mxu0 }
 0x172   : > { %v718_v24 = vpop.f32.mrb[69].mxu0 }
 0x173   : > { %v719_v25 = vadd.f32 %v718_v24, %v2602_v37  ;;  %v2753_v27 = vpop.f32.mrb[70].mxu0  ;;  %2219 = vmatprep.mubr.bf16.mxu1 %v962_v20 }
 0x174   : > { %v722_v31 = vpop.f32.mrb[71].mxu0 }
 0x175   : > { %v723_v33 = vadd.f32 %v722_v31, %v2602_v37  ;;  %v899_v34 = vmax.f32 %v719_v25, 0.0 }
 0x177   : > { %v900_v2 = vmax.f32 %v723_v33, 0.0 }
 0x179   : > { %v963_v36 = vpack.c.bf16 %v900_v2, %v899_v34  ;;  %v2756_v38 = vpop.f32.mrb[72].mxu0 }
 0x17a   : > { %v728_v45 = vpop.f32.mrb[73].mxu0 }
 0x17b   : > { %v729_v47 = vadd.f32 %v728_v45, %v2602_v37  ;;  %v2759_v49 = vpop.f32.mrb[74].mxu0  ;;  %2220 = vmatmul.mubr.bf16.gmra.mrb[28].mxu1 %v963_v36 }
 0x17c   : > { %v732_v52 = vpop.f32.mrb[75].mxu0 }
 0x17d   : > { %v733_v54 = vadd.f32 %v732_v52, %v2602_v37  ;;  %v901_v56 = vmax.f32 %v729_v47, 0.0 }
 0x17f   : > { %v902_v58 = vmax.f32 %v733_v54, 0.0 }
 0x181   : > { %v964_v61 = vpack.c.bf16 %v902_v58, %v901_v56  ;;  %v2762_v63 = vpop.f32.mrb[76].mxu0 }
 0x182   : > { %v738_v3 = vpop.f32.mrb[77].mxu0 }
 0x183   : > { %v739_v4 = vadd.f32 %v738_v3, %v2602_v37  ;;  %v2765_v8 = vpop.f32.mrb[78].mxu0  ;;  %2223 = vmatprep.mubr.bf16.mxu1 %v964_v61 }
 0x184   : > { %v742_v11 = vpop.f32.mrb[79].mxu0 }
 0x185   : > { %v743_v14 = vadd.f32 %v742_v11, %v2602_v37  ;;  %v903_v15 = vmax.f32 %v739_v4, 0.0 }
 0x187   : > { %v904_v16 = vmax.f32 %v743_v14, 0.0 }
 0x189   : > { %v965_v19 = vpack.c.bf16 %v904_v16, %v903_v15  ;;  %v2768_v20 = vpop.f32.mrb[80].mxu0 }
 0x18a   : > { %3252 = vst [vmem:[#allocation2_spill] sm:$0xff] %v2768_v20  ;;  %v748_v24 = vpop.f32.mrb[81].mxu0 }
 0x18b   : > { %v749_v25 = vadd.f32 %v748_v24, %v2602_v37  ;;  %v2771_v31 = vpop.f32.mrb[82].mxu0  ;;  %2224 = vmatmul.mubr.bf16.gmra.mrb[32].mxu1 %v965_v19 }
 0x18c   : > { %3253 = vst [vmem:[#allocation3_spill] sm:$0xff] %v2771_v31  ;;  %v752_v33 = vpop.f32.mrb[83].mxu0 }
 0x18d   : > { %v753_v34 = vadd.f32 %v752_v33, %v2602_v37  ;;  %v905_v2 = vmax.f32 %v749_v25, 0.0 }
 0x18f   : > { %v906_v36 = vmax.f32 %v753_v34, 0.0 }
 0x191   : > { %v966_v45 = vpack.c.bf16 %v906_v36, %v905_v2  ;;  %v2774_v47 = vpop.f32.mrb[84].mxu0 }
 0x192   : > { %3254 = vst [vmem:[#allocation4_spill] sm:$0xff] %v2774_v47  ;;  %v758_v52 = vpop.f32.mrb[85].mxu0 }
 0x193   : > { %v759_v54 = vadd.f32 %v758_v52, %v2602_v37  ;;  %v2777_v56 = vpop.f32.mrb[86].mxu0  ;;  %2227 = vmatprep.mubr.bf16.mxu1 %v966_v45 }
 0x194   : > { %3255 = vst [vmem:[#allocation5_spill] sm:$0xff] %v2777_v56  ;;  %v762_v58 = vpop.f32.mrb[87].mxu0 }
 0x195   : > { %v763_v61 = vadd.f32 %v762_v58, %v2602_v37  ;;  %v907_v3 = vmax.f32 %v759_v54, 0.0 }
 0x197   : > { %v908_v4 = vmax.f32 %v763_v61, 0.0 }
 0x199   : > { %v967_v11 = vpack.c.bf16 %v908_v4, %v907_v3  ;;  %v2780_v14 = vpop.f32.mrb[88].mxu0 }
 0x19a   : > { %3256 = vst [vmem:[#allocation6_spill] sm:$0xff] %v2780_v14  ;;  %v768_v15 = vpop.f32.mrb[89].mxu0 }
 0x19b   : > { %v769_v16 = vadd.f32 %v768_v15, %v2602_v37  ;;  %v2783_v19 = vpop.f32.mrb[90].mxu0  ;;  %2228 = vmatmul.mubr.bf16.gmra.mrb[36].mxu1 %v967_v11 }
 0x19c   : > { %3257 = vst [vmem:[#allocation7_spill] sm:$0xff] %v2783_v19  ;;  %v772_v24 = vpop.f32.mrb[91].mxu0 }
 0x19d   : > { %v773_v25 = vadd.f32 %v772_v24, %v2602_v37  ;;  %v909_v33 = vmax.f32 %v769_v16, 0.0 }
 0x19f   : > { %v910_v34 = vmax.f32 %v773_v25, 0.0 }
 0x1a1   : > { %v968_v2 = vpack.c.bf16 %v910_v34, %v909_v33  ;;  %v2786_v36 = vpop.f32.mrb[92].mxu0 }
 0x1a2   : > { %3258 = vst [vmem:[#allocation8_spill] sm:$0xff] %v2786_v36  ;;  %v778_v45 = vpop.f32.mrb[93].mxu0 }
 0x1a3   : > { %v779_v52 = vadd.f32 %v778_v45, %v2602_v37  ;;  %v2789_v54 = vpop.f32.mrb[94].mxu0  ;;  %2231 = vmatprep.mubr.bf16.mxu1 %v968_v2 }
 0x1a4   : > { %3259 = vst [vmem:[#allocation9_spill] sm:$0xff] %v2789_v54  ;;  %v782_v58 = vpop.f32.mrb[95].mxu0 }
 0x1a5   : > { %v783_v61 = vadd.f32 %v782_v58, %v2602_v37  ;;  %v911_v3 = vmax.f32 %v779_v52, 0.0 }
 0x1a7   : > { %v912_v4 = vmax.f32 %v783_v61, 0.0 }
 0x1a9   : > { %v969_v11 = vpack.c.bf16 %v912_v4, %v911_v3  ;;  %v2792_v15 = vpop.f32.mrb[96].mxu0 }
 0x1aa   : > { %3260 = vst [vmem:[#allocation10_spill] sm:$0xff] %v2792_v15  ;;  %v788_v24 = vpop.f32.mrb[97].mxu0 }
 0x1ab   : > { %v789_v16 = vadd.f32 %v788_v24, %v2602_v37  ;;  %v2795_v25 = vpop.f32.mrb[98].mxu0  ;;  %2232 = vmatmul.mubr.bf16.gmra.mrb[40].mxu1 %v969_v11 }
 0x1ac   : > { %3261 = vst [vmem:[#allocation11_spill] sm:$0xff] %v2795_v25  ;;  %v792_v33 = vpop.f32.mrb[99].mxu0 }
 0x1ad   : > { %v793_v34 = vadd.f32 %v792_v33, %v2602_v37  ;;  %v913_v45 = vmax.f32 %v789_v16, 0.0 }
 0x1af   : > { %v914_v19 = vmax.f32 %v793_v34, 0.0 }
 0x1b1   : > { %v970_v2 = vpack.c.bf16 %v914_v19, %v913_v45  ;;  %v2798_v54 = vpop.f32.mrb[100].mxu0 }
 0x1b2   : > { %3262 = vst [vmem:[#allocation12_spill] sm:$0xff] %v2798_v54  ;;  %v798_v58 = vpop.f32.mrb[101].mxu0 }
 0x1b3   : > { %v799_v52 = vadd.f32 %v798_v58, %v2602_v37  ;;  %v2801_v61 = vpop.f32.mrb[102].mxu0  ;;  %2235 = vmatprep.mubr.bf16.mxu1 %v970_v2 }
 0x1b4   : > { %3263 = vst [vmem:[#allocation13_spill] sm:$0xff] %v2801_v61  ;;  %v802_v3 = vpop.f32.mrb[103].mxu0 }
 0x1b5   : > { %v803_v4 = vadd.f32 %v802_v3, %v2602_v37  ;;  %v915_v24 = vmax.f32 %v799_v52, 0.0 }
 0x1b7   : > { %v916_v25 = vmax.f32 %v803_v4, 0.0 }
 0x1b9   : > { %v971_v11 = vpack.c.bf16 %v916_v25, %v915_v24  ;;  %v2804_v15 = vpop.f32.mrb[104].mxu0 }
 0x1ba   : > { %3264 = vst [vmem:[#allocation14_spill] sm:$0xff] %v2804_v15  ;;  %v808_v33 = vpop.f32.mrb[105].mxu0 }
 0x1bb   : > { %v809_v16 = vadd.f32 %v808_v33, %v2602_v37  ;;  %v2807_v19 = vpop.f32.mrb[106].mxu0  ;;  %2236 = vmatmul.mubr.bf16.gmra.mrb[44].mxu1 %v971_v11 }
 0x1bc   : > { %3265 = vst [vmem:[#allocation15_spill] sm:$0xff] %v2807_v19  ;;  %v812_v34 = vpop.f32.mrb[107].mxu0 }
 0x1bd   : > { %v813_v45 = vadd.f32 %v812_v34, %v2602_v37  ;;  %v917_v58 = vmax.f32 %v809_v16, 0.0 }
 0x1bf   : > { %v918_v61 = vmax.f32 %v813_v45, 0.0 }
 0x1c1   : > { %v972_v2 = vpack.c.bf16 %v918_v61, %v917_v58  ;;  %v2810_v54 = vpop.f32.mrb[108].mxu0 }
 0x1c2   : > { %3266 = vst [vmem:[#allocation16_spill] sm:$0xff] %v2810_v54  ;;  %v818_v3 = vpop.f32.mrb[109].mxu0 }
 0x1c3   : > { %v819_v52 = vadd.f32 %v818_v3, %v2602_v37  ;;  %v2813_v25 = vpop.f32.mrb[110].mxu0  ;;  %2239 = vmatprep.mubr.bf16.mxu1 %v972_v2 }
 0x1c4   : > { %3267 = vst [vmem:[#allocation17_spill] sm:$0xff] %v2813_v25  ;;  %v822_v4 = vpop.f32.mrb[111].mxu0 }
 0x1c5   : > { %v823_v24 = vadd.f32 %v822_v4, %v2602_v37  ;;  %v919_v33 = vmax.f32 %v819_v52, 0.0 }
 0x1c7   : > { %v920_v19 = vmax.f32 %v823_v24, 0.0 }
 0x1c9   : > { %v973_v11 = vpack.c.bf16 %v920_v19, %v919_v33  ;;  %v2816_v15 = vpop.f32.mrb[112].mxu0 }
 0x1ca   : > { %3268 = vst [vmem:[#allocation18_spill] sm:$0xff] %v2816_v15  ;;  %v828_v34 = vpop.f32.mrb[113].mxu0 }
 0x1cb   : > { %v829_v16 = vadd.f32 %v828_v34, %v2602_v37  ;;  %v2819_v61 = vpop.f32.mrb[114].mxu0  ;;  %2240 = vmatmul.mubr.bf16.gmra.mrb[48].mxu1 %v973_v11 }
 0x1cc   : > { %3269 = vst [vmem:[#allocation19_spill] sm:$0xff] %v2819_v61  ;;  %v832_v45 = vpop.f32.mrb[115].mxu0 }
 0x1cd   : > { %v833_v58 = vadd.f32 %v832_v45, %v2602_v37  ;;  %v921_v3 = vmax.f32 %v829_v16, 0.0 }
 0x1cf   : > { %v922_v25 = vmax.f32 %v833_v58, 0.0 }
 0x1d1   : > { %v974_v2 = vpack.c.bf16 %v922_v25, %v921_v3  ;;  %v2822_v54 = vpop.f32.mrb[116].mxu0  ;;  %v2836_v3 = vld [vmem:[%s3248_s4] ss:$0 sm:$0xff] }
 0x1d2   : > { %3270 = vst [vmem:[#allocation20_spill] sm:$0xff] %v2822_v54  ;;  %v838_v4 = vpop.f32.mrb[117].mxu0 }
 0x1d3   : > { %v839_v52 = vadd.f32 %v838_v4, %v2602_v37  ;;  %v2825_v19 = vpop.f32.mrb[118].mxu0  ;;  %2243 = vmatprep.mubr.bf16.mxu1 %v974_v2 }
 0x1d4   : > { %3271 = vst [vmem:[#allocation21_spill] sm:$0xff] %v2825_v19  ;;  %v842_v24 = vpop.f32.mrb[119].mxu0 }
 0x1d5   : > { %v843_v33 = vadd.f32 %v842_v24, %v2602_v37  ;;  %v923_v34 = vmax.f32 %v839_v52, 0.0 }
 0x1d7   : > { %v924_v61 = vmax.f32 %v843_v33, 0.0 }
 0x1d9   : > { %v975_v11 = vpack.c.bf16 %v924_v61, %v923_v34  ;;  %v2828_v15 = vpop.f32.mrb[120].mxu0 }
 0x1da   : > { %3272 = vst [vmem:[#allocation22_spill] sm:$0xff] %v2828_v15  ;;  %v848_v45 = vpop.f32.mrb[121].mxu0 }
 0x1db   : > { %v849_v16 = vadd.f32 %v848_v45, %v2602_v37  ;;  %v2831_v25 = vpop.f32.mrb[122].mxu0  ;;  %2244 = vmatmul.mubr.bf16.gmra.mrb[52].mxu1 %v975_v11 }
 0x1dc   : > { %3273 = vst [vmem:[#allocation23_spill] sm:$0xff] %v2831_v25  ;;  %v852_v58 = vpop.f32.mrb[123].mxu0 }
 0x1dd   : > { %v853_v2 = vadd.f32 %v852_v58, %v2602_v37  ;;  %v925_v52 = vmax.f32 %v849_v16, 0.0 }
 0x1de   : > { %v2193_v4 = vpop.f32.mrb[0].mxu1 }
 0x1df   : > { %v926_v24 = vmax.f32 %v853_v2, 0.0  ;;  %v1091_v61 = vadd.f32 %v2193_v4, %v2836_v3  ;;  %v1082_v33 = vpop.f32.mrb[1].mxu1 }
 0x1e0   : > { %v1083_v34 = vadd.f32 %v2836_v3, %v1082_v33  ;;  %v2194_v45 = vpop.f32.mrb[2].mxu1 }
 0x1e1   : > { %v976_v15 = vpack.c.bf16 %v926_v24, %v925_v52  ;;  %v1094_v11 = vadd.f32 %v2194_v45, %v2836_v3  ;;  %v2842_v25 = vpop.f32.mrb[124].mxu0  ;;  %v1085_v19 = vpop.f32.mrb[3].mxu1  ;;  %v1327_v36 = vmax.f32 %v1091_v61, 0.0 }
 0x1e2   : > { %3274 = vst [vmem:[#allocation24_spill] sm:$0xff] %v2842_v25  ;;  %v1086_v54 = vadd.f32 %v2836_v3, %v1085_v19  ;;  %v858_v14 = vpop.f32.mrb[125].mxu0  ;;  %v1325_v4 = vmax.f32 %v1083_v34, 0.0 }
 0x1e3   : > { %v1328_v58 = vmax.f32 %v1094_v11, 0.0  ;;  %v859_v16 = vadd.f32 %v858_v14, %v2602_v37  ;;  %v2846_v2 = vpop.f32.mrb[126].mxu0  ;;  %2247 = vmatprep.mubr.bf16.mxu1 %v976_v15 }
 0x1e4   : > { %3275 = vst [vmem:[#allocation25_spill] sm:$0xff] %v2846_v2  ;;  %v1326_v31 = vmax.f32 %v1086_v54, 0.0  ;;  %v862_v33 = vpop.f32.mrb[127].mxu0 }
 0x1e5   : > { %v1405_v56 = vpack.c.bf16 %v1328_v58, %v1327_v36  ;;  %v863_v52 = vadd.f32 %v862_v33, %v2602_v37  ;;  %v927_v45 = vmax.f32 %v859_v16, 0.0 }
 0x1e6   : > { %v1404_v24 = vpack.c.bf16 %v1326_v31, %v1325_v4 }
 0x1e7   : > { %v928_v25 = vmax.f32 %v863_v52, 0.0 }
 0x1e9   : > { %v977_v20 = vpack.c.bf16 %v928_v25, %v927_v45  ;;  %v2189_v47 = vpop.f32.mrb[128].mxu0 }
 0x1ea   : > { %v1075_v19 = vadd.f32 %v2189_v47, %v2836_v3  ;;  %v1066_v61 = vpop.f32.mrb[129].mxu0 }
 0x1eb   : > { %v1067_v11 = vadd.f32 %v2836_v3, %v1066_v61  ;;  %v2190_v14 = vpop.f32.mrb[130].mxu0  ;;  %2248 = vmatmul.mubr.bf16.gmra.mrb[56].mxu1 %v977_v20 }
 0x1ec   : > { %v1078_v15 = vadd.f32 %v2190_v14, %v2836_v3  ;;  %v1069_v34 = vpop.f32.mrb[131].mxu0  ;;  %v1323_v36 = vmax.f32 %v1075_v19, 0.0 }
 0x1ed   : > { %v1070_v54 = vadd.f32 %v2836_v3, %v1069_v34  ;;  %v1321_v31 = vmax.f32 %v1067_v11, 0.0 }
 0x1ee   : > { %v1324_v58 = vmax.f32 %v1078_v15, 0.0  ;;  %v2197_v37 = vpop.f32.mrb[4].mxu1 }
 0x1ef   : > { %v1322_v16 = vmax.f32 %v1070_v54, 0.0  ;;  %v1107_v25 = vadd.f32 %v2197_v37, %v2836_v3  ;;  %v1098_v4 = vpop.f32.mrb[5].mxu1 }
 0x1f0   : > { %v1403_v33 = vpack.c.bf16 %v1324_v58, %v1323_v36  ;;  %v1099_v47 = vadd.f32 %v2836_v3, %v1098_v4  ;;  %v2198_v52 = vpop.f32.mrb[6].mxu1 }
 0x1f1   : > { %v1402_v45 = vpack.c.bf16 %v1322_v16, %v1321_v31  ;;  %v1110_v20 = vadd.f32 %v2198_v52, %v2836_v3  ;;  %v1101_v61 = vpop.f32.mrb[7].mxu1  ;;  %v1331_v2 = vmax.f32 %v1107_v25, 0.0 }
 0x1f2   : > { %v1102_v14 = vadd.f32 %v2836_v3, %v1101_v61  ;;  %v1329_v19 = vmax.f32 %v1099_v47, 0.0 }
 0x1f3   : > { %v1332_v34 = vmax.f32 %v1110_v20, 0.0  ;;  %2267 = vmatprep.mubr.bf16.mxu1 %v1402_v45 }
 0x1f4   : > { %v1330_v15 = vmax.f32 %v1102_v14, 0.0  ;;  %2268 = vmatmul.mubr.bf16.vlgmr.msra.gmra.mrb[60].mxu1 %v1403_v33 }
 0x1f5   : > { %v1407_v11 = vpack.c.bf16 %v1332_v34, %v1331_v2  ;;  %2271 = vmatprep.mubr.bf16.mxu1 %v1404_v24 }
 0x1f6   : > { %v1406_v54 = vpack.c.bf16 %v1330_v15, %v1329_v19 }
 0x1fc   : > { %2272 = vmatmul.mubr.bf16.gmra.mrb[64].mxu1 %v1405_v56 }
 0x1fd   : > { %2275 = vmatprep.mubr.bf16.mxu1 %v1406_v54 }
 0x1fe   : > { %v2201_v36 = vpop.f32.mrb[8].mxu1 }
 0x1ff   : > { %v1123_v58 = vadd.f32 %v2201_v36, %v2836_v3  ;;  %v1114_v37 = vpop.f32.mrb[9].mxu1 }
 0x200   : > { %v1115_v31 = vadd.f32 %v2836_v3, %v1114_v37  ;;  %v2202_v16 = vpop.f32.mrb[10].mxu1 }
 0x201   : > { %v1126_v4 = vadd.f32 %v2202_v16, %v2836_v3  ;;  %v1117_v25 = vpop.f32.mrb[11].mxu1  ;;  %v1335_v47 = vmax.f32 %v1123_v58, 0.0 }
 0x202   : > { %v1118_v52 = vadd.f32 %v2836_v3, %v1117_v25  ;;  %v1333_v33 = vmax.f32 %v1115_v31, 0.0 }
 0x203   : > { %v1336_v45 = vmax.f32 %v1126_v4, 0.0 }
 0x204   : > { %v1334_v2 = vmax.f32 %v1118_v52, 0.0  ;;  %2276 = vmatmul.mubr.bf16.gmra.mrb[68].mxu1 %v1407_v11 }
 0x205   : > { %v1409_v24 = vpack.c.bf16 %v1336_v45, %v1335_v47 }
 0x206   : > { %v1408_v56 = vpack.c.bf16 %v1334_v2, %v1333_v33 }
 0x208   : > { %2279 = vmatprep.mubr.bf16.mxu1 %v1408_v56 }
 0x20c   : > { %2280 = vmatmul.mubr.bf16.gmra.mrb[72].mxu1 %v1409_v24 }
 0x20e   : > { %v2205_v20 = vpop.f32.mrb[12].mxu1 }
 0x20f   : > { %v1139_v61 = vadd.f32 %v2205_v20, %v2836_v3  ;;  %v1130_v14 = vpop.f32.mrb[13].mxu1 }
 0x210   : > { %v1131_v34 = vadd.f32 %v2836_v3, %v1130_v14  ;;  %v2206_v19 = vpop.f32.mrb[14].mxu1 }
 0x211   : > { %v1142_v15 = vadd.f32 %v2206_v19, %v2836_v3  ;;  %v1133_v54 = vpop.f32.mrb[15].mxu1  ;;  %v1339_v58 = vmax.f32 %v1139_v61, 0.0 }
 0x212   : > { %v1134_v36 = vadd.f32 %v2836_v3, %v1133_v54  ;;  %v1337_v31 = vmax.f32 %v1131_v34, 0.0 }
 0x213   : > { %v1340_v37 = vmax.f32 %v1142_v15, 0.0 }
 0x214   : > { %v1338_v11 = vmax.f32 %v1134_v36, 0.0 }
 0x215   : > { %v1411_v16 = vpack.c.bf16 %v1340_v37, %v1339_v58 }
 0x216   : > { %v1410_v4 = vpack.c.bf16 %v1338_v11, %v1337_v31 }
 0x218   : > { %2283 = vmatprep.mubr.bf16.mxu1 %v1410_v4 }
 0x219   : > { %2284 = vmatmul.mubr.bf16.gmra.mrb[76].mxu1 %v1411_v16 }
 0x21e   : > { %v2209_v25 = vpop.f32.mrb[16].mxu1 }
 0x21f   : > { %v1155_v52 = vadd.f32 %v2209_v25, %v2836_v3  ;;  %v1146_v47 = vpop.f32.mrb[17].mxu1 }
 0x220   : > { %v1147_v45 = vadd.f32 %v2836_v3, %v1146_v47  ;;  %v2210_v33 = vpop.f32.mrb[18].mxu1 }
 0x221   : > { %v1158_v2 = vadd.f32 %v2210_v33, %v2836_v3  ;;  %v1149_v24 = vpop.f32.mrb[19].mxu1  ;;  %v1343_v20 = vmax.f32 %v1155_v52, 0.0 }
 0x222   : > { %v1150_v56 = vadd.f32 %v2836_v3, %v1149_v24  ;;  %v1341_v14 = vmax.f32 %v1147_v45, 0.0 }
 0x223   : > { %v1344_v61 = vmax.f32 %v1158_v2, 0.0 }
 0x224   : > { %v1342_v34 = vmax.f32 %v1150_v56, 0.0 }
 0x225   : > { %v1413_v19 = vpack.c.bf16 %v1344_v61, %v1343_v20 }
 0x226   : > { %v1412_v15 = vpack.c.bf16 %v1342_v34, %v1341_v14 }
 0x228   : > { %2287 = vmatprep.mubr.bf16.mxu1 %v1412_v15 }
 0x229   : > { %2288 = vmatmul.mubr.bf16.gmra.mrb[80].mxu1 %v1413_v19 }
 0x22e   : > { %v2213_v54 = vpop.f32.mrb[20].mxu1 }
 0x22f   : > { %v1171_v36 = vadd.f32 %v2213_v54, %v2836_v3  ;;  %v1162_v58 = vpop.f32.mrb[21].mxu1 }
 0x230   : > { %v1163_v37 = vadd.f32 %v2836_v3, %v1162_v58  ;;  %v2214_v31 = vpop.f32.mrb[22].mxu1 }
 0x231   : > { %v1174_v11 = vadd.f32 %v2214_v31, %v2836_v3  ;;  %v1165_v16 = vpop.f32.mrb[23].mxu1  ;;  %v1347_v25 = vmax.f32 %v1171_v36, 0.0 }
 0x232   : > { %v1166_v4 = vadd.f32 %v2836_v3, %v1165_v16  ;;  %v1345_v47 = vmax.f32 %v1163_v37, 0.0 }
 0x233   : > { %v1348_v52 = vmax.f32 %v1174_v11, 0.0 }
 0x234   : > { %v1346_v45 = vmax.f32 %v1166_v4, 0.0 }
 0x235   : > { %v1415_v33 = vpack.c.bf16 %v1348_v52, %v1347_v25 }
 0x236   : > { %v1414_v2 = vpack.c.bf16 %v1346_v45, %v1345_v47 }
 0x238   : > { %2291 = vmatprep.mubr.bf16.mxu1 %v1414_v2 }
 0x239   : > { %2292 = vmatmul.mubr.bf16.gmra.mrb[84].mxu1 %v1415_v33 }
 0x23e   : > { %v2217_v24 = vpop.f32.mrb[24].mxu1 }
 0x23f   : > { %v1187_v56 = vadd.f32 %v2217_v24, %v2836_v3  ;;  %v1178_v20 = vpop.f32.mrb[25].mxu1 }
 0x240   : > { %v1179_v61 = vadd.f32 %v2836_v3, %v1178_v20  ;;  %v2218_v14 = vpop.f32.mrb[26].mxu1 }
 0x241   : > { %v1190_v34 = vadd.f32 %v2218_v14, %v2836_v3  ;;  %v1181_v19 = vpop.f32.mrb[27].mxu1  ;;  %v1351_v54 = vmax.f32 %v1187_v56, 0.0 }
 0x242   : > { %v1182_v15 = vadd.f32 %v2836_v3, %v1181_v19  ;;  %v1349_v58 = vmax.f32 %v1179_v61, 0.0 }
 0x243   : > { %v1352_v36 = vmax.f32 %v1190_v34, 0.0 }
 0x244   : > { %v1350_v37 = vmax.f32 %v1182_v15, 0.0 }
 0x245   : > { %v1417_v31 = vpack.c.bf16 %v1352_v36, %v1351_v54 }
 0x246   : > { %v1416_v11 = vpack.c.bf16 %v1350_v37, %v1349_v58 }
 0x248   : > { %2295 = vmatprep.mubr.bf16.mxu1 %v1416_v11 }
 0x249   : > { %2296 = vmatmul.mubr.bf16.gmra.mrb[88].mxu1 %v1417_v31 }
 0x24e   : > { %v2221_v16 = vpop.f32.mrb[28].mxu1 }
 0x24f   : > { %v1203_v4 = vadd.f32 %v2221_v16, %v2836_v3  ;;  %v1194_v25 = vpop.f32.mrb[29].mxu1 }
 0x250   : > { %v1195_v52 = vadd.f32 %v2836_v3, %v1194_v25  ;;  %v2222_v47 = vpop.f32.mrb[30].mxu1 }
 0x251   : > { %v1206_v45 = vadd.f32 %v2222_v47, %v2836_v3  ;;  %v1197_v33 = vpop.f32.mrb[31].mxu1  ;;  %v1355_v24 = vmax.f32 %v1203_v4, 0.0 }
 0x252   : > { %v1198_v2 = vadd.f32 %v2836_v3, %v1197_v33  ;;  %v1353_v20 = vmax.f32 %v1195_v52, 0.0 }
 0x253   : > { %v1356_v56 = vmax.f32 %v1206_v45, 0.0 }
 0x254   : > { %v1354_v61 = vmax.f32 %v1198_v2, 0.0 }
 0x255   : > { %v1419_v14 = vpack.c.bf16 %v1356_v56, %v1355_v24 }
 0x256   : > { %v1418_v34 = vpack.c.bf16 %v1354_v61, %v1353_v20 }
 0x258   : > { %2299 = vmatprep.mubr.bf16.mxu1 %v1418_v34 }
 0x259   : > { %2300 = vmatmul.mubr.bf16.gmra.mrb[92].mxu1 %v1419_v14 }
 0x25e   : > { %v2225_v19 = vpop.f32.mrb[32].mxu1 }
 0x25f   : > { %v1219_v15 = vadd.f32 %v2225_v19, %v2836_v3  ;;  %v1210_v54 = vpop.f32.mrb[33].mxu1 }
 0x260   : > { %v1211_v36 = vadd.f32 %v2836_v3, %v1210_v54  ;;  %v2226_v58 = vpop.f32.mrb[34].mxu1 }
 0x261   : > { %v1222_v37 = vadd.f32 %v2226_v58, %v2836_v3  ;;  %v1213_v31 = vpop.f32.mrb[35].mxu1  ;;  %v1359_v16 = vmax.f32 %v1219_v15, 0.0 }
 0x262   : > { %v1214_v11 = vadd.f32 %v2836_v3, %v1213_v31  ;;  %v1357_v25 = vmax.f32 %v1211_v36, 0.0 }
 0x263   : > { %v1360_v4 = vmax.f32 %v1222_v37, 0.0 }
 0x264   : > { %v1358_v52 = vmax.f32 %v1214_v11, 0.0 }
 0x265   : > { %v1421_v47 = vpack.c.bf16 %v1360_v4, %v1359_v16 }
 0x266   : > { %v1420_v45 = vpack.c.bf16 %v1358_v52, %v1357_v25 }
 0x268   : > { %2303 = vmatprep.mubr.bf16.mxu1 %v1420_v45 }
 0x269   : > { %2304 = vmatmul.mubr.bf16.gmra.mrb[96].mxu1 %v1421_v47 }
 0x26e   : > { %v2229_v33 = vpop.f32.mrb[36].mxu1 }
 0x26f   : > { %v1235_v2 = vadd.f32 %v2229_v33, %v2836_v3  ;;  %v1226_v24 = vpop.f32.mrb[37].mxu1 }
 0x270   : > { %v1227_v56 = vadd.f32 %v2836_v3, %v1226_v24  ;;  %v2230_v20 = vpop.f32.mrb[38].mxu1 }
 0x271   : > { %v1238_v61 = vadd.f32 %v2230_v20, %v2836_v3  ;;  %v1229_v14 = vpop.f32.mrb[39].mxu1  ;;  %v1363_v19 = vmax.f32 %v1235_v2, 0.0 }
 0x272   : > { %v1230_v34 = vadd.f32 %v2836_v3, %v1229_v14  ;;  %v1361_v54 = vmax.f32 %v1227_v56, 0.0 }
 0x273   : > { %v1364_v15 = vmax.f32 %v1238_v61, 0.0 }
 0x274   : > { %v1362_v36 = vmax.f32 %v1230_v34, 0.0 }
 0x275   : > { %v1423_v58 = vpack.c.bf16 %v1364_v15, %v1363_v19 }
 0x276   : > { %v1422_v37 = vpack.c.bf16 %v1362_v36, %v1361_v54 }
 0x278   : > { %2307 = vmatprep.mubr.bf16.mxu1 %v1422_v37 }
 0x279   : > { %2308 = vmatmul.mubr.bf16.gmra.mrb[100].mxu1 %v1423_v58 }
 0x27e   : > { %v2233_v31 = vpop.f32.mrb[40].mxu1 }
 0x27f   : > { %v1251_v11 = vadd.f32 %v2233_v31, %v2836_v3  ;;  %v1242_v16 = vpop.f32.mrb[41].mxu1 }
 0x280   : > { %v1243_v4 = vadd.f32 %v2836_v3, %v1242_v16  ;;  %v2234_v25 = vpop.f32.mrb[42].mxu1 }
 0x281   : > { %v1254_v52 = vadd.f32 %v2234_v25, %v2836_v3  ;;  %v1245_v47 = vpop.f32.mrb[43].mxu1  ;;  %v1367_v33 = vmax.f32 %v1251_v11, 0.0 }
 0x282   : > { %v1246_v45 = vadd.f32 %v2836_v3, %v1245_v47  ;;  %v1365_v24 = vmax.f32 %v1243_v4, 0.0 }
 0x283   : > { %v1368_v2 = vmax.f32 %v1254_v52, 0.0 }
 0x284   : > { %v1366_v56 = vmax.f32 %v1246_v45, 0.0 }
 0x285   : > { %v1425_v20 = vpack.c.bf16 %v1368_v2, %v1367_v33 }
 0x286   : > { %v1424_v61 = vpack.c.bf16 %v1366_v56, %v1365_v24 }
 0x288   : > { %2311 = vmatprep.mubr.bf16.mxu1 %v1424_v61 }
 0x289   : > { %2312 = vmatmul.mubr.bf16.gmra.mrb[104].mxu1 %v1425_v20 }
 0x28e   : > { %v2237_v14 = vpop.f32.mrb[44].mxu1 }
 0x28f   : > { %v1267_v34 = vadd.f32 %v2237_v14, %v2836_v3  ;;  %v1258_v19 = vpop.f32.mrb[45].mxu1 }
 0x290   : > { %v1259_v15 = vadd.f32 %v2836_v3, %v1258_v19  ;;  %v2238_v54 = vpop.f32.mrb[46].mxu1 }
 0x291   : > { %v1270_v36 = vadd.f32 %v2238_v54, %v2836_v3  ;;  %v1261_v58 = vpop.f32.mrb[47].mxu1  ;;  %v1371_v31 = vmax.f32 %v1267_v34, 0.0 }
 0x292   : > { %v1262_v37 = vadd.f32 %v2836_v3, %v1261_v58  ;;  %v1369_v16 = vmax.f32 %v1259_v15, 0.0 }
 0x293   : > { %v1372_v11 = vmax.f32 %v1270_v36, 0.0 }
 0x294   : > { %v1370_v4 = vmax.f32 %v1262_v37, 0.0 }
 0x295   : > { %v1427_v25 = vpack.c.bf16 %v1372_v11, %v1371_v31 }
 0x296   : > { %v1426_v52 = vpack.c.bf16 %v1370_v4, %v1369_v16 }
 0x298   : > { %2315 = vmatprep.mubr.bf16.mxu1 %v1426_v52 }
 0x299   : > { %2316 = vmatmul.mubr.bf16.gmra.mrb[108].mxu1 %v1427_v25 }
 0x29e   : > { %v2241_v47 = vpop.f32.mrb[48].mxu1 }
 0x29f   : > { %v1283_v45 = vadd.f32 %v2241_v47, %v2836_v3  ;;  %v1274_v33 = vpop.f32.mrb[49].mxu1 }
 0x2a0   : > { %v1275_v2 = vadd.f32 %v2836_v3, %v1274_v33  ;;  %v2242_v24 = vpop.f32.mrb[50].mxu1 }
 0x2a1   : > { %v1286_v56 = vadd.f32 %v2242_v24, %v2836_v3  ;;  %v1277_v20 = vpop.f32.mrb[51].mxu1  ;;  %v1375_v14 = vmax.f32 %v1283_v45, 0.0 }
 0x2a2   : > { %v1278_v61 = vadd.f32 %v2836_v3, %v1277_v20  ;;  %v1373_v19 = vmax.f32 %v1275_v2, 0.0 }
 0x2a3   : > { %v1376_v34 = vmax.f32 %v1286_v56, 0.0 }
 0x2a4   : > { %v1374_v15 = vmax.f32 %v1278_v61, 0.0 }
 0x2a5   : > { %v1429_v54 = vpack.c.bf16 %v1376_v34, %v1375_v14 }
 0x2a6   : > { %v1428_v36 = vpack.c.bf16 %v1374_v15, %v1373_v19 }
 0x2a8   : > { %2319 = vmatprep.mubr.bf16.mxu1 %v1428_v36 }
 0x2a9   : > { %2320 = vmatmul.mubr.bf16.gmra.mrb[112].mxu1 %v1429_v54 }
 0x2ae   : > { %v2245_v58 = vpop.f32.mrb[52].mxu1 }
 0x2af   : > { %v1299_v37 = vadd.f32 %v2245_v58, %v2836_v3  ;;  %v1290_v31 = vpop.f32.mrb[53].mxu1 }
 0x2b0   : > { %v1291_v11 = vadd.f32 %v2836_v3, %v1290_v31  ;;  %v2246_v16 = vpop.f32.mrb[54].mxu1 }
 0x2b1   : > { %v1302_v4 = vadd.f32 %v2246_v16, %v2836_v3  ;;  %v1293_v25 = vpop.f32.mrb[55].mxu1  ;;  %v1379_v47 = vmax.f32 %v1299_v37, 0.0 }
 0x2b2   : > { %v1294_v52 = vadd.f32 %v2836_v3, %v1293_v25  ;;  %v1377_v33 = vmax.f32 %v1291_v11, 0.0 }
 0x2b3   : > { %v1380_v45 = vmax.f32 %v1302_v4, 0.0  ;;  %v2912_v4 = vld [vmem:[%s3250_s6] ss:$0 sm:$0xff] }
 0x2b4   : > { %v1378_v2 = vmax.f32 %v1294_v52, 0.0 }
 0x2b5   : > { %v1431_v24 = vpack.c.bf16 %v1380_v45, %v1379_v47  ;;  %v557_v47 = vadd.f32 %v2617_v53, %v2525_v48  ;;  %v551_v53 = vadd.f32 %v2610_v46, %v2525_v48 }
 0x2b6   : > { %v1430_v56 = vpack.c.bf16 %v1378_v2, %v1377_v33 }
 0x2b8   : > { %2323 = vmatprep.mubr.bf16.mxu1 %v1430_v56  ;;  %v561_v56 = vadd.f32 %v2620_v57, %v2525_v48 }
 0x2b9   : > { %2324 = vmatmul.mubr.bf16.gmra.mrb[116].mxu1 %v1431_v24 }
 0x2be   : > { %v2249_v20 = vpop.f32.mrb[56].mxu1 }
 0x2bf   : > { %v1315_v61 = vadd.f32 %v2249_v20, %v2836_v3  ;;  %v1306_v14 = vpop.f32.mrb[57].mxu1 }
 0x2c0   : > { %v1307_v34 = vadd.f32 %v2836_v3, %v1306_v14  ;;  %v2250_v19 = vpop.f32.mrb[58].mxu1 }
 0x2c1   : > { %v1318_v15 = vadd.f32 %v2250_v19, %v2836_v3  ;;  %v1309_v54 = vpop.f32.mrb[59].mxu1  ;;  %v1383_v58 = vmax.f32 %v1315_v61, 0.0 }
 0x2c2   : > { %v1310_v36 = vadd.f32 %v2836_v3, %v1309_v54  ;;  %v1381_v31 = vmax.f32 %v1307_v34, 0.0  ;;  %v547_v3 = vadd.f32 %v2607_v40, %v2525_v48 }
 0x2c3   : > { %v1384_v37 = vmax.f32 %v1318_v15, 0.0 }
 0x2c4   : > { %v1382_v11 = vmax.f32 %v1310_v36, 0.0 }
 0x2c5   : > { %v1433_v16 = vpack.c.bf16 %v1384_v37, %v1383_v58  ;;  %v577_v37 = vadd.f32 %v2637_v13, %v2525_v48 }
 0x2c6   : > { %v1432_v25 = vpack.c.bf16 %v1382_v11, %v1381_v31 }
 0x2c7   : > { %v2269_v52 = vpop.f32.mrb[60].mxu1 }
 0x2c8   : > { %v1531_v45 = vadd.f32 %v2269_v52, %v2912_v4  ;;  %v1522_v33 = vpop.f32.mrb[61].mxu1  ;;  %2327 = vmatprep.mubr.bf16.mxu1 %v1432_v25 }
 0x2c9   : > { %v1523_v2 = vadd.f32 %v2912_v4, %v1522_v33  ;;  %v2270_v24 = vpop.f32.mrb[62].mxu1  ;;  %2328 = vmatmul.mubr.bf16.gmra.mrb[120].mxu1 %v1433_v16  ;;  %v567_v16 = vadd.f32 %v2627_v1, %v2525_v48 }
 0x2ca   : > { %v1779_v20 = vadd.f32 %v1531_v45, %v557_v47  ;;  %v1534_v61 = vadd.f32 %v2270_v24, %v2912_v4  ;;  %v1525_v14 = vpop.f32.mrb[63].mxu1  ;;  %v581_v47 = vadd.f32 %v2640_v18, %v2525_v48 }
 0x2cb   : > { %v1777_v40 = vadd.f32 %v1523_v2, %v547_v3  ;;  %v1526_v57 = vadd.f32 %v2912_v4, %v1525_v14  ;;  %v571_v3 = vadd.f32 %v2630_v6, %v2525_v48 }
 0x2cc   : > { %v1843_v34 = vmax.f32 %v1779_v20, 0.0  ;;  %v1780_v19 = vadd.f32 %v1534_v61, %v561_v56 }
 0x2cd   : > { %v1841_v15 = vmax.f32 %v1777_v40, 0.0  ;;  %v1778_v54 = vadd.f32 %v1526_v57, %v551_v53  ;;  %v597_v40 = vadd.f32 %v2654_v35, %v2525_v48 }
 0x2ce   : > { %1908 = vst.msk [vmem:[%s2930_s15 + $0x10] sm:$0xff] %vm1905_vm1, %v1843_v34  ;;  %v1844_v46 = vmax.f32 %v1780_v19, 0.0  ;;  %v587_v34 = vadd.f32 %v2647_v26, %v2525_v48 }
 0x2cf   : > { %1906 = vst.msk [vmem:[%s2930_s15] sm:$0xff] %vm1905_vm1, %v1841_v15  ;;  %v1842_v36 = vmax.f32 %v1778_v54, 0.0  ;;  %v2273_v58 = vpop.f32.mrb[64].mxu1  ;;  %v601_v54 = vadd.f32 %v2657_v39, %v2525_v48 }
 0x2d0   : > { %1909 = vst.msk [vmem:[%s2930_s15 + $0x18] sm:$0xff] %vm1905_vm1, %v1844_v46  ;;  %v1547_v31 = vadd.f32 %v2273_v58, %v2912_v4  ;;  %v1538_v11 = vpop.f32.mrb[65].mxu1  ;;  %v591_v58 = vadd.f32 %v2650_v30, %v2525_v48 }
 0x2d1   : > { %1907 = vst.msk [vmem:[%s2930_s15 + $0x8] sm:$0xff] %vm1905_vm1, %v1842_v36  ;;  %v1539_v25 = vadd.f32 %v2912_v4, %v1538_v11  ;;  %v2274_v52 = vpop.f32.mrb[66].mxu1 }
 0x2d2   : > { %v1783_v45 = vadd.f32 %v1547_v31, %v577_v37  ;;  %v1550_v13 = vadd.f32 %v2274_v52, %v2912_v4  ;;  %v1541_v33 = vpop.f32.mrb[67].mxu1 }
 0x2d3   : > { %v1781_v2 = vadd.f32 %v1539_v25, %v567_v16  ;;  %v1542_v1 = vadd.f32 %v2912_v4, %v1541_v33  ;;  %v607_v33 = vadd.f32 %v2660_v44, %v2525_v48 }
 0x2d4   : > { %v1847_v24 = vmax.f32 %v1783_v45, 0.0  ;;  %v1784_v56 = vadd.f32 %v1550_v13, %v581_v47  ;;  %v617_v45 = vadd.f32 %v2666_v59, %v2525_v48 }
 0x2d5   : > { %v1845_v20 = vmax.f32 %v1781_v2, 0.0  ;;  %v1782_v61 = vadd.f32 %v1542_v1, %v571_v3  ;;  %v621_v1 = vadd.f32 %v2669_v62, %v2525_v48 }
 0x2d6   : > { %1912 = vst.msk [vmem:[%s2930_s15 + $0x30] sm:$0xff] %vm1905_vm1, %v1847_v24  ;;  %v1848_v14 = vmax.f32 %v1784_v56, 0.0 }
 0x2d7   : > { %1910 = vst.msk [vmem:[%s2930_s15 + $0x20] sm:$0xff] %vm1905_vm1, %v1845_v20  ;;  %v1846_v18 = vmax.f32 %v1782_v61, 0.0  ;;  %v2277_v53 = vpop.f32.mrb[68].mxu1  ;;  %v611_v20 = vadd.f32 %v2663_v51, %v2525_v48  ;;  %v637_v51 = vadd.f32 %v2678_v17, %v2525_v48 }
 0x2d8   : > { %1913 = vst.msk [vmem:[%s2930_s15 + $0x38] sm:$0xff] %vm1905_vm1, %v1848_v14  ;;  %v1563_v6 = vadd.f32 %v2277_v53, %v2912_v4  ;;  %v1554_v57 = vpop.f32.mrb[69].mxu1 }
 0x2d9   : > { %1911 = vst.msk [vmem:[%s2930_s15 + $0x28] sm:$0xff] %vm1905_vm1, %v1846_v18  ;;  %v1555_v19 = vadd.f32 %v2912_v4, %v1554_v57  ;;  %v2278_v15 = vpop.f32.mrb[70].mxu1 }
 0x2da   : > { %v1787_v46 = vadd.f32 %v1563_v6, %v597_v40  ;;  %v1566_v35 = vadd.f32 %v2278_v15, %v2912_v4  ;;  %v1557_v36 = vpop.f32.mrb[71].mxu1  ;;  %v627_v15 = vadd.f32 %v2672_v7, %v2525_v48 }
 0x2db   : > { %v1785_v37 = vadd.f32 %v1555_v19, %v587_v34  ;;  %v1558_v26 = vadd.f32 %v2912_v4, %v1557_v36 }
 0x2dc   : > { %v1851_v31 = vmax.f32 %v1787_v46, 0.0  ;;  %v1788_v11 = vadd.f32 %v1566_v35, %v601_v54  ;;  %v641_v35 = vadd.f32 %v2681_v21, %v2525_v48 }
 0x2dd   : > { %v1849_v16 = vmax.f32 %v1785_v37, 0.0  ;;  %v1786_v25 = vadd.f32 %v1558_v26, %v591_v58  ;;  %v631_v37 = vadd.f32 %v2675_v10, %v2525_v48  ;;  %v657_v10 = vadd.f32 %v2690_v41, %v2525_v48 }
 0x2de   : > { %1916 = vst.msk [vmem:[%s2930_s15 + $0x50] sm:$0xff] %vm1905_vm1, %v1851_v31  ;;  %v1852_v52 = vmax.f32 %v1788_v11, 0.0 }
 0x2df   : > { %1914 = vst.msk [vmem:[%s2930_s15 + $0x40] sm:$0xff] %vm1905_vm1, %v1849_v16  ;;  %v1850_v39 = vmax.f32 %v1786_v25, 0.0  ;;  %v2281_v47 = vpop.f32.mrb[72].mxu1 }
 0x2e0   : > { %1917 = vst.msk [vmem:[%s2930_s15 + $0x58] sm:$0xff] %vm1905_vm1, %v1852_v52  ;;  %v1579_v30 = vadd.f32 %v2281_v47, %v2912_v4  ;;  %v1570_v13 = vpop.f32.mrb[73].mxu1 }
 0x2e1   : > { %1915 = vst.msk [vmem:[%s2930_s15 + $0x48] sm:$0xff] %vm1905_vm1, %v1850_v39  ;;  %v1571_v3 = vadd.f32 %v2912_v4, %v1570_v13  ;;  %v2282_v2 = vpop.f32.mrb[74].mxu1 }
 0x2e2   : > { %v1791_v59 = vadd.f32 %v1579_v30, %v617_v45  ;;  %v1582_v24 = vadd.f32 %v2282_v2, %v2912_v4  ;;  %v1573_v56 = vpop.f32.mrb[75].mxu1  ;;  %v647_v30 = vadd.f32 %v2684_v28, %v2525_v48 }
 0x2e3   : > { %v1789_v61 = vadd.f32 %v1571_v3, %v607_v33  ;;  %v1574_v44 = vadd.f32 %v2912_v4, %v1573_v56  ;;  %v661_v3 = vadd.f32 %v2693_v43, %v2525_v48 }
 0x2e4   : > { %v1855_v14 = vmax.f32 %v1791_v59, 0.0  ;;  %v1792_v18 = vadd.f32 %v1582_v24, %v621_v1  ;;  %v651_v59 = vadd.f32 %v2687_v32, %v2525_v48  ;;  %v677_v32 = vadd.f32 %v2702_v5, %v2525_v48 }
 0x2e5   : > { %v1853_v53 = vmax.f32 %v1789_v61, 0.0  ;;  %v1790_v40 = vadd.f32 %v1574_v44, %v611_v20 }
 0x2e6   : > { %1920 = vst.msk [vmem:[%s2930_s15 + $0x70] sm:$0xff] %vm1905_vm1, %v1855_v14  ;;  %v1856_v6 = vmax.f32 %v1792_v18, 0.0 }
 0x2e7   : > { %1918 = vst.msk [vmem:[%s2930_s15 + $0x60] sm:$0xff] %vm1905_vm1, %v1853_v53  ;;  %v1854_v62 = vmax.f32 %v1790_v40, 0.0 }
 0x2e8   : > { %1921 = vst.msk [vmem:[%s2930_s15 + $0x78] sm:$0xff] %vm1905_vm1, %v1856_v6  ;;  %v667_v6 = vadd.f32 %v2696_v55, %v2525_v48 }
 0x2e9   : > { %1919 = vst.msk [vmem:[%s2930_s15 + $0x68] sm:$0xff] %vm1905_vm1, %v1854_v62 }
 0x2ec   : > { %v2285_v57 = vpop.f32.mrb[76].mxu1 }
 0x2ed   : > { %v1595_v34 = vadd.f32 %v2285_v57, %v2912_v4  ;;  %v1586_v19 = vpop.f32.mrb[77].mxu1 }
 0x2ee   : > { %v1587_v54 = vadd.f32 %v2912_v4, %v1586_v19  ;;  %v2286_v46 = vpop.f32.mrb[78].mxu1 }
 0x2ef   : > { %v1795_v36 = vadd.f32 %v1595_v34, %v637_v51  ;;  %v1598_v58 = vadd.f32 %v2286_v46, %v2912_v4  ;;  %v1589_v17 = vpop.f32.mrb[79].mxu1  ;;  %v681_v51 = vadd.f32 %v2708_v12, %v2525_v48 }
 0x2f0   : > { %v1793_v26 = vadd.f32 %v1587_v54, %v627_v15  ;;  %v1590_v31 = vadd.f32 %v2912_v4, %v1589_v17  ;;  %v671_v15 = vadd.f32 %v2699_v60, %v2525_v48  ;;  %v697_v60 = vadd.f32 %v2726_v42, %v2525_v48 }
 0x2f1   : > { %v1859_v7 = vmax.f32 %v1795_v36, 0.0  ;;  %v1796_v11 = vadd.f32 %v1598_v58, %v641_v35 }
 0x2f2   : > { %v1857_v16 = vmax.f32 %v1793_v26, 0.0  ;;  %v1794_v25 = vadd.f32 %v1590_v31, %v631_v37 }
 0x2f3   : > { %1924 = vst.msk [vmem:[%s2930_s15 + $0x90] sm:$0xff] %vm1905_vm1, %v1859_v7  ;;  %v1860_v52 = vmax.f32 %v1796_v11, 0.0  ;;  %v687_v7 = vadd.f32 %v2714_v23, %v2525_v48 }
 0x2f4   : > { %1922 = vst.msk [vmem:[%s2930_s15 + $0x80] sm:$0xff] %vm1905_vm1, %v1857_v16  ;;  %v1858_v21 = vmax.f32 %v1794_v25, 0.0  ;;  %v701_v25 = vadd.f32 %v2732_v50, %v2525_v48 }
 0x2f5   : > { %1925 = vst.msk [vmem:[%s2930_s15 + $0x98] sm:$0xff] %vm1905_vm1, %v1860_v52 }
 0x2f6   : > { %1923 = vst.msk [vmem:[%s2930_s15 + $0x88] sm:$0xff] %vm1905_vm1, %v1858_v21 }
 0x2fc   : > { %v2289_v39 = vpop.f32.mrb[80].mxu1 }
 0x2fd   : > { %v1611_v47 = vadd.f32 %v2289_v39, %v2912_v4  ;;  %v1602_v45 = vpop.f32.mrb[81].mxu1  ;;  %v691_v39 = vadd.f32 %v2720_v29, %v2525_v48  ;;  %v717_v29 = vadd.f32 %v2750_v22, %v2525_v48 }
 0x2fe   : > { %v1603_v13 = vadd.f32 %v2912_v4, %v1602_v45  ;;  %v2290_v33 = vpop.f32.mrb[82].mxu1 }
 0x2ff   : > { %v1799_v2 = vadd.f32 %v1611_v47, %v657_v10  ;;  %v1614_v1 = vadd.f32 %v2290_v33, %v2912_v4  ;;  %v1605_v41 = vpop.f32.mrb[83].mxu1 }
 0x300   : > { %v1797_v24 = vadd.f32 %v1603_v13, %v647_v30  ;;  %v1606_v56 = vadd.f32 %v2912_v4, %v1605_v41  ;;  %v707_v41 = vadd.f32 %v2738_v0, %v2525_v48 }
 0x301   : > { %v1863_v28 = vmax.f32 %v1799_v2, 0.0  ;;  %v1800_v20 = vadd.f32 %v1614_v1, %v661_v3 }
 0x302   : > { %v1861_v61 = vmax.f32 %v1797_v24, 0.0  ;;  %v1798_v44 = vadd.f32 %v1606_v56, %v651_v59  ;;  %v721_v56 = vadd.f32 %v2753_v27, %v2525_v48 }
 0x303   : > { %1928 = vst.msk [vmem:[%s2930_s15 + $0xb0] sm:$0xff] %vm1905_vm1, %v1863_v28  ;;  %v1864_v14 = vmax.f32 %v1800_v20, 0.0 }
 0x304   : > { %1926 = vst.msk [vmem:[%s2930_s15 + $0xa0] sm:$0xff] %vm1905_vm1, %v1861_v61  ;;  %v1862_v43 = vmax.f32 %v1798_v44, 0.0  ;;  %v711_v61 = vadd.f32 %v2744_v9, %v2525_v48  ;;  %v737_v9 = vadd.f32 %v2762_v63, %v2525_v48 }
 0x305   : > { %1929 = vst.msk [vmem:[%s2930_s15 + $0xb8] sm:$0xff] %vm1905_vm1, %v1864_v14 }
 0x306   : > { %1927 = vst.msk [vmem:[%s2930_s15 + $0xa8] sm:$0xff] %vm1905_vm1, %v1862_v43 }
 0x30c   : > { %v2293_v18 = vpop.f32.mrb[84].mxu1 }
 0x30d   : > { %v1627_v53 = vadd.f32 %v2293_v18, %v2912_v4  ;;  %v1618_v40 = vpop.f32.mrb[85].mxu1 }
 0x30e   : > { %v1619_v62 = vadd.f32 %v2912_v4, %v1618_v40  ;;  %v2294_v57 = vpop.f32.mrb[86].mxu1 }
 0x30f   : > { %v1803_v34 = vadd.f32 %v1627_v53, %v677_v32  ;;  %v1630_v19 = vadd.f32 %v2294_v57, %v2912_v4  ;;  %v1621_v5 = vpop.f32.mrb[87].mxu1  ;;  %v727_v57 = vadd.f32 %v2756_v38, %v2525_v48 }
 0x310   : > { %v1801_v54 = vadd.f32 %v1619_v62, %v667_v6  ;;  %v1622_v46 = vadd.f32 %v2912_v4, %v1621_v5 }
 0x311   : > { %v1867_v55 = vmax.f32 %v1803_v34, 0.0  ;;  %v1804_v35 = vadd.f32 %v1630_v19, %v681_v51  ;;  %v741_v19 = vadd.f32 %v2765_v8, %v2525_v48 }
 0x312   : > { %v1865_v36 = vmax.f32 %v1801_v54, 0.0  ;;  %v1802_v58 = vadd.f32 %v1622_v46, %v671_v15  ;;  %v731_v54 = vadd.f32 %v2759_v49, %v2525_v48  ;;  %v3276_v49 = vld [vmem:[#allocation4_spill] sm:$0xff] }
 0x313   : > { %1932 = vst.msk [vmem:[%s2930_s15 + $0xd0] sm:$0xff] %vm1905_vm1, %v1867_v55  ;;  %v1868_v17 = vmax.f32 %v1804_v35, 0.0 }
 0x314   : > { %1930 = vst.msk [vmem:[%s2930_s15 + $0xc0] sm:$0xff] %vm1905_vm1, %v1865_v36  ;;  %v1866_v12 = vmax.f32 %v1802_v58, 0.0 }
 0x315   : > { %1933 = vst.msk [vmem:[%s2930_s15 + $0xd8] sm:$0xff] %vm1905_vm1, %v1868_v17 }
 0x316   : > { %1931 = vst.msk [vmem:[%s2930_s15 + $0xc8] sm:$0xff] %vm1905_vm1, %v1866_v12 }
 0x31c   : > { %v2297_v37 = vpop.f32.mrb[88].mxu1 }
 0x31d   : > { %v1643_v26 = vadd.f32 %v2297_v37, %v2912_v4  ;;  %v1634_v31 = vpop.f32.mrb[89].mxu1  ;;  %v757_v37 = vadd.f32 %v3276_v49, %v2525_v48 }
 0x31e   : > { %v1635_v11 = vadd.f32 %v2912_v4, %v1634_v31  ;;  %v2298_v16 = vpop.f32.mrb[90].mxu1  ;;  %v3277_v31 = vld [vmem:[#allocation2_spill] sm:$0xff] }
 0x31f   : > { %v1807_v52 = vadd.f32 %v1643_v26, %v697_v60  ;;  %v1646_v21 = vadd.f32 %v2298_v16, %v2912_v4  ;;  %v1637_v42 = vpop.f32.mrb[91].mxu1 }
 0x320   : > { %v1805_v10 = vadd.f32 %v1635_v11, %v687_v7  ;;  %v1638_v47 = vadd.f32 %v2912_v4, %v1637_v42  ;;  %v747_v7 = vadd.f32 %v3277_v31, %v2525_v48 }
 0x321   : > { %v1871_v23 = vmax.f32 %v1807_v52, 0.0  ;;  %v1808_v45 = vadd.f32 %v1646_v21, %v701_v25  ;;  %v3278_v25 = vld [vmem:[#allocation5_spill] sm:$0xff] }
 0x322   : > { %v1869_v30 = vmax.f32 %v1805_v10, 0.0  ;;  %v1806_v13 = vadd.f32 %v1638_v47, %v691_v39  ;;  %v761_v52 = vadd.f32 %v3278_v25, %v2525_v48  ;;  %v3279_v10 = vld [vmem:[#allocation3_spill] sm:$0xff] }
 0x323   : > { %1936 = vst.msk [vmem:[%s2930_s15 + $0xf0] sm:$0xff] %vm1905_vm1, %v1871_v23  ;;  %v1872_v33 = vmax.f32 %v1808_v45, 0.0  ;;  %v751_v47 = vadd.f32 %v3279_v10, %v2525_v48 }
 0x324   : > { %1934 = vst.msk [vmem:[%s2930_s15 + $0xe0] sm:$0xff] %vm1905_vm1, %v1869_v30  ;;  %v1870_v50 = vmax.f32 %v1806_v13, 0.0 }
 0x325   : > { %1937 = vst.msk [vmem:[%s2930_s15 + $0xf8] sm:$0xff] %vm1905_vm1, %v1872_v33 }
 0x326   : > { %1935 = vst.msk [vmem:[%s2930_s15 + $0xe8] sm:$0xff] %vm1905_vm1, %v1870_v50 }
 0x32c   : > { %v2301_v3 = vpop.f32.mrb[92].mxu1 }
 0x32d   : > { %v1659_v2 = vadd.f32 %v2301_v3, %v2912_v4  ;;  %v1650_v1 = vpop.f32.mrb[93].mxu1 }
 0x32e   : > { %v1651_v59 = vadd.f32 %v2912_v4, %v1650_v1  ;;  %v2302_v24 = vpop.f32.mrb[94].mxu1  ;;  %v3280_v1 = vld [vmem:[#allocation8_spill] sm:$0xff] }
 0x32f   : > { %v1811_v28 = vadd.f32 %v1659_v2, %v717_v29  ;;  %v1662_v20 = vadd.f32 %v2302_v24, %v2912_v4  ;;  %v1653_v22 = vpop.f32.mrb[95].mxu1 }
 0x330   : > { %v1809_v44 = vadd.f32 %v1651_v59, %v707_v41  ;;  %v1654_v14 = vadd.f32 %v2912_v4, %v1653_v22  ;;  %v777_v41 = vadd.f32 %v3280_v1, %v2525_v48 }
 0x331   : > { %v1875_v0 = vmax.f32 %v1811_v28, 0.0  ;;  %v1812_v43 = vadd.f32 %v1662_v20, %v721_v56  ;;  %v3281_v56 = vld [vmem:[#allocation6_spill] sm:$0xff] }
 0x332   : > { %v1873_v18 = vmax.f32 %v1809_v44, 0.0  ;;  %v1810_v32 = vadd.f32 %v1654_v14, %v711_v61  ;;  %v767_v28 = vadd.f32 %v3281_v56, %v2525_v48  ;;  %v3282_v61 = vld [vmem:[#allocation9_spill] sm:$0xff] }
 0x333   : > { %1940 = vst.msk [vmem:[%s2930_s15 + $0x110] sm:$0xff] %vm1905_vm1, %v1875_v0  ;;  %v1876_v53 = vmax.f32 %v1812_v43, 0.0  ;;  %v781_v44 = vadd.f32 %v3282_v61, %v2525_v48 }
 0x334   : > { %1938 = vst.msk [vmem:[%s2930_s15 + $0x100] sm:$0xff] %vm1905_vm1, %v1873_v18  ;;  %v1874_v27 = vmax.f32 %v1810_v32, 0.0  ;;  %v3283_v18 = vld [vmem:[#allocation7_spill] sm:$0xff] }
 0x335   : > { %1941 = vst.msk [vmem:[%s2930_s15 + $0x118] sm:$0xff] %vm1905_vm1, %v1876_v53  ;;  %v771_v32 = vadd.f32 %v3283_v18, %v2525_v48 }
 0x336   : > { %1939 = vst.msk [vmem:[%s2930_s15 + $0x108] sm:$0xff] %vm1905_vm1, %v1874_v27 }
 0x33c   : > { %v2305_v40 = vpop.f32.mrb[96].mxu1 }
 0x33d   : > { %v1675_v6 = vadd.f32 %v2305_v40, %v2912_v4  ;;  %v1666_v62 = vpop.f32.mrb[97].mxu1 }
 0x33e   : > { %v1667_v51 = vadd.f32 %v2912_v4, %v1666_v62  ;;  %v2306_v34 = vpop.f32.mrb[98].mxu1 }
 0x33f   : > { %v1815_v5 = vadd.f32 %v1675_v6, %v737_v9  ;;  %v1678_v15 = vadd.f32 %v2306_v34, %v2912_v4  ;;  %v1669_v63 = vpop.f32.mrb[99].mxu1 }
 0x340   : > { %v1813_v46 = vadd.f32 %v1667_v51, %v727_v57  ;;  %v1670_v55 = vadd.f32 %v2912_v4, %v1669_v63 }
 0x341   : > { %v1879_v38 = vmax.f32 %v1815_v5, 0.0  ;;  %v1816_v35 = vadd.f32 %v1678_v15, %v741_v19  ;;  %v3284_v19 = vld [vmem:[#allocation12_spill] sm:$0xff] }
 0x342   : > { %v1877_v36 = vmax.f32 %v1813_v46, 0.0  ;;  %v1814_v58 = vadd.f32 %v1670_v55, %v731_v54  ;;  %v797_v5 = vadd.f32 %v3284_v19, %v2525_v48  ;;  %v3285_v54 = vld [vmem:[#allocation10_spill] sm:$0xff] }
 0x343   : > { %1944 = vst.msk [vmem:[%s2930_s15 + $0x130] sm:$0xff] %vm1905_vm1, %v1879_v38  ;;  %v1880_v17 = vmax.f32 %v1816_v35, 0.0  ;;  %v787_v46 = vadd.f32 %v3285_v54, %v2525_v48  ;;  %v3286_v35 = vld [vmem:[#allocation13_spill] sm:$0xff] }
 0x344   : > { %1942 = vst.msk [vmem:[%s2930_s15 + $0x120] sm:$0xff] %vm1905_vm1, %v1877_v36  ;;  %v1878_v8 = vmax.f32 %v1814_v58, 0.0  ;;  %v801_v36 = vadd.f32 %v3286_v35, %v2525_v48 }
 0x345   : > { %1945 = vst.msk [vmem:[%s2930_s15 + $0x138] sm:$0xff] %vm1905_vm1, %v1880_v17 }
 0x346   : > { %1943 = vst.msk [vmem:[%s2930_s15 + $0x128] sm:$0xff] %vm1905_vm1, %v1878_v8 }
 0x34c   : > { %v2309_v12 = vpop.f32.mrb[100].mxu1 }
 0x34d   : > { %v1691_v60 = vadd.f32 %v2309_v12, %v2912_v4  ;;  %v1682_v26 = vpop.f32.mrb[101].mxu1  ;;  %v3287_v12 = vld [vmem:[#allocation11_spill] sm:$0xff] }
 0x34e   : > { %v1683_v11 = vadd.f32 %v2912_v4, %v1682_v26  ;;  %v2310_v16 = vpop.f32.mrb[102].mxu1  ;;  %v791_v49 = vadd.f32 %v3287_v12, %v2525_v48 }
 0x34f   : > { %v1819_v21 = vadd.f32 %v1691_v60, %v757_v37  ;;  %v1694_v42 = vadd.f32 %v2310_v16, %v2912_v4  ;;  %v1685_v39 = vpop.f32.mrb[103].mxu1 }
 0x350   : > { %v1817_v23 = vadd.f32 %v1683_v11, %v747_v7  ;;  %v1686_v45 = vadd.f32 %v2912_v4, %v1685_v39 }
 0x351   : > { %v1883_v30 = vmax.f32 %v1819_v21, 0.0  ;;  %v1820_v13 = vadd.f32 %v1694_v42, %v761_v52  ;;  %v3288_v21 = vld [vmem:[#allocation16_spill] sm:$0xff] }
 0x352   : > { %v1881_v33 = vmax.f32 %v1817_v23, 0.0  ;;  %v1818_v50 = vadd.f32 %v1686_v45, %v751_v47  ;;  %v817_v42 = vadd.f32 %v3288_v21, %v2525_v48  ;;  %v3289_v47 = vld [vmem:[#allocation14_spill] sm:$0xff] }
 0x353   : > { %1948 = vst.msk [vmem:[%s2930_s15 + $0x150] sm:$0xff] %vm1905_vm1, %v1883_v30  ;;  %v1884_v3 = vmax.f32 %v1820_v13, 0.0  ;;  %v807_v23 = vadd.f32 %v3289_v47, %v2525_v48  ;;  %v3290_v13 = vld [vmem:[#allocation17_spill] sm:$0xff] }
 0x354   : > { %1946 = vst.msk [vmem:[%s2930_s15 + $0x140] sm:$0xff] %vm1905_vm1, %v1881_v33  ;;  %v1882_v29 = vmax.f32 %v1818_v50, 0.0  ;;  %v821_v33 = vadd.f32 %v3290_v13, %v2525_v48 }
 0x355   : > { %1949 = vst.msk [vmem:[%s2930_s15 + $0x158] sm:$0xff] %vm1905_vm1, %v1884_v3 }
 0x356   : > { %1947 = vst.msk [vmem:[%s2930_s15 + $0x148] sm:$0xff] %vm1905_vm1, %v1882_v29 }
 0x35c   : > { %v2313_v2 = vpop.f32.mrb[104].mxu1 }
 0x35d   : > { %v1707_v59 = vadd.f32 %v2313_v2, %v2912_v4  ;;  %v1698_v24 = vpop.f32.mrb[105].mxu1  ;;  %v3291_v2 = vld [vmem:[#allocation15_spill] sm:$0xff] }
 0x35e   : > { %v1699_v20 = vadd.f32 %v2912_v4, %v1698_v24  ;;  %v2314_v22 = vpop.f32.mrb[106].mxu1  ;;  %v811_v1 = vadd.f32 %v3291_v2, %v2525_v48 }
 0x35f   : > { %v1823_v14 = vadd.f32 %v1707_v59, %v777_v41  ;;  %v1710_v0 = vadd.f32 %v2314_v22, %v2912_v4  ;;  %v1701_v43 = vpop.f32.mrb[107].mxu1 }
 0x360   : > { %v1821_v53 = vadd.f32 %v1699_v20, %v767_v28  ;;  %v1702_v27 = vadd.f32 %v2912_v4, %v1701_v43 }
 0x361   : > { %v1887_v40 = vmax.f32 %v1823_v14, 0.0  ;;  %v1824_v9 = vadd.f32 %v1710_v0, %v781_v44  ;;  %v3292_v14 = vld [vmem:[#allocation20_spill] sm:$0xff] }
 0x362   : > { %v1885_v6 = vmax.f32 %v1821_v53, 0.0  ;;  %v1822_v62 = vadd.f32 %v1702_v27, %v771_v32  ;;  %v837_v0 = vadd.f32 %v3292_v14, %v2525_v48  ;;  %v3293_v32 = vld [vmem:[#allocation18_spill] sm:$0xff] }
 0x363   : > { %1952 = vst.msk [vmem:[%s2930_s15 + $0x170] sm:$0xff] %vm1905_vm1, %v1887_v40  ;;  %v1888_v57 = vmax.f32 %v1824_v9, 0.0  ;;  %v827_v53 = vadd.f32 %v3293_v32, %v2525_v48  ;;  %v3294_v9 = vld [vmem:[#allocation21_spill] sm:$0xff] }
 0x364   : > { %1950 = vst.msk [vmem:[%s2930_s15 + $0x160] sm:$0xff] %vm1905_vm1, %v1885_v6  ;;  %v1886_v51 = vmax.f32 %v1822_v62, 0.0  ;;  %v841_v6 = vadd.f32 %v3294_v9, %v2525_v48 }
 0x365   : > { %1953 = vst.msk [vmem:[%s2930_s15 + $0x178] sm:$0xff] %vm1905_vm1, %v1888_v57 }
 0x366   : > { %1951 = vst.msk [vmem:[%s2930_s15 + $0x168] sm:$0xff] %vm1905_vm1, %v1886_v51 }
 0x36c   : > { %v2317_v34 = vpop.f32.mrb[108].mxu1 }
 0x36d   : > { %v1723_v15 = vadd.f32 %v2317_v34, %v2912_v4  ;;  %v1714_v63 = vpop.f32.mrb[109].mxu1  ;;  %v3295_v34 = vld [vmem:[#allocation19_spill] sm:$0xff] }
 0x36e   : > { %v1715_v55 = vadd.f32 %v2912_v4, %v1714_v63  ;;  %v2318_v38 = vpop.f32.mrb[110].mxu1  ;;  %v831_v19 = vadd.f32 %v3295_v34, %v2525_v48 }
 0x36f   : > { %v1827_v58 = vadd.f32 %v1723_v15, %v797_v5  ;;  %v1726_v17 = vadd.f32 %v2318_v38, %v2912_v4  ;;  %v1717_v8 = vpop.f32.mrb[111].mxu1 }
 0x370   : > { %v1825_v37 = vadd.f32 %v1715_v55, %v787_v46  ;;  %v1718_v60 = vadd.f32 %v2912_v4, %v1717_v8 }
 0x371   : > { %v1891_v26 = vmax.f32 %v1827_v58, 0.0  ;;  %v1828_v31 = vadd.f32 %v1726_v17, %v801_v36  ;;  %v3296_v58 = vld [vmem:[#allocation24_spill] sm:$0xff] }
 0x372   : > { %v1889_v7 = vmax.f32 %v1825_v37, 0.0  ;;  %v1826_v11 = vadd.f32 %v1718_v60, %v791_v49  ;;  %v857_v17 = vadd.f32 %v3296_v58, %v2525_v48  ;;  %v3297_v49 = vld [vmem:[#allocation22_spill] sm:$0xff] }
 0x373   : > { %1956 = vst.msk [vmem:[%s2930_s15 + $0x190] sm:$0xff] %vm1905_vm1, %v1891_v26  ;;  %v1892_v16 = vmax.f32 %v1828_v31, 0.0  ;;  %v847_v37 = vadd.f32 %v3297_v49, %v2525_v48  ;;  %v3298_v31 = vld [vmem:[#allocation25_spill] sm:$0xff] }
 0x374   : > { %1954 = vst.msk [vmem:[%s2930_s15 + $0x180] sm:$0xff] %vm1905_vm1, %v1889_v7  ;;  %v1890_v25 = vmax.f32 %v1826_v11, 0.0  ;;  %v861_v7 = vadd.f32 %v3298_v31, %v2525_v48 }
 0x375   : > { %1957 = vst.msk [vmem:[%s2930_s15 + $0x198] sm:$0xff] %vm1905_vm1, %v1892_v16 }
 0x376   : > { %1955 = vst.msk [vmem:[%s2930_s15 + $0x188] sm:$0xff] %vm1905_vm1, %v1890_v25 }
 0x37c   : > { %v2321_v52 = vpop.f32.mrb[112].mxu1 }
 0x37d   : > { %v1739_v39 = vadd.f32 %v2321_v52, %v2912_v4  ;;  %v1730_v10 = vpop.f32.mrb[113].mxu1  ;;  %v3299_v52 = vld [vmem:[#allocation23_spill] sm:$0xff] }
 0x37e   : > { %v1731_v45 = vadd.f32 %v2912_v4, %v1730_v10  ;;  %v2322_v30 = vpop.f32.mrb[114].mxu1  ;;  %v851_v21 = vadd.f32 %v3299_v52, %v2525_v48 }
 0x37f   : > { %v1831_v50 = vadd.f32 %v1739_v39, %v817_v42  ;;  %v1742_v3 = vadd.f32 %v2322_v30, %v2912_v4  ;;  %v1733_v29 = vpop.f32.mrb[115].mxu1 }
 0x380   : > { %v1829_v41 = vadd.f32 %v1731_v45, %v807_v23  ;;  %v1734_v59 = vadd.f32 %v2912_v4, %v1733_v29 }
 0x381   : > { %v1895_v24 = vmax.f32 %v1831_v50, 0.0  ;;  %v1832_v56 = vadd.f32 %v1742_v3, %v821_v33 }
 0x382   : > { %v1893_v28 = vmax.f32 %v1829_v41, 0.0  ;;  %v1830_v20 = vadd.f32 %v1734_v59, %v811_v1 }
 0x383   : > { %1960 = vst.msk [vmem:[%s2930_s15 + $0x1b0] sm:$0xff] %vm1905_vm1, %v1895_v24  ;;  %v1896_v22 = vmax.f32 %v1832_v56, 0.0 }
 0x384   : > { %1958 = vst.msk [vmem:[%s2930_s15 + $0x1a0] sm:$0xff] %vm1905_vm1, %v1893_v28  ;;  %v1894_v61 = vmax.f32 %v1830_v20, 0.0 }
 0x385   : > { %1961 = vst.msk [vmem:[%s2930_s15 + $0x1b8] sm:$0xff] %vm1905_vm1, %v1896_v22 }
 0x386   : > { %1959 = vst.msk [vmem:[%s2930_s15 + $0x1a8] sm:$0xff] %vm1905_vm1, %v1894_v61 }
 0x38c   : > { %v2325_v44 = vpop.f32.mrb[116].mxu1 }
 0x38d   : > { %v1755_v43 = vadd.f32 %v2325_v44, %v2912_v4  ;;  %v1746_v18 = vpop.f32.mrb[117].mxu1 }
 0x38e   : > { %v1747_v27 = vadd.f32 %v2912_v4, %v1746_v18  ;;  %v2326_v40 = vpop.f32.mrb[118].mxu1 }
 0x38f   : > { %v1835_v62 = vadd.f32 %v1755_v43, %v837_v0  ;;  %v1758_v57 = vadd.f32 %v2326_v40, %v2912_v4  ;;  %v1749_v51 = vpop.f32.mrb[119].mxu1 }
 0x390   : > { %v1833_v5 = vadd.f32 %v1747_v27, %v827_v53  ;;  %v1750_v15 = vadd.f32 %v2912_v4, %v1749_v51 }
 0x391   : > { %v1899_v63 = vmax.f32 %v1835_v62, 0.0  ;;  %v1836_v54 = vadd.f32 %v1758_v57, %v841_v6 }
 0x392   : > { %v1897_v46 = vmax.f32 %v1833_v5, 0.0  ;;  %v1834_v55 = vadd.f32 %v1750_v15, %v831_v19 }
 0x393   : > { %1964 = vst.msk [vmem:[%s2930_s15 + $0x1d0] sm:$0xff] %vm1905_vm1, %v1899_v63  ;;  %v1900_v38 = vmax.f32 %v1836_v54, 0.0 }
 0x394   : > { %1962 = vst.msk [vmem:[%s2930_s15 + $0x1c0] sm:$0xff] %vm1905_vm1, %v1897_v46  ;;  %v1898_v35 = vmax.f32 %v1834_v55, 0.0 }
 0x395   : > { %1965 = vst.msk [vmem:[%s2930_s15 + $0x1d8] sm:$0xff] %vm1905_vm1, %v1900_v38 }
 0x396   : > { %1963 = vst.msk [vmem:[%s2930_s15 + $0x1c8] sm:$0xff] %vm1905_vm1, %v1898_v35 }
 0x39c   : > { %v2329_v36 = vpop.f32.mrb[120].mxu1 }
 0x39d   : > { %v1771_v8 = vadd.f32 %v2329_v36, %v2912_v4  ;;  %v1762_v12 = vpop.f32.mrb[121].mxu1 }
 0x39e   : > { %v1763_v60 = vadd.f32 %v2912_v4, %v1762_v12  ;;  %v2330_v26 = vpop.f32.mrb[122].mxu1 }
 0x39f   : > { %v1839_v11 = vadd.f32 %v1771_v8, %v857_v17  ;;  %v1774_v16 = vadd.f32 %v2330_v26, %v2912_v4  ;;  %v1765_v25 = vpop.f32.mrb[123].mxu1 }
 0x3a0   : > { %v1837_v42 = vadd.f32 %v1763_v60, %v847_v37  ;;  %v1766_v39 = vadd.f32 %v2912_v4, %v1765_v25 }
 0x3a1   : > { %v1903_v10 = vmax.f32 %v1839_v11, 0.0  ;;  %v1840_v47 = vadd.f32 %v1774_v16, %v861_v7 }
 0x3a2   : > { %v1901_v23 = vmax.f32 %v1837_v42, 0.0  ;;  %v1838_v45 = vadd.f32 %v1766_v39, %v851_v21 }
 0x3a3   : > { %1968 = vst.msk [vmem:[%s2930_s15 + $0x1f0] sm:$0xff] %vm1905_vm1, %v1903_v10  ;;  %v1904_v30 = vmax.f32 %v1840_v47, 0.0 }
 0x3a4   : > { %1966 = vst.msk [vmem:[%s2930_s15 + $0x1e0] sm:$0xff] %vm1905_vm1, %v1901_v23  ;;  %v1902_v13 = vmax.f32 %v1838_v45, 0.0 }
 0x3a5   : > { %1969 = vst.msk [vmem:[%s2930_s15 + $0x1f8] sm:$0xff] %vm1905_vm1, %v1904_v30 }
 0x3a6   : > { %1967 = vst.msk [vmem:[%s2930_s15 + $0x1e8] sm:$0xff] %vm1905_vm1, %v1902_v13 }
 0x3a7 PF: > { %s17_s24 = sadd.s32 1, %s2384_s24  }
 0x3a8   : > { %p14_p4 = scmp.ge.s32.totalorder %s17_s24, 4  }
 0x3aa   :  { %16 = sbr.rel (!%p14_p4) target bundleno = 1 (0x1), region = 78 }

// kernel: tpu_custom_call.1
= control target key start
LH: loop header
LB: loop body
LE: loop exit
PB: predicated region body
PF: predicated region fallthrough
CT: control target
= control target key end

     0   :  { %s2427_s24 = smov 0   ;;  %s3244_s0 = inlined_call_operand.vmem [shape: f32[1024,32], index: 0, kind: input, shape index: {}]   ;;  %s3245_s1 = inlined_call_operand.vmem [shape: bf16[32,256], index: 1, kind: input, shape index: {}]   ;;  %s3246_s2 = inlined_call_operand.vmem [shape: f32[1,256], index: 2, kind: input, shape index: {}]   ;;  %s3247_s3 = inlined_call_operand.vmem [shape: bf16[128,128], index: 3, kind: input, shape index: {}]   ;;  %s3248_s4 = inlined_call_operand.vmem [shape: f32[1,128], index: 4, kind: input, shape index: {}]   ;;  %s3249_s5 = inlined_call_operand.vmem [shape: bf16[128,16], index: 5, kind: input, shape index: {}]   ;;  %s3250_s6 = inlined_call_operand.vmem [shape: f32[1,16], index: 6, kind: input, shape index: {}]   ;;  %s3251_s7 = inlined_call_operand.vmem [shape: f32[1024,16], index: 7, kind: output, shape index: {}]  }
   0x1 LB: > { %s2026_s25 = sadd.s32 4294967295, %s2384_s24   ;;  %p2030_p0 = scmp.ge.s32.totalorder %s2384_s24, 1  ;;  %s2384_s24 = sphi %s2427_s24, %s17_s24  }
   0x2   : > { %p238_p1 = scmp.lt.s32.totalorder %s2384_s24, 3 }
   0x4   : > { %p239_p2 = pnand %p2030_p0, %p238_p1 }
   0x6   : > { %242 = sbr.rel (%p239_p2) target bundleno = 935 (0x3a7), region = 48 }
   0xd   : > { %v2356_v0 = vld [vmem:[%s3245_s1 + $0x4] ss:$8 sps:$4 sm:$0xff]   ;;  %s2031_s28 = sshll.u32 %s2026_s25, 6  ;;  %v2358_v1 = vld [vmem:[%s3245_s1] ss:$8 sps:$4 sm:$0xff]   ;;  %v2386_v2 = vmov 0   ;;  %v385_v42 = vlaneseq }
   0xe   : > { %544 = vmatprep.mubr.bf16.mxu0 %v2386_v2  ;;  %p271_p3 = scmp.lt.s32.totalorder %s2031_s28, 127  ;;  %512 = vmatprep.subr.bf16.mxu0 %v2356_v0  ;;  %v2359_v3 = vld [vmem:[%s3245_s1 + $0x14] ss:$8 sps:$4 sm:$0xff]   ;;  %v2361_v4 = vld [vmem:[%s3245_s1 + $0x10] ss:$8 sps:$4 sm:$0xff]   ;;  %v2362_v5 = vld [vmem:[%s3247_s3] sm:$0xff]  }
   0xf   : > { %513 = vmatpush1.bf16.msra.mxu0 %v2358_v1  ;;  %v2363_v6 = vld [vmem:[%s3247_s3 + $0x8] sm:$0xff]   ;;  %2331 = vmatprep.subr.bf16.mxu1 %v2362_v5  ;;  %vm415_vm0 = vcmask 261120   ;;  %v2364_v19 = vld [vmem:[%s3247_s3 + $0x10] sm:$0xff]   ;;  %v2365_v32 = vld [vmem:[%s3247_s3 + $0x18] sm:$0xff]   ;;  %v2512_v43 = vshrl.u32 %v385_v42, 7  ;;  %vm1905_vm1 = vcmask 130048  }
  0x10   : > { %s3301_s28 = smov (!%p271_p3, %s2031_s28), 127  ;;  %514 = vmatprep.subr.bf16.mxu0 %v2359_v3  ;;  %2339 = vmatpush3.bf16.msra.mxu1 %v2362_v5  ;;  %v2518_v44 = vld [vmem:[%s3246_s2] sm:$0x3]  ;;  %v2367_v57 = vld [vmem:[%s3247_s3 + $0x28] sm:$0xff]   ;;  %v2368_v60 = vld [vmem:[%s3247_s3 + $0x30] sm:$0xff]  }
  0x11   : > { %s2032_s16 = sshll.u32 %s3301_s28, 3  ;;  %2332 = vmatprep.subr.bf16.mxu1 %v2363_v6  ;;  %v387_v45 = vsub.s32 0, %v2512_v43  ;;  %v2366_v53 = vld [vmem:[%s3247_s3 + $0x20] sm:$0xff]   ;;  %v2369_v62 = vld [vmem:[%s3247_s3 + $0x38] sm:$0xff]  }
  0x12   : > { %s2462_s19 = scalar_lea.vmem %s3244_s0, %s2032_s16  ;;  %s2930_s15 = scalar_lea.vmem %s3251_s7, %s2032_s16 }
  0x13   : > { %515 = vmatpush1.bf16.msra.mxu0 %v2361_v4  ;;  %v283_v7 = vld [vmem:[%s2462_s19] sm:$0xff]  ;;  %v284_v8 = vld [vmem:[%s2462_s19 + $0x8] sm:$0xff]  ;;  %v285_v10 = vld [vmem:[%s2462_s19 + $0x10] sm:$0xff]  ;;  %v2525_v48 = vrot.slane %v2518_v44, %v387_v45 }
  0x14   : > { %v347_v9 = vpack.c.bf16 %v284_v8, %v283_v7  ;;  %2171 = vmatprep.subr.bf16.mxu0 %v2362_v5  ;;  %2340 = vmatpush3.bf16.msra.mxu1 %v2363_v6  ;;  %v286_v11 = vld [vmem:[%s2462_s19 + $0x18] sm:$0xff]  ;;  %v287_v13 = vld [vmem:[%s2462_s19 + $0x20] sm:$0xff]  ;;  %v288_v14 = vld [vmem:[%s2462_s19 + $0x28] sm:$0xff] }
  0x15   : > { %v348_v12 = vpack.c.bf16 %v286_v11, %v285_v10  ;;  %v349_v15 = vpack.c.bf16 %v288_v14, %v287_v13  ;;  %v289_v16 = vld [vmem:[%s2462_s19 + $0x30] sm:$0xff]  ;;  %v290_v17 = vld [vmem:[%s2462_s19 + $0x38] sm:$0xff]  ;;  %v291_v20 = vld [vmem:[%s2462_s19 + $0x40] sm:$0xff]  ;;  %2333 = vmatprep.subr.bf16.mxu1 %v2364_v19 }
  0x16   : > { %2039 = vmatmul.mubr.msk.bf16.vlgmr.msra.gmra.mrb[0].mxu0 %vm415_vm0, %v347_v9  ;;  %v350_v18 = vpack.c.bf16 %v290_v17, %v289_v16  ;;  %v292_v21 = vld [vmem:[%s2462_s19 + $0x48] sm:$0xff]  ;;  %v293_v23 = vld [vmem:[%s2462_s19 + $0x50] sm:$0xff]  ;;  %v294_v24 = vld [vmem:[%s2462_s19 + $0x58] sm:$0xff] }
  0x17   : > { %554 = vmatprep.mubr.bf16.mxu0 %v2386_v2  ;;  %2172 = vmatpush3.bf16.msra.mxu0 %v2362_v5  ;;  %v351_v22 = vpack.c.bf16 %v292_v21, %v291_v20  ;;  %v352_v25 = vpack.c.bf16 %v294_v24, %v293_v23  ;;  %v295_v26 = vld [vmem:[%s2462_s19 + $0x60] sm:$0xff]  ;;  %v296_v27 = vld [vmem:[%s2462_s19 + $0x68] sm:$0xff]  ;;  %v297_v29 = vld [vmem:[%s2462_s19 + $0x70] sm:$0xff] }
  0x18   : > { %2173 = vmatprep.subr.bf16.mxu0 %v2363_v6  ;;  %2341 = vmatpush3.bf16.msra.mxu1 %v2364_v19  ;;  %v353_v28 = vpack.c.bf16 %v296_v27, %v295_v26  ;;  %v298_v30 = vld [vmem:[%s2462_s19 + $0x78] sm:$0xff]  ;;  %v299_v33 = vld [vmem:[%s2462_s19 + $0x80] sm:$0xff]  ;;  %v300_v34 = vld [vmem:[%s2462_s19 + $0x88] sm:$0xff] }
  0x19   : > { %v354_v31 = vpack.c.bf16 %v298_v30, %v297_v29  ;;  %2334 = vmatprep.subr.bf16.mxu1 %v2365_v32  ;;  %v355_v35 = vpack.c.bf16 %v300_v34, %v299_v33  ;;  %v301_v36 = vld [vmem:[%s2462_s19 + $0x90] sm:$0xff]  ;;  %v302_v37 = vld [vmem:[%s2462_s19 + $0x98] sm:$0xff]  ;;  %v303_v39 = vld [vmem:[%s2462_s19 + $0xa0] sm:$0xff] }
  0x1a   : > { %v356_v38 = vpack.c.bf16 %v302_v37, %v301_v36  ;;  %v304_v40 = vld [vmem:[%s2462_s19 + $0xa8] sm:$0xff]  ;;  %v305_v46 = vld [vmem:[%s2462_s19 + $0xb0] sm:$0xff]  ;;  %v306_v47 = vld [vmem:[%s2462_s19 + $0xb8] sm:$0xff]  ;;  %v391_v36 = vsub.s32 1, %v2512_v43 }
  0x1b   : > { %2174 = vmatpush3.bf16.msra.mxu0 %v2363_v6  ;;  %v357_v41 = vpack.c.bf16 %v304_v40, %v303_v39  ;;  %v358_v49 = vpack.c.bf16 %v306_v47, %v305_v46  ;;  %v307_v50 = vld [vmem:[%s2462_s19 + $0xc0] sm:$0xff]  ;;  %v308_v51 = vld [vmem:[%s2462_s19 + $0xc8] sm:$0xff]  ;;  %v309_v54 = vld [vmem:[%s2462_s19 + $0xd0] sm:$0xff] }
  0x1c   : > { %2175 = vmatprep.subr.bf16.mxu0 %v2364_v19  ;;  %2342 = vmatpush3.bf16.msra.mxu1 %v2365_v32  ;;  %v359_v52 = vpack.c.bf16 %v308_v51, %v307_v50  ;;  %v310_v55 = vld [vmem:[%s2462_s19 + $0xd8] sm:$0xff]  ;;  %v311_v58 = vld [vmem:[%s2462_s19 + $0xe0] sm:$0xff]  ;;  %v312_v59 = vld [vmem:[%s2462_s19 + $0xe8] sm:$0xff]  ;;  %v2602_v37 = vrot.slane %v2518_v44, %v391_v36 }
  0x1d   : > { %2335 = vmatprep.subr.bf16.mxu1 %v2366_v53  ;;  %v360_v56 = vpack.c.bf16 %v310_v55, %v309_v54  ;;  %v361_v61 = vpack.c.bf16 %v312_v59, %v311_v58  ;;  %v313_v63 = vld [vmem:[%s2462_s19 + $0xf0] sm:$0xff]  ;;  %v314_v0 = vld [vmem:[%s2462_s19 + $0xf8] sm:$0xff]  ;;  %v315_v3 = vld [vmem:[%s2462_s19 + $0x100] sm:$0xff] }
  0x1e   : > { %2040 = vmatmul.mubr.msk.bf16.gmra.mrb[4].mxu0 %vm415_vm0, %v348_v12  ;;  %v362_v1 = vpack.c.bf16 %v314_v0, %v313_v63  ;;  %v316_v4 = vld [vmem:[%s2462_s19 + $0x108] sm:$0xff]  ;;  %v317_v6 = vld [vmem:[%s2462_s19 + $0x110] sm:$0xff]  ;;  %v318_v7 = vld [vmem:[%s2462_s19 + $0x118] sm:$0xff] }
  0x1f   : > { %564 = vmatprep.mubr.bf16.mxu0 %v2386_v2  ;;  %2176 = vmatpush3.bf16.msra.mxu0 %v2364_v19  ;;  %v363_v5 = vpack.c.bf16 %v316_v4, %v315_v3  ;;  %v364_v8 = vpack.c.bf16 %v318_v7, %v317_v6  ;;  %v319_v9 = vld [vmem:[%s2462_s19 + $0x120] sm:$0xff]  ;;  %v320_v10 = vld [vmem:[%s2462_s19 + $0x128] sm:$0xff]  ;;  %v321_v12 = vld [vmem:[%s2462_s19 + $0x130] sm:$0xff] }
  0x20   : > { %2177 = vmatprep.subr.bf16.mxu0 %v2365_v32  ;;  %2343 = vmatpush3.bf16.msra.mxu1 %v2366_v53  ;;  %v365_v11 = vpack.c.bf16 %v320_v10, %v319_v9  ;;  %v322_v13 = vld [vmem:[%s2462_s19 + $0x138] sm:$0xff]  ;;  %v324_v16 = vld [vmem:[%s2462_s19 + $0x148] sm:$0xff]  ;;  %v327_v21 = vld [vmem:[%s2462_s19 + $0x160] sm:$0xff] }
  0x21   : > { %2336 = vmatprep.subr.bf16.mxu1 %v2367_v57  ;;  %v366_v14 = vpack.c.bf16 %v322_v13, %v321_v12  ;;  %v326_v19 = vld [vmem:[%s2462_s19 + $0x158] sm:$0xff]  ;;  %v329_v24 = vld [vmem:[%s2462_s19 + $0x170] sm:$0xff]  ;;  %v331_v27 = vld [vmem:[%s2462_s19 + $0x180] sm:$0xff] }
  0x22   : > { %v333_v30 = vld [vmem:[%s2462_s19 + $0x190] sm:$0xff]  ;;  %v335_v33 = vld [vmem:[%s2462_s19 + $0x1a0] sm:$0xff]  ;;  %v336_v34 = vld [vmem:[%s2462_s19 + $0x1a8] sm:$0xff] }
  0x23   : > { %2178 = vmatpush3.bf16.msra.mxu0 %v2365_v32  ;;  %v338_v39 = vld [vmem:[%s2462_s19 + $0x1b8] sm:$0xff]  ;;  %v339_v50 = vld [vmem:[%s2462_s19 + $0x1c0] sm:$0xff]  ;;  %v340_v51 = vld [vmem:[%s2462_s19 + $0x1c8] sm:$0xff] }
  0x24   : > { %2179 = vmatprep.subr.bf16.mxu0 %v2366_v53  ;;  %2344 = vmatpush3.bf16.msra.mxu1 %v2367_v57  ;;  %v375_v55 = vpack.c.bf16 %v340_v51, %v339_v50  ;;  %v342_v63 = vld [vmem:[%s2462_s19 + $0x1d8] sm:$0xff]  ;;  %v344_v12 = vld [vmem:[%s2462_s19 + $0x1e8] sm:$0xff] }
  0x25   : > { %2337 = vmatprep.subr.bf16.mxu1 %v2368_v60 }
  0x26   : > { %2041 = vmatmul.mubr.msk.bf16.gmra.mrb[8].mxu0 %vm415_vm0, %v349_v15  ;;  %v323_v15 = vld [vmem:[%s2462_s19 + $0x140] sm:$0xff] }
  0x27   : > { %574 = vmatprep.mubr.bf16.mxu0 %v2386_v2  ;;  %2180 = vmatpush3.bf16.msra.mxu0 %v2366_v53  ;;  %v367_v17 = vpack.c.bf16 %v324_v16, %v323_v15 }
  0x28   : > { %2181 = vmatprep.subr.bf16.mxu0 %v2367_v57  ;;  %2345 = vmatpush3.bf16.msra.mxu1 %v2368_v60 }
  0x29   : > { %2338 = vmatprep.subr.bf16.mxu1 %v2369_v62 }
  0x2b   : > { %2182 = vmatpush3.bf16.msra.mxu0 %v2367_v57 }
  0x2c   : > { %2183 = vmatprep.subr.bf16.mxu0 %v2368_v60  ;;  %2346 = vmatpush3.bf16.msra.mxu1 %v2369_v62 }
  0x2e   : > { %2042 = vmatmul.mubr.msk.bf16.gmra.mrb[12].mxu0 %vm415_vm0, %v350_v18  ;;  %v325_v18 = vld [vmem:[%s2462_s19 + $0x150] sm:$0xff] }
  0x2f   : > { %584 = vmatprep.mubr.bf16.mxu0 %v2386_v2  ;;  %2184 = vmatpush3.bf16.msra.mxu0 %v2368_v60  ;;  %v368_v20 = vpack.c.bf16 %v326_v19, %v325_v18 }
  0x30   : > { %2185 = vmatprep.subr.bf16.mxu0 %v2369_v62 }
  0x33   : > { %2186 = vmatpush3.bf16.msra.mxu0 %v2369_v62  ;;  %v341_v62 = vld [vmem:[%s2462_s19 + $0x1d0] sm:$0xff] }
  0x34   : > { %v376_v4 = vpack.c.bf16 %v342_v63, %v341_v62 }
  0x36   : > { %2043 = vmatmul.mubr.msk.bf16.gmra.mrb[16].mxu0 %vm415_vm0, %v351_v22  ;;  %v328_v22 = vld [vmem:[%s2462_s19 + $0x168] sm:$0xff] }
  0x37   : > { %594 = vmatprep.mubr.bf16.mxu0 %v2386_v2  ;;  %v369_v23 = vpack.c.bf16 %v328_v22, %v327_v21 }
  0x3e   : > { %2044 = vmatmul.mubr.msk.bf16.gmra.mrb[20].mxu0 %vm415_vm0, %v352_v25  ;;  %v330_v25 = vld [vmem:[%s2462_s19 + $0x178] sm:$0xff] }
  0x3f   : > { %604 = vmatprep.mubr.bf16.mxu0 %v2386_v2  ;;  %v370_v26 = vpack.c.bf16 %v330_v25, %v329_v24  ;;  %v346_v24 = vld [vmem:[%s2462_s19 + $0x1f8] sm:$0xff] }
  0x46   : > { %2045 = vmatmul.mubr.msk.bf16.gmra.mrb[24].mxu0 %vm415_vm0, %v353_v28  ;;  %v332_v28 = vld [vmem:[%s2462_s19 + $0x188] sm:$0xff] }
  0x47   : > { %614 = vmatprep.mubr.bf16.mxu0 %v2386_v2  ;;  %v371_v29 = vpack.c.bf16 %v332_v28, %v331_v27 }
  0x4e   : > { %2046 = vmatmul.mubr.msk.bf16.gmra.mrb[28].mxu0 %vm415_vm0, %v354_v31  ;;  %v334_v31 = vld [vmem:[%s2462_s19 + $0x198] sm:$0xff] }
  0x4f   : > { %624 = vmatprep.mubr.bf16.mxu0 %v2386_v2  ;;  %v372_v32 = vpack.c.bf16 %v334_v31, %v333_v30 }
  0x56   : > { %2047 = vmatmul.mubr.msk.bf16.gmra.mrb[32].mxu0 %vm415_vm0, %v355_v35  ;;  %v373_v35 = vpack.c.bf16 %v336_v34, %v335_v33 }
  0x57   : > { %634 = vmatprep.mubr.bf16.mxu0 %v2386_v2 }
  0x5e   : > { %2048 = vmatmul.mubr.msk.bf16.gmra.mrb[36].mxu0 %vm415_vm0, %v356_v38  ;;  %v337_v38 = vld [vmem:[%s2462_s19 + $0x1b0] sm:$0xff] }
  0x5f   : > { %644 = vmatprep.mubr.bf16.mxu0 %v2386_v2  ;;  %v374_v42 = vpack.c.bf16 %v338_v39, %v337_v38 }
  0x66   : > { %2049 = vmatmul.mubr.msk.bf16.gmra.mrb[40].mxu0 %vm415_vm0, %v357_v41 }
  0x67   : > { %654 = vmatprep.mubr.bf16.mxu0 %v2386_v2 }
  0x6e   : > { %2050 = vmatmul.mubr.msk.bf16.gmra.mrb[44].mxu0 %vm415_vm0, %v358_v49 }
  0x6f   : > { %664 = vmatprep.mubr.bf16.mxu0 %v2386_v2 }
  0x76   : > { %2051 = vmatmul.mubr.msk.bf16.gmra.mrb[48].mxu0 %vm415_vm0, %v359_v52 }
  0x77   : > { %674 = vmatprep.mubr.bf16.mxu0 %v2386_v2 }
  0x7e   : > { %2052 = vmatmul.mubr.msk.bf16.gmra.mrb[52].mxu0 %vm415_vm0, %v360_v56 }
  0x7f   : > { %684 = vmatprep.mubr.bf16.mxu0 %v2386_v2 }
  0x86   : > { %2053 = vmatmul.mubr.msk.bf16.gmra.mrb[56].mxu0 %vm415_vm0, %v361_v61 }
  0x87   : > { %694 = vmatprep.mubr.bf16.mxu0 %v2386_v2 }
  0x8e   : > { %2054 = vmatmul.mubr.msk.bf16.gmra.mrb[60].mxu0 %vm415_vm0, %v362_v1 }
  0x8f   : > { %704 = vmatprep.mubr.bf16.mxu0 %v2386_v2 }
  0x96   : > { %2055 = vmatmul.mubr.msk.bf16.gmra.mrb[64].mxu0 %vm415_vm0, %v363_v5 }
  0x97   : > { %714 = vmatprep.mubr.bf16.mxu0 %v2386_v2 }
  0x9e   : > { %2056 = vmatmul.mubr.msk.bf16.gmra.mrb[68].mxu0 %vm415_vm0, %v364_v8 }
  0x9f   : > { %724 = vmatprep.mubr.bf16.mxu0 %v2386_v2 }
  0xa6   : > { %2057 = vmatmul.mubr.msk.bf16.gmra.mrb[72].mxu0 %vm415_vm0, %v365_v11  ;;  %v343_v11 = vld [vmem:[%s2462_s19 + $0x1e0] sm:$0xff] }
  0xa7   : > { %734 = vmatprep.mubr.bf16.mxu0 %v2386_v2  ;;  %v377_v16 = vpack.c.bf16 %v344_v12, %v343_v11 }
  0xae   : > { %2058 = vmatmul.mubr.msk.bf16.gmra.mrb[76].mxu0 %vm415_vm0, %v366_v14 }
  0xaf   : > { %744 = vmatprep.mubr.bf16.mxu0 %v2386_v2 }
  0xb6   : > { %2059 = vmatmul.mubr.msk.bf16.gmra.mrb[80].mxu0 %vm415_vm0, %v367_v17 }
  0xb7   : > { %754 = vmatprep.mubr.bf16.mxu0 %v2386_v2 }
  0xbe   : > { %2060 = vmatmul.mubr.msk.bf16.gmra.mrb[84].mxu0 %vm415_vm0, %v368_v20 }
  0xbf   : > { %764 = vmatprep.mubr.bf16.mxu0 %v2386_v2 }
  0xc6   : > { %2061 = vmatmul.mubr.msk.bf16.gmra.mrb[88].mxu0 %vm415_vm0, %v369_v23  ;;  %v345_v23 = vld [vmem:[%s2462_s19 + $0x1f0] sm:$0xff] }
  0xc7   : > { %774 = vmatprep.mubr.bf16.mxu0 %v2386_v2  ;;  %v378_v28 = vpack.c.bf16 %v346_v24, %v345_v23 }
  0xce   : > { %2062 = vmatmul.mubr.msk.bf16.gmra.mrb[92].mxu0 %vm415_vm0, %v370_v26 }
  0xcf   : > { %784 = vmatprep.mubr.bf16.mxu0 %v2386_v2 }
  0xd6   : > { %2063 = vmatmul.mubr.msk.bf16.gmra.mrb[96].mxu0 %vm415_vm0, %v371_v29 }
  0xd7   : > { %794 = vmatprep.mubr.bf16.mxu0 %v2386_v2 }
  0xde   : > { %2064 = vmatmul.mubr.msk.bf16.gmra.mrb[100].mxu0 %vm415_vm0, %v372_v32 }
  0xdf   : > { %804 = vmatprep.mubr.bf16.mxu0 %v2386_v2 }
  0xe6   : > { %2065 = vmatmul.mubr.msk.bf16.gmra.mrb[104].mxu0 %vm415_vm0, %v373_v35 }
  0xe7   : > { %814 = vmatprep.mubr.bf16.mxu0 %v2386_v2 }
  0xe9   : > { %v2607_v40 = vpop.f32.mrb[0].mxu0 }
  0xea   : > { %v548_v41 = vpop.f32.mrb[1].mxu0 }
  0xeb   : > { %v549_v45 = vadd.f32 %v548_v41, %v2602_v37  ;;  %v2610_v46 = vpop.f32.mrb[2].mxu0 }
  0xec   : > { %v552_v43 = vpop.f32.mrb[3].mxu0 }
  0xed   : > { %v553_v47 = vadd.f32 %v552_v43, %v2602_v37  ;;  %v865_v44 = vmax.f32 %v549_v45, 0.0 }
  0xee   : > { %2066 = vmatmul.mubr.msk.bf16.gmra.mrb[108].mxu0 %vm415_vm0, %v374_v42 }
  0xef   : > { %v866_v49 = vmax.f32 %v553_v47, 0.0  ;;  %824 = vmatprep.mubr.bf16.mxu0 %v2386_v2 }
  0xf1   : > { %v946_v52 = vpack.c.bf16 %v866_v49, %v865_v44  ;;  %v2617_v53 = vpop.f32.mrb[4].mxu0 }
  0xf2   : > { %v558_v54 = vpop.f32.mrb[5].mxu0 }
  0xf3   : > { %v559_v56 = vadd.f32 %v558_v54, %v2602_v37  ;;  %v2620_v57 = vpop.f32.mrb[6].mxu0 }
  0xf4   : > { %v562_v58 = vpop.f32.mrb[7].mxu0 }
  0xf5   : > { %v563_v59 = vadd.f32 %v562_v58, %v2602_v37  ;;  %v867_v60 = vmax.f32 %v559_v56, 0.0 }
  0xf6   : > { %2067 = vmatmul.mubr.msk.bf16.gmra.mrb[112].mxu0 %vm415_vm0, %v375_v55 }
  0xf7   : > { %v868_v61 = vmax.f32 %v563_v59, 0.0  ;;  %834 = vmatprep.mubr.bf16.mxu0 %v2386_v2 }
  0xf9   : > { %v947_v0 = vpack.c.bf16 %v868_v61, %v867_v60  ;;  %v2627_v1 = vpop.f32.mrb[8].mxu0 }
  0xfa   : > { %v568_v3 = vpop.f32.mrb[9].mxu0 }
  0xfb   : > { %v569_v5 = vadd.f32 %v568_v3, %v2602_v37  ;;  %v2630_v6 = vpop.f32.mrb[10].mxu0 }
  0xfc   : > { %v572_v7 = vpop.f32.mrb[11].mxu0 }
  0xfd   : > { %v573_v8 = vadd.f32 %v572_v7, %v2602_v37  ;;  %v869_v9 = vmax.f32 %v569_v5, 0.0 }
  0xfe   : > { %2068 = vmatmul.mubr.msk.bf16.gmra.mrb[116].mxu0 %vm415_vm0, %v376_v4 }
  0xff   : > { %v870_v10 = vmax.f32 %v573_v8, 0.0  ;;  %844 = vmatprep.mubr.bf16.mxu0 %v2386_v2 }
 0x101   : > { %v2637_v13 = vpop.f32.mrb[12].mxu0  ;;  %v948_v14 = vpack.c.bf16 %v870_v10, %v869_v9 }
 0x102   : > { %v578_v15 = vpop.f32.mrb[13].mxu0 }
 0x103   : > { %v579_v17 = vadd.f32 %v578_v15, %v2602_v37  ;;  %v2640_v18 = vpop.f32.mrb[14].mxu0  ;;  %2191 = vmatprep.mubr.bf16.mxu1 %v948_v14 }
 0x104   : > { %v582_v19 = vpop.f32.mrb[15].mxu0 }
 0x105   : > { %v583_v20 = vadd.f32 %v582_v19, %v2602_v37  ;;  %v871_v21 = vmax.f32 %v579_v17, 0.0 }
 0x106   : > { %2069 = vmatmul.mubr.msk.bf16.gmra.mrb[120].mxu0 %vm415_vm0, %v377_v16 }
 0x107   : > { %v872_v22 = vmax.f32 %v583_v20, 0.0  ;;  %854 = vmatprep.mubr.bf16.mxu0 %v2386_v2 }
 0x109   : > { %v949_v25 = vpack.c.bf16 %v872_v22, %v871_v21  ;;  %v2647_v26 = vpop.f32.mrb[16].mxu0 }
 0x10a   : > { %v588_v27 = vpop.f32.mrb[17].mxu0 }
 0x10b   : > { %v589_v29 = vadd.f32 %v588_v27, %v2602_v37  ;;  %v2650_v30 = vpop.f32.mrb[18].mxu0  ;;  %2192 = vmatmul.mubr.bf16.vlgmr.msra.gmra.mrb[0].mxu1 %v949_v25 }
 0x10c   : > { %v592_v31 = vpop.f32.mrb[19].mxu0 }
 0x10d   : > { %v593_v32 = vadd.f32 %v592_v31, %v2602_v37  ;;  %v873_v33 = vmax.f32 %v589_v29, 0.0 }
 0x10e   : > { %2070 = vmatmul.mubr.msk.bf16.gmra.mrb[124].mxu0 %vm415_vm0, %v378_v28 }
 0x10f   : > { %v874_v34 = vmax.f32 %v593_v32, 0.0  ;;  %2187 = vmatprep.mubr.bf16.mxu0 %v946_v52 }
 0x111   : > { %v950_v2 = vpack.c.bf16 %v874_v34, %v873_v33  ;;  %v2654_v35 = vpop.f32.mrb[20].mxu0 }
 0x112   : > { %v598_v36 = vpop.f32.mrb[21].mxu0 }
 0x113   : > { %v599_v38 = vadd.f32 %v598_v36, %v2602_v37  ;;  %v2657_v39 = vpop.f32.mrb[22].mxu0  ;;  %2195 = vmatprep.mubr.bf16.mxu1 %v950_v2 }
 0x114   : > { %v602_v41 = vpop.f32.mrb[23].mxu0 }
 0x115   : > { %v603_v42 = vadd.f32 %v602_v41, %v2602_v37  ;;  %v875_v45 = vmax.f32 %v599_v38, 0.0 }
 0x116   : > { %2188 = vmatmul.mubr.bf16.vlgmr.msra.gmra.mrb[128].mxu0 %v947_v0 }
 0x117   : > { %v876_v43 = vmax.f32 %v603_v42, 0.0 }
 0x119   : > { %v951_v47 = vpack.c.bf16 %v876_v43, %v875_v45  ;;  %v2660_v44 = vpop.f32.mrb[24].mxu0 }
 0x11a   : > { %v608_v49 = vpop.f32.mrb[25].mxu0 }
 0x11b   : > { %v609_v50 = vadd.f32 %v608_v49, %v2602_v37  ;;  %v2663_v51 = vpop.f32.mrb[26].mxu0  ;;  %2196 = vmatmul.mubr.bf16.gmra.mrb[4].mxu1 %v951_v47 }
 0x11c   : > { %v612_v52 = vpop.f32.mrb[27].mxu0 }
 0x11d   : > { %v613_v54 = vadd.f32 %v612_v52, %v2602_v37  ;;  %v877_v55 = vmax.f32 %v609_v50, 0.0 }
 0x11f   : > { %v878_v56 = vmax.f32 %v613_v54, 0.0 }
 0x121   : > { %v952_v58 = vpack.c.bf16 %v878_v56, %v877_v55  ;;  %v2666_v59 = vpop.f32.mrb[28].mxu0 }
 0x122   : > { %v618_v60 = vpop.f32.mrb[29].mxu0 }
 0x123   : > { %v619_v61 = vadd.f32 %v618_v60, %v2602_v37  ;;  %v2669_v62 = vpop.f32.mrb[30].mxu0  ;;  %2199 = vmatprep.mubr.bf16.mxu1 %v952_v58 }
 0x124   : > { %v622_v63 = vpop.f32.mrb[31].mxu0 }
 0x125   : > { %v623_v0 = vadd.f32 %v622_v63, %v2602_v37  ;;  %v879_v3 = vmax.f32 %v619_v61, 0.0 }
 0x127   : > { %v880_v4 = vmax.f32 %v623_v0, 0.0 }
 0x129   : > { %v953_v5 = vpack.c.bf16 %v880_v4, %v879_v3  ;;  %v2672_v7 = vpop.f32.mrb[32].mxu0 }
 0x12a   : > { %v628_v8 = vpop.f32.mrb[33].mxu0 }
 0x12b   : > { %v629_v9 = vadd.f32 %v628_v8, %v2602_v37  ;;  %v2675_v10 = vpop.f32.mrb[34].mxu0  ;;  %2200 = vmatmul.mubr.bf16.gmra.mrb[8].mxu1 %v953_v5 }
 0x12c   : > { %v632_v11 = vpop.f32.mrb[35].mxu0 }
 0x12d   : > { %v633_v12 = vadd.f32 %v632_v11, %v2602_v37  ;;  %v881_v14 = vmax.f32 %v629_v9, 0.0  ;;  %v2370_v9 = vld [vmem:[%s3249_s5] sm:$0xff]  }
 0x12e   : > { %2251 = vmatprep.subr.bf16.mxu1 %v2370_v9 }
 0x12f   : > { %v882_v15 = vmax.f32 %v633_v12, 0.0  ;;  %2252 = vmatpush3.bf16.msra.mxu1 %v2370_v9 }
 0x131   : > { %v954_v16 = vpack.c.bf16 %v882_v15, %v881_v14  ;;  %v2678_v17 = vpop.f32.mrb[36].mxu0 }
 0x132   : > { %v638_v19 = vpop.f32.mrb[37].mxu0 }
 0x133   : > { %v639_v20 = vadd.f32 %v638_v19, %v2602_v37  ;;  %v2681_v21 = vpop.f32.mrb[38].mxu0  ;;  %2203 = vmatprep.mubr.bf16.mxu1 %v954_v16  ;;  %v2371_v16 = vld [vmem:[%s3249_s5 + $0x8] sm:$0xff]  }
 0x134   : > { %v642_v22 = vpop.f32.mrb[39].mxu0  ;;  %2253 = vmatprep.subr.bf16.mxu1 %v2371_v16 }
 0x135   : > { %v643_v23 = vadd.f32 %v642_v22, %v2602_v37  ;;  %v883_v24 = vmax.f32 %v639_v20, 0.0  ;;  %2254 = vmatpush3.bf16.msra.mxu1 %v2371_v16 }
 0x137   : > { %v884_v25 = vmax.f32 %v643_v23, 0.0 }
 0x139   : > { %v955_v27 = vpack.c.bf16 %v884_v25, %v883_v24  ;;  %v2684_v28 = vpop.f32.mrb[40].mxu0  ;;  %v2372_v25 = vld [vmem:[%s3249_s5 + $0x10] sm:$0xff]  }
 0x13a   : > { %v648_v29 = vpop.f32.mrb[41].mxu0  ;;  %2255 = vmatprep.subr.bf16.mxu1 %v2372_v25 }
 0x13b   : > { %v649_v31 = vadd.f32 %v648_v29, %v2602_v37  ;;  %v2687_v32 = vpop.f32.mrb[42].mxu0  ;;  %2204 = vmatmul.mubr.bf16.gmra.mrb[12].mxu1 %v955_v27 }
 0x13c   : > { %v652_v33 = vpop.f32.mrb[43].mxu0  ;;  %2256 = vmatpush3.bf16.msra.mxu1 %v2372_v25 }
 0x13d   : > { %v653_v34 = vadd.f32 %v652_v33, %v2602_v37  ;;  %v885_v2 = vmax.f32 %v649_v31, 0.0 }
 0x13f   : > { %v886_v36 = vmax.f32 %v653_v34, 0.0  ;;  %v2373_v34 = vld [vmem:[%s3249_s5 + $0x18] sm:$0xff]  }
 0x140   : > { %2257 = vmatprep.subr.bf16.mxu1 %v2373_v34 }
 0x141   : > { %v956_v38 = vpack.c.bf16 %v886_v36, %v885_v2  ;;  %v2690_v41 = vpop.f32.mrb[44].mxu0  ;;  %2258 = vmatpush3.bf16.msra.mxu1 %v2373_v34 }
 0x142   : > { %v658_v42 = vpop.f32.mrb[45].mxu0 }
 0x143   : > { %v659_v45 = vadd.f32 %v658_v42, %v2602_v37  ;;  %v2693_v43 = vpop.f32.mrb[46].mxu0  ;;  %2207 = vmatprep.mubr.bf16.mxu1 %v956_v38 }
 0x144   : > { %v662_v47 = vpop.f32.mrb[47].mxu0 }
 0x145   : > { %v663_v49 = vadd.f32 %v662_v47, %v2602_v37  ;;  %v887_v50 = vmax.f32 %v659_v45, 0.0  ;;  %v2374_v47 = vld [vmem:[%s3249_s5 + $0x20] sm:$0xff]  }
 0x146   : > { %2259 = vmatprep.subr.bf16.mxu1 %v2374_v47 }
 0x147   : > { %v888_v52 = vmax.f32 %v663_v49, 0.0  ;;  %2260 = vmatpush3.bf16.msra.mxu1 %v2374_v47 }
 0x149   : > { %v957_v54 = vpack.c.bf16 %v888_v52, %v887_v50  ;;  %v2696_v55 = vpop.f32.mrb[48].mxu0 }
 0x14a   : > { %v668_v56 = vpop.f32.mrb[49].mxu0 }
 0x14b   : > { %v669_v58 = vadd.f32 %v668_v56, %v2602_v37  ;;  %v2699_v60 = vpop.f32.mrb[50].mxu0  ;;  %2208 = vmatmul.mubr.bf16.gmra.mrb[16].mxu1 %v957_v54  ;;  %v2375_v56 = vld [vmem:[%s3249_s5 + $0x28] sm:$0xff]  }
 0x14c   : > { %v672_v61 = vpop.f32.mrb[51].mxu0  ;;  %2261 = vmatprep.subr.bf16.mxu1 %v2375_v56 }
 0x14d   : > { %v673_v63 = vadd.f32 %v672_v61, %v2602_v37  ;;  %v889_v0 = vmax.f32 %v669_v58, 0.0  ;;  %2262 = vmatpush3.bf16.msra.mxu1 %v2375_v56 }
 0x14f   : > { %v890_v3 = vmax.f32 %v673_v63, 0.0 }
 0x151   : > { %v958_v4 = vpack.c.bf16 %v890_v3, %v889_v0  ;;  %v2702_v5 = vpop.f32.mrb[52].mxu0 }
 0x152   : > { %v678_v8 = vpop.f32.mrb[53].mxu0 }
 0x153   : > { %v679_v11 = vadd.f32 %v678_v8, %v2602_v37  ;;  %v2708_v12 = vpop.f32.mrb[54].mxu0  ;;  %2211 = vmatprep.mubr.bf16.mxu1 %v958_v4  ;;  %v2376_v4 = vld [vmem:[%s3249_s5 + $0x30] sm:$0xff]  }
 0x154   : > { %v682_v14 = vpop.f32.mrb[55].mxu0  ;;  %2263 = vmatprep.subr.bf16.mxu1 %v2376_v4 }
 0x155   : > { %v683_v15 = vadd.f32 %v682_v14, %v2602_v37  ;;  %v891_v19 = vmax.f32 %v679_v11, 0.0  ;;  %2264 = vmatpush3.bf16.msra.mxu1 %v2376_v4 }
 0x157   : > { %v892_v20 = vmax.f32 %v683_v15, 0.0  ;;  %v2377_v15 = vld [vmem:[%s3249_s5 + $0x38] sm:$0xff]  }
 0x158   : > { %2265 = vmatprep.subr.bf16.mxu1 %v2377_v15 }
 0x159   : > { %v959_v22 = vpack.c.bf16 %v892_v20, %v891_v19  ;;  %v2714_v23 = vpop.f32.mrb[56].mxu0  ;;  %2266 = vmatpush3.bf16.msra.mxu1 %v2377_v15 }
 0x15a   : > { %v688_v24 = vpop.f32.mrb[57].mxu0 }
 0x15b   : > { %v689_v27 = vadd.f32 %v688_v24, %v2602_v37  ;;  %v2720_v29 = vpop.f32.mrb[58].mxu0  ;;  %2212 = vmatmul.mubr.bf16.gmra.mrb[20].mxu1 %v959_v22 }
 0x15c   : > { %v692_v31 = vpop.f32.mrb[59].mxu0 }
 0x15d   : > { %v693_v33 = vadd.f32 %v692_v31, %v2602_v37  ;;  %v893_v2 = vmax.f32 %v689_v27, 0.0 }
 0x15f   : > { %v894_v36 = vmax.f32 %v693_v33, 0.0 }
 0x161   : > { %v960_v38 = vpack.c.bf16 %v894_v36, %v893_v2  ;;  %v2726_v42 = vpop.f32.mrb[60].mxu0 }
 0x162   : > { %v698_v45 = vpop.f32.mrb[61].mxu0 }
 0x163   : > { %v699_v49 = vadd.f32 %v698_v45, %v2602_v37  ;;  %v2732_v50 = vpop.f32.mrb[62].mxu0  ;;  %2215 = vmatprep.mubr.bf16.mxu1 %v960_v38 }
 0x164   : > { %v702_v52 = vpop.f32.mrb[63].mxu0 }
 0x165   : > { %v703_v54 = vadd.f32 %v702_v52, %v2602_v37  ;;  %v895_v58 = vmax.f32 %v699_v49, 0.0 }
 0x167   : > { %v896_v61 = vmax.f32 %v703_v54, 0.0 }
 0x169   : > { %v961_v63 = vpack.c.bf16 %v896_v61, %v895_v58  ;;  %v2738_v0 = vpop.f32.mrb[64].mxu0 }
 0x16a   : > { %v708_v3 = vpop.f32.mrb[65].mxu0 }
 0x16b   : > { %v709_v8 = vadd.f32 %v708_v3, %v2602_v37  ;;  %v2744_v9 = vpop.f32.mrb[66].mxu0  ;;  %2216 = vmatmul.mubr.bf16.gmra.mrb[24].mxu1 %v961_v63 }
 0x16c   : > { %v712_v11 = vpop.f32.mrb[67].mxu0 }
 0x16d   : > { %v713_v14 = vadd.f32 %v712_v11, %v2602_v37  ;;  %v897_v16 = vmax.f32 %v709_v8, 0.0 }
 0x16f   : > { %v898_v19 = vmax.f32 %v713_v14, 0.0 }
 0x171   : > { %v962_v20 = vpack.c.bf16 %v898_v19, %v897_v16  ;;  %v2750_v22 = vpop.f32.mrb[68].mxu0 }
 0x172   : > { %v718_v24 = vpop.f32.mrb[69].mxu0 }
 0x173   : > { %v719_v25 = vadd.f32 %v718_v24, %v2602_v37  ;;  %v2753_v27 = vpop.f32.mrb[70].mxu0  ;;  %2219 = vmatprep.mubr.bf16.mxu1 %v962_v20 }
 0x174   : > { %v722_v31 = vpop.f32.mrb[71].mxu0 }
 0x175   : > { %v723_v33 = vadd.f32 %v722_v31, %v2602_v37  ;;  %v899_v34 = vmax.f32 %v719_v25, 0.0 }
 0x177   : > { %v900_v2 = vmax.f32 %v723_v33, 0.0 }
 0x179   : > { %v963_v36 = vpack.c.bf16 %v900_v2, %v899_v34  ;;  %v2756_v38 = vpop.f32.mrb[72].mxu0 }
 0x17a   : > { %v728_v45 = vpop.f32.mrb[73].mxu0 }
 0x17b   : > { %v729_v47 = vadd.f32 %v728_v45, %v2602_v37  ;;  %v2759_v49 = vpop.f32.mrb[74].mxu0  ;;  %2220 = vmatmul.mubr.bf16.gmra.mrb[28].mxu1 %v963_v36 }
 0x17c   : > { %v732_v52 = vpop.f32.mrb[75].mxu0 }
 0x17d   : > { %v733_v54 = vadd.f32 %v732_v52, %v2602_v37  ;;  %v901_v56 = vmax.f32 %v729_v47, 0.0 }
 0x17f   : > { %v902_v58 = vmax.f32 %v733_v54, 0.0 }
 0x181   : > { %v964_v61 = vpack.c.bf16 %v902_v58, %v901_v56  ;;  %v2762_v63 = vpop.f32.mrb[76].mxu0 }
 0x182   : > { %v738_v3 = vpop.f32.mrb[77].mxu0 }
 0x183   : > { %v739_v4 = vadd.f32 %v738_v3, %v2602_v37  ;;  %v2765_v8 = vpop.f32.mrb[78].mxu0  ;;  %2223 = vmatprep.mubr.bf16.mxu1 %v964_v61 }
 0x184   : > { %v742_v11 = vpop.f32.mrb[79].mxu0 }
 0x185   : > { %v743_v14 = vadd.f32 %v742_v11, %v2602_v37  ;;  %v903_v15 = vmax.f32 %v739_v4, 0.0 }
 0x187   : > { %v904_v16 = vmax.f32 %v743_v14, 0.0 }
 0x189   : > { %v965_v19 = vpack.c.bf16 %v904_v16, %v903_v15  ;;  %v2768_v20 = vpop.f32.mrb[80].mxu0 }
 0x18a   : > { %3252 = vst [vmem:[#allocation2_spill] sm:$0xff] %v2768_v20  ;;  %v748_v24 = vpop.f32.mrb[81].mxu0 }
 0x18b   : > { %v749_v25 = vadd.f32 %v748_v24, %v2602_v37  ;;  %v2771_v31 = vpop.f32.mrb[82].mxu0  ;;  %2224 = vmatmul.mubr.bf16.gmra.mrb[32].mxu1 %v965_v19 }
 0x18c   : > { %3253 = vst [vmem:[#allocation3_spill] sm:$0xff] %v2771_v31  ;;  %v752_v33 = vpop.f32.mrb[83].mxu0 }
 0x18d   : > { %v753_v34 = vadd.f32 %v752_v33, %v2602_v37  ;;  %v905_v2 = vmax.f32 %v749_v25, 0.0 }
 0x18f   : > { %v906_v36 = vmax.f32 %v753_v34, 0.0 }
 0x191   : > { %v966_v45 = vpack.c.bf16 %v906_v36, %v905_v2  ;;  %v2774_v47 = vpop.f32.mrb[84].mxu0 }
 0x192   : > { %3254 = vst [vmem:[#allocation4_spill] sm:$0xff] %v2774_v47  ;;  %v758_v52 = vpop.f32.mrb[85].mxu0 }
 0x193   : > { %v759_v54 = vadd.f32 %v758_v52, %v2602_v37  ;;  %v2777_v56 = vpop.f32.mrb[86].mxu0  ;;  %2227 = vmatprep.mubr.bf16.mxu1 %v966_v45 }
 0x194   : > { %3255 = vst [vmem:[#allocation5_spill] sm:$0xff] %v2777_v56  ;;  %v762_v58 = vpop.f32.mrb[87].mxu0 }
 0x195   : > { %v763_v61 = vadd.f32 %v762_v58, %v2602_v37  ;;  %v907_v3 = vmax.f32 %v759_v54, 0.0 }
 0x197   : > { %v908_v4 = vmax.f32 %v763_v61, 0.0 }
 0x199   : > { %v967_v11 = vpack.c.bf16 %v908_v4, %v907_v3  ;;  %v2780_v14 = vpop.f32.mrb[88].mxu0 }
 0x19a   : > { %3256 = vst [vmem:[#allocation6_spill] sm:$0xff] %v2780_v14  ;;  %v768_v15 = vpop.f32.mrb[89].mxu0 }
 0x19b   : > { %v769_v16 = vadd.f32 %v768_v15, %v2602_v37  ;;  %v2783_v19 = vpop.f32.mrb[90].mxu0  ;;  %2228 = vmatmul.mubr.bf16.gmra.mrb[36].mxu1 %v967_v11 }
 0x19c   : > { %3257 = vst [vmem:[#allocation7_spill] sm:$0xff] %v2783_v19  ;;  %v772_v24 = vpop.f32.mrb[91].mxu0 }
 0x19d   : > { %v773_v25 = vadd.f32 %v772_v24, %v2602_v37  ;;  %v909_v33 = vmax.f32 %v769_v16, 0.0 }
 0x19f   : > { %v910_v34 = vmax.f32 %v773_v25, 0.0 }
 0x1a1   : > { %v968_v2 = vpack.c.bf16 %v910_v34, %v909_v33  ;;  %v2786_v36 = vpop.f32.mrb[92].mxu0 }
 0x1a2   : > { %3258 = vst [vmem:[#allocation8_spill] sm:$0xff] %v2786_v36  ;;  %v778_v45 = vpop.f32.mrb[93].mxu0 }
 0x1a3   : > { %v779_v52 = vadd.f32 %v778_v45, %v2602_v37  ;;  %v2789_v54 = vpop.f32.mrb[94].mxu0  ;;  %2231 = vmatprep.mubr.bf16.mxu1 %v968_v2 }
 0x1a4   : > { %3259 = vst [vmem:[#allocation9_spill] sm:$0xff] %v2789_v54  ;;  %v782_v58 = vpop.f32.mrb[95].mxu0 }
 0x1a5   : > { %v783_v61 = vadd.f32 %v782_v58, %v2602_v37  ;;  %v911_v3 = vmax.f32 %v779_v52, 0.0 }
 0x1a7   : > { %v912_v4 = vmax.f32 %v783_v61, 0.0 }
 0x1a9   : > { %v969_v11 = vpack.c.bf16 %v912_v4, %v911_v3  ;;  %v2792_v15 = vpop.f32.mrb[96].mxu0 }
 0x1aa   : > { %3260 = vst [vmem:[#allocation10_spill] sm:$0xff] %v2792_v15  ;;  %v788_v24 = vpop.f32.mrb[97].mxu0 }
 0x1ab   : > { %v789_v16 = vadd.f32 %v788_v24, %v2602_v37  ;;  %v2795_v25 = vpop.f32.mrb[98].mxu0  ;;  %2232 = vmatmul.mubr.bf16.gmra.mrb[40].mxu1 %v969_v11 }
 0x1ac   : > { %3261 = vst [vmem:[#allocation11_spill] sm:$0xff] %v2795_v25  ;;  %v792_v33 = vpop.f32.mrb[99].mxu0 }
 0x1ad   : > { %v793_v34 = vadd.f32 %v792_v33, %v2602_v37  ;;  %v913_v45 = vmax.f32 %v789_v16, 0.0 }
 0x1af   : > { %v914_v19 = vmax.f32 %v793_v34, 0.0 }
 0x1b1   : > { %v970_v2 = vpack.c.bf16 %v914_v19, %v913_v45  ;;  %v2798_v54 = vpop.f32.mrb[100].mxu0 }
 0x1b2   : > { %3262 = vst [vmem:[#allocation12_spill] sm:$0xff] %v2798_v54  ;;  %v798_v58 = vpop.f32.mrb[101].mxu0 }
 0x1b3   : > { %v799_v52 = vadd.f32 %v798_v58, %v2602_v37  ;;  %v2801_v61 = vpop.f32.mrb[102].mxu0  ;;  %2235 = vmatprep.mubr.bf16.mxu1 %v970_v2 }
 0x1b4   : > { %3263 = vst [vmem:[#allocation13_spill] sm:$0xff] %v2801_v61  ;;  %v802_v3 = vpop.f32.mrb[103].mxu0 }
 0x1b5   : > { %v803_v4 = vadd.f32 %v802_v3, %v2602_v37  ;;  %v915_v24 = vmax.f32 %v799_v52, 0.0 }
 0x1b7   : > { %v916_v25 = vmax.f32 %v803_v4, 0.0 }
 0x1b9   : > { %v971_v11 = vpack.c.bf16 %v916_v25, %v915_v24  ;;  %v2804_v15 = vpop.f32.mrb[104].mxu0 }
 0x1ba   : > { %3264 = vst [vmem:[#allocation14_spill] sm:$0xff] %v2804_v15  ;;  %v808_v33 = vpop.f32.mrb[105].mxu0 }
 0x1bb   : > { %v809_v16 = vadd.f32 %v808_v33, %v2602_v37  ;;  %v2807_v19 = vpop.f32.mrb[106].mxu0  ;;  %2236 = vmatmul.mubr.bf16.gmra.mrb[44].mxu1 %v971_v11 }
 0x1bc   : > { %3265 = vst [vmem:[#allocation15_spill] sm:$0xff] %v2807_v19  ;;  %v812_v34 = vpop.f32.mrb[107].mxu0 }
 0x1bd   : > { %v813_v45 = vadd.f32 %v812_v34, %v2602_v37  ;;  %v917_v58 = vmax.f32 %v809_v16, 0.0 }
 0x1bf   : > { %v918_v61 = vmax.f32 %v813_v45, 0.0 }
 0x1c1   : > { %v972_v2 = vpack.c.bf16 %v918_v61, %v917_v58  ;;  %v2810_v54 = vpop.f32.mrb[108].mxu0 }
 0x1c2   : > { %3266 = vst [vmem:[#allocation16_spill] sm:$0xff] %v2810_v54  ;;  %v818_v3 = vpop.f32.mrb[109].mxu0 }
 0x1c3   : > { %v819_v52 = vadd.f32 %v818_v3, %v2602_v37  ;;  %v2813_v25 = vpop.f32.mrb[110].mxu0  ;;  %2239 = vmatprep.mubr.bf16.mxu1 %v972_v2 }
 0x1c4   : > { %3267 = vst [vmem:[#allocation17_spill] sm:$0xff] %v2813_v25  ;;  %v822_v4 = vpop.f32.mrb[111].mxu0 }
 0x1c5   : > { %v823_v24 = vadd.f32 %v822_v4, %v2602_v37  ;;  %v919_v33 = vmax.f32 %v819_v52, 0.0 }
 0x1c7   : > { %v920_v19 = vmax.f32 %v823_v24, 0.0 }
 0x1c9   : > { %v973_v11 = vpack.c.bf16 %v920_v19, %v919_v33  ;;  %v2816_v15 = vpop.f32.mrb[112].mxu0 }
 0x1ca   : > { %3268 = vst [vmem:[#allocation18_spill] sm:$0xff] %v2816_v15  ;;  %v828_v34 = vpop.f32.mrb[113].mxu0 }
 0x1cb   : > { %v829_v16 = vadd.f32 %v828_v34, %v2602_v37  ;;  %v2819_v61 = vpop.f32.mrb[114].mxu0  ;;  %2240 = vmatmul.mubr.bf16.gmra.mrb[48].mxu1 %v973_v11 }
 0x1cc   : > { %3269 = vst [vmem:[#allocation19_spill] sm:$0xff] %v2819_v61  ;;  %v832_v45 = vpop.f32.mrb[115].mxu0 }
 0x1cd   : > { %v833_v58 = vadd.f32 %v832_v45, %v2602_v37  ;;  %v921_v3 = vmax.f32 %v829_v16, 0.0 }
 0x1cf   : > { %v922_v25 = vmax.f32 %v833_v58, 0.0 }
 0x1d1   : > { %v974_v2 = vpack.c.bf16 %v922_v25, %v921_v3  ;;  %v2822_v54 = vpop.f32.mrb[116].mxu0  ;;  %v2836_v3 = vld [vmem:[%s3248_s4] ss:$0 sm:$0xff] }
 0x1d2   : > { %3270 = vst [vmem:[#allocation20_spill] sm:$0xff] %v2822_v54  ;;  %v838_v4 = vpop.f32.mrb[117].mxu0 }
 0x1d3   : > { %v839_v52 = vadd.f32 %v838_v4, %v2602_v37  ;;  %v2825_v19 = vpop.f32.mrb[118].mxu0  ;;  %2243 = vmatprep.mubr.bf16.mxu1 %v974_v2 }
 0x1d4   : > { %3271 = vst [vmem:[#allocation21_spill] sm:$0xff] %v2825_v19  ;;  %v842_v24 = vpop.f32.mrb[119].mxu0 }
 0x1d5   : > { %v843_v33 = vadd.f32 %v842_v24, %v2602_v37  ;;  %v923_v34 = vmax.f32 %v839_v52, 0.0 }
 0x1d7   : > { %v924_v61 = vmax.f32 %v843_v33, 0.0 }
 0x1d9   : > { %v975_v11 = vpack.c.bf16 %v924_v61, %v923_v34  ;;  %v2828_v15 = vpop.f32.mrb[120].mxu0 }
 0x1da   : > { %3272 = vst [vmem:[#allocation22_spill] sm:$0xff] %v2828_v15  ;;  %v848_v45 = vpop.f32.mrb[121].mxu0 }
 0x1db   : > { %v849_v16 = vadd.f32 %v848_v45, %v2602_v37  ;;  %v2831_v25 = vpop.f32.mrb[122].mxu0  ;;  %2244 = vmatmul.mubr.bf16.gmra.mrb[52].mxu1 %v975_v11 }
 0x1dc   : > { %3273 = vst [vmem:[#allocation23_spill] sm:$0xff] %v2831_v25  ;;  %v852_v58 = vpop.f32.mrb[123].mxu0 }
 0x1dd   : > { %v853_v2 = vadd.f32 %v852_v58, %v2602_v37  ;;  %v925_v52 = vmax.f32 %v849_v16, 0.0 }
 0x1de   : > { %v2193_v4 = vpop.f32.mrb[0].mxu1 }
 0x1df   : > { %v926_v24 = vmax.f32 %v853_v2, 0.0  ;;  %v1091_v61 = vadd.f32 %v2193_v4, %v2836_v3  ;;  %v1082_v33 = vpop.f32.mrb[1].mxu1 }
 0x1e0   : > { %v1083_v34 = vadd.f32 %v2836_v3, %v1082_v33  ;;  %v2194_v45 = vpop.f32.mrb[2].mxu1 }
 0x1e1   : > { %v976_v15 = vpack.c.bf16 %v926_v24, %v925_v52  ;;  %v1094_v11 = vadd.f32 %v2194_v45, %v2836_v3  ;;  %v2842_v25 = vpop.f32.mrb[124].mxu0  ;;  %v1085_v19 = vpop.f32.mrb[3].mxu1  ;;  %v1327_v36 = vmax.f32 %v1091_v61, 0.0 }
 0x1e2   : > { %3274 = vst [vmem:[#allocation24_spill] sm:$0xff] %v2842_v25  ;;  %v1086_v54 = vadd.f32 %v2836_v3, %v1085_v19  ;;  %v858_v14 = vpop.f32.mrb[125].mxu0  ;;  %v1325_v4 = vmax.f32 %v1083_v34, 0.0 }
 0x1e3   : > { %v1328_v58 = vmax.f32 %v1094_v11, 0.0  ;;  %v859_v16 = vadd.f32 %v858_v14, %v2602_v37  ;;  %v2846_v2 = vpop.f32.mrb[126].mxu0  ;;  %2247 = vmatprep.mubr.bf16.mxu1 %v976_v15 }
 0x1e4   : > { %3275 = vst [vmem:[#allocation25_spill] sm:$0xff] %v2846_v2  ;;  %v1326_v31 = vmax.f32 %v1086_v54, 0.0  ;;  %v862_v33 = vpop.f32.mrb[127].mxu0 }
 0x1e5   : > { %v1405_v56 = vpack.c.bf16 %v1328_v58, %v1327_v36  ;;  %v863_v52 = vadd.f32 %v862_v33, %v2602_v37  ;;  %v927_v45 = vmax.f32 %v859_v16, 0.0 }
 0x1e6   : > { %v1404_v24 = vpack.c.bf16 %v1326_v31, %v1325_v4 }
 0x1e7   : > { %v928_v25 = vmax.f32 %v863_v52, 0.0 }
 0x1e9   : > { %v977_v20 = vpack.c.bf16 %v928_v25, %v927_v45  ;;  %v2189_v47 = vpop.f32.mrb[128].mxu0 }
 0x1ea   : > { %v1075_v19 = vadd.f32 %v2189_v47, %v2836_v3  ;;  %v1066_v61 = vpop.f32.mrb[129].mxu0 }
 0x1eb   : > { %v1067_v11 = vadd.f32 %v2836_v3, %v1066_v61  ;;  %v2190_v14 = vpop.f32.mrb[130].mxu0  ;;  %2248 = vmatmul.mubr.bf16.gmra.mrb[56].mxu1 %v977_v20 }
 0x1ec   : > { %v1078_v15 = vadd.f32 %v2190_v14, %v2836_v3  ;;  %v1069_v34 = vpop.f32.mrb[131].mxu0  ;;  %v1323_v36 = vmax.f32 %v1075_v19, 0.0 }
 0x1ed   : > { %v1070_v54 = vadd.f32 %v2836_v3, %v1069_v34  ;;  %v1321_v31 = vmax.f32 %v1067_v11, 0.0 }
 0x1ee   : > { %v1324_v58 = vmax.f32 %v1078_v15, 0.0  ;;  %v2197_v37 = vpop.f32.mrb[4].mxu1 }
 0x1ef   : > { %v1322_v16 = vmax.f32 %v1070_v54, 0.0  ;;  %v1107_v25 = vadd.f32 %v2197_v37, %v2836_v3  ;;  %v1098_v4 = vpop.f32.mrb[5].mxu1 }
 0x1f0   : > { %v1403_v33 = vpack.c.bf16 %v1324_v58, %v1323_v36  ;;  %v1099_v47 = vadd.f32 %v2836_v3, %v1098_v4  ;;  %v2198_v52 = vpop.f32.mrb[6].mxu1 }
 0x1f1   : > { %v1402_v45 = vpack.c.bf16 %v1322_v16, %v1321_v31  ;;  %v1110_v20 = vadd.f32 %v2198_v52, %v2836_v3  ;;  %v1101_v61 = vpop.f32.mrb[7].mxu1  ;;  %v1331_v2 = vmax.f32 %v1107_v25, 0.0 }
 0x1f2   : > { %v1102_v14 = vadd.f32 %v2836_v3, %v1101_v61  ;;  %v1329_v19 = vmax.f32 %v1099_v47, 0.0 }
 0x1f3   : > { %v1332_v34 = vmax.f32 %v1110_v20, 0.0  ;;  %2267 = vmatprep.mubr.bf16.mxu1 %v1402_v45 }
 0x1f4   : > { %v1330_v15 = vmax.f32 %v1102_v14, 0.0  ;;  %2268 = vmatmul.mubr.bf16.vlgmr.msra.gmra.mrb[60].mxu1 %v1403_v33 }
 0x1f5   : > { %v1407_v11 = vpack.c.bf16 %v1332_v34, %v1331_v2  ;;  %2271 = vmatprep.mubr.bf16.mxu1 %v1404_v24 }
 0x1f6   : > { %v1406_v54 = vpack.c.bf16 %v1330_v15, %v1329_v19 }
 0x1fc   : > { %2272 = vmatmul.mubr.bf16.gmra.mrb[64].mxu1 %v1405_v56 }
 0x1fd   : > { %2275 = vmatprep.mubr.bf16.mxu1 %v1406_v54 }
 0x1fe   : > { %v2201_v36 = vpop.f32.mrb[8].mxu1 }
 0x1ff   : > { %v1123_v58 = vadd.f32 %v2201_v36, %v2836_v3  ;;  %v1114_v37 = vpop.f32.mrb[9].mxu1 }
 0x200   : > { %v1115_v31 = vadd.f32 %v2836_v3, %v1114_v37  ;;  %v2202_v16 = vpop.f32.mrb[10].mxu1 }
 0x201   : > { %v1126_v4 = vadd.f32 %v2202_v16, %v2836_v3  ;;  %v1117_v25 = vpop.f32.mrb[11].mxu1  ;;  %v1335_v47 = vmax.f32 %v1123_v58, 0.0 }
 0x202   : > { %v1118_v52 = vadd.f32 %v2836_v3, %v1117_v25  ;;  %v1333_v33 = vmax.f32 %v1115_v31, 0.0 }
 0x203   : > { %v1336_v45 = vmax.f32 %v1126_v4, 0.0 }
 0x204   : > { %v1334_v2 = vmax.f32 %v1118_v52, 0.0  ;;  %2276 = vmatmul.mubr.bf16.gmra.mrb[68].mxu1 %v1407_v11 }
 0x205   : > { %v1409_v24 = vpack.c.bf16 %v1336_v45, %v1335_v47 }
 0x206   : > { %v1408_v56 = vpack.c.bf16 %v1334_v2, %v1333_v33 }
 0x208   : > { %2279 = vmatprep.mubr.bf16.mxu1 %v1408_v56 }
 0x20c   : > { %2280 = vmatmul.mubr.bf16.gmra.mrb[72].mxu1 %v1409_v24 }
 0x20e   : > { %v2205_v20 = vpop.f32.mrb[12].mxu1 }
 0x20f   : > { %v1139_v61 = vadd.f32 %v2205_v20, %v2836_v3  ;;  %v1130_v14 = vpop.f32.mrb[13].mxu1 }
 0x210   : > { %v1131_v34 = vadd.f32 %v2836_v3, %v1130_v14  ;;  %v2206_v19 = vpop.f32.mrb[14].mxu1 }
 0x211   : > { %v1142_v15 = vadd.f32 %v2206_v19, %v2836_v3  ;;  %v1133_v54 = vpop.f32.mrb[15].mxu1  ;;  %v1339_v58 = vmax.f32 %v1139_v61, 0.0 }
 0x212   : > { %v1134_v36 = vadd.f32 %v2836_v3, %v1133_v54  ;;  %v1337_v31 = vmax.f32 %v1131_v34, 0.0 }
 0x213   : > { %v1340_v37 = vmax.f32 %v1142_v15, 0.0 }
 0x214   : > { %v1338_v11 = vmax.f32 %v1134_v36, 0.0 }
 0x215   : > { %v1411_v16 = vpack.c.bf16 %v1340_v37, %v1339_v58 }
 0x216   : > { %v1410_v4 = vpack.c.bf16 %v1338_v11, %v1337_v31 }
 0x218   : > { %2283 = vmatprep.mubr.bf16.mxu1 %v1410_v4 }
 0x219   : > { %2284 = vmatmul.mubr.bf16.gmra.mrb[76].mxu1 %v1411_v16 }
 0x21e   : > { %v2209_v25 = vpop.f32.mrb[16].mxu1 }
 0x21f   : > { %v1155_v52 = vadd.f32 %v2209_v25, %v2836_v3  ;;  %v1146_v47 = vpop.f32.mrb[17].mxu1 }
 0x220   : > { %v1147_v45 = vadd.f32 %v2836_v3, %v1146_v47  ;;  %v2210_v33 = vpop.f32.mrb[18].mxu1 }
 0x221   : > { %v1158_v2 = vadd.f32 %v2210_v33, %v2836_v3  ;;  %v1149_v24 = vpop.f32.mrb[19].mxu1  ;;  %v1343_v20 = vmax.f32 %v1155_v52, 0.0 }
 0x222   : > { %v1150_v56 = vadd.f32 %v2836_v3, %v1149_v24  ;;  %v1341_v14 = vmax.f32 %v1147_v45, 0.0 }
 0x223   : > { %v1344_v61 = vmax.f32 %v1158_v2, 0.0 }
 0x224   : > { %v1342_v34 = vmax.f32 %v1150_v56, 0.0 }
 0x225   : > { %v1413_v19 = vpack.c.bf16 %v1344_v61, %v1343_v20 }
 0x226   : > { %v1412_v15 = vpack.c.bf16 %v1342_v34, %v1341_v14 }
 0x228   : > { %2287 = vmatprep.mubr.bf16.mxu1 %v1412_v15 }
 0x229   : > { %2288 = vmatmul.mubr.bf16.gmra.mrb[80].mxu1 %v1413_v19 }
 0x22e   : > { %v2213_v54 = vpop.f32.mrb[20].mxu1 }
 0x22f   : > { %v1171_v36 = vadd.f32 %v2213_v54, %v2836_v3  ;;  %v1162_v58 = vpop.f32.mrb[21].mxu1 }
 0x230   : > { %v1163_v37 = vadd.f32 %v2836_v3, %v1162_v58  ;;  %v2214_v31 = vpop.f32.mrb[22].mxu1 }
 0x231   : > { %v1174_v11 = vadd.f32 %v2214_v31, %v2836_v3  ;;  %v1165_v16 = vpop.f32.mrb[23].mxu1  ;;  %v1347_v25 = vmax.f32 %v1171_v36, 0.0 }
 0x232   : > { %v1166_v4 = vadd.f32 %v2836_v3, %v1165_v16  ;;  %v1345_v47 = vmax.f32 %v1163_v37, 0.0 }
 0x233   : > { %v1348_v52 = vmax.f32 %v1174_v11, 0.0 }
 0x234   : > { %v1346_v45 = vmax.f32 %v1166_v4, 0.0 }
 0x235   : > { %v1415_v33 = vpack.c.bf16 %v1348_v52, %v1347_v25 }
 0x236   : > { %v1414_v2 = vpack.c.bf16 %v1346_v45, %v1345_v47 }
 0x238   : > { %2291 = vmatprep.mubr.bf16.mxu1 %v1414_v2 }
 0x239   : > { %2292 = vmatmul.mubr.bf16.gmra.mrb[84].mxu1 %v1415_v33 }
 0x23e   : > { %v2217_v24 = vpop.f32.mrb[24].mxu1 }
 0x23f   : > { %v1187_v56 = vadd.f32 %v2217_v24, %v2836_v3  ;;  %v1178_v20 = vpop.f32.mrb[25].mxu1 }
 0x240   : > { %v1179_v61 = vadd.f32 %v2836_v3, %v1178_v20  ;;  %v2218_v14 = vpop.f32.mrb[26].mxu1 }
 0x241   : > { %v1190_v34 = vadd.f32 %v2218_v14, %v2836_v3  ;;  %v1181_v19 = vpop.f32.mrb[27].mxu1  ;;  %v1351_v54 = vmax.f32 %v1187_v56, 0.0 }
 0x242   : > { %v1182_v15 = vadd.f32 %v2836_v3, %v1181_v19  ;;  %v1349_v58 = vmax.f32 %v1179_v61, 0.0 }
 0x243   : > { %v1352_v36 = vmax.f32 %v1190_v34, 0.0 }
 0x244   : > { %v1350_v37 = vmax.f32 %v1182_v15, 0.0 }
 0x245   : > { %v1417_v31 = vpack.c.bf16 %v1352_v36, %v1351_v54 }
 0x246   : > { %v1416_v11 = vpack.c.bf16 %v1350_v37, %v1349_v58 }
 0x248   : > { %2295 = vmatprep.mubr.bf16.mxu1 %v1416_v11 }
 0x249   : > { %2296 = vmatmul.mubr.bf16.gmra.mrb[88].mxu1 %v1417_v31 }
 0x24e   : > { %v2221_v16 = vpop.f32.mrb[28].mxu1 }
 0x24f   : > { %v1203_v4 = vadd.f32 %v2221_v16, %v2836_v3  ;;  %v1194_v25 = vpop.f32.mrb[29].mxu1 }
 0x250   : > { %v1195_v52 = vadd.f32 %v2836_v3, %v1194_v25  ;;  %v2222_v47 = vpop.f32.mrb[30].mxu1 }
 0x251   : > { %v1206_v45 = vadd.f32 %v2222_v47, %v2836_v3  ;;  %v1197_v33 = vpop.f32.mrb[31].mxu1  ;;  %v1355_v24 = vmax.f32 %v1203_v4, 0.0 }
 0x252   : > { %v1198_v2 = vadd.f32 %v2836_v3, %v1197_v33  ;;  %v1353_v20 = vmax.f32 %v1195_v52, 0.0 }
 0x253   : > { %v1356_v56 = vmax.f32 %v1206_v45, 0.0 }
 0x254   : > { %v1354_v61 = vmax.f32 %v1198_v2, 0.0 }
 0x255   : > { %v1419_v14 = vpack.c.bf16 %v1356_v56, %v1355_v24 }
 0x256   : > { %v1418_v34 = vpack.c.bf16 %v1354_v61, %v1353_v20 }
 0x258   : > { %2299 = vmatprep.mubr.bf16.mxu1 %v1418_v34 }
 0x259   : > { %2300 = vmatmul.mubr.bf16.gmra.mrb[92].mxu1 %v1419_v14 }
 0x25e   : > { %v2225_v19 = vpop.f32.mrb[32].mxu1 }
 0x25f   : > { %v1219_v15 = vadd.f32 %v2225_v19, %v2836_v3  ;;  %v1210_v54 = vpop.f32.mrb[33].mxu1 }
 0x260   : > { %v1211_v36 = vadd.f32 %v2836_v3, %v1210_v54  ;;  %v2226_v58 = vpop.f32.mrb[34].mxu1 }
 0x261   : > { %v1222_v37 = vadd.f32 %v2226_v58, %v2836_v3  ;;  %v1213_v31 = vpop.f32.mrb[35].mxu1  ;;  %v1359_v16 = vmax.f32 %v1219_v15, 0.0 }
 0x262   : > { %v1214_v11 = vadd.f32 %v2836_v3, %v1213_v31  ;;  %v1357_v25 = vmax.f32 %v1211_v36, 0.0 }
 0x263   : > { %v1360_v4 = vmax.f32 %v1222_v37, 0.0 }
 0x264   : > { %v1358_v52 = vmax.f32 %v1214_v11, 0.0 }
 0x265   : > { %v1421_v47 = vpack.c.bf16 %v1360_v4, %v1359_v16 }
 0x266   : > { %v1420_v45 = vpack.c.bf16 %v1358_v52, %v1357_v25 }
 0x268   : > { %2303 = vmatprep.mubr.bf16.mxu1 %v1420_v45 }
 0x269   : > { %2304 = vmatmul.mubr.bf16.gmra.mrb[96].mxu1 %v1421_v47 }
 0x26e   : > { %v2229_v33 = vpop.f32.mrb[36].mxu1 }
 0x26f   : > { %v1235_v2 = vadd.f32 %v2229_v33, %v2836_v3  ;;  %v1226_v24 = vpop.f32.mrb[37].mxu1 }
 0x270   : > { %v1227_v56 = vadd.f32 %v2836_v3, %v1226_v24  ;;  %v2230_v20 = vpop.f32.mrb[38].mxu1 }
 0x271   : > { %v1238_v61 = vadd.f32 %v2230_v20, %v2836_v3  ;;  %v1229_v14 = vpop.f32.mrb[39].mxu1  ;;  %v1363_v19 = vmax.f32 %v1235_v2, 0.0 }
 0x272   : > { %v1230_v34 = vadd.f32 %v2836_v3, %v1229_v14  ;;  %v1361_v54 = vmax.f32 %v1227_v56, 0.0 }
 0x273   : > { %v1364_v15 = vmax.f32 %v1238_v61, 0.0 }
 0x274   : > { %v1362_v36 = vmax.f32 %v1230_v34, 0.0 }
 0x275   : > { %v1423_v58 = vpack.c.bf16 %v1364_v15, %v1363_v19 }
 0x276   : > { %v1422_v37 = vpack.c.bf16 %v1362_v36, %v1361_v54 }
 0x278   : > { %2307 = vmatprep.mubr.bf16.mxu1 %v1422_v37 }
 0x279   : > { %2308 = vmatmul.mubr.bf16.gmra.mrb[100].mxu1 %v1423_v58 }
 0x27e   : > { %v2233_v31 = vpop.f32.mrb[40].mxu1 }
 0x27f   : > { %v1251_v11 = vadd.f32 %v2233_v31, %v2836_v3  ;;  %v1242_v16 = vpop.f32.mrb[41].mxu1 }
 0x280   : > { %v1243_v4 = vadd.f32 %v2836_v3, %v1242_v16  ;;  %v2234_v25 = vpop.f32.mrb[42].mxu1 }
 0x281   : > { %v1254_v52 = vadd.f32 %v2234_v25, %v2836_v3  ;;  %v1245_v47 = vpop.f32.mrb[43].mxu1  ;;  %v1367_v33 = vmax.f32 %v1251_v11, 0.0 }
 0x282   : > { %v1246_v45 = vadd.f32 %v2836_v3, %v1245_v47  ;;  %v1365_v24 = vmax.f32 %v1243_v4, 0.0 }
 0x283   : > { %v1368_v2 = vmax.f32 %v1254_v52, 0.0 }
 0x284   : > { %v1366_v56 = vmax.f32 %v1246_v45, 0.0 }
 0x285   : > { %v1425_v20 = vpack.c.bf16 %v1368_v2, %v1367_v33 }
 0x286   : > { %v1424_v61 = vpack.c.bf16 %v1366_v56, %v1365_v24 }
 0x288   : > { %2311 = vmatprep.mubr.bf16.mxu1 %v1424_v61 }
 0x289   : > { %2312 = vmatmul.mubr.bf16.gmra.mrb[104].mxu1 %v1425_v20 }
 0x28e   : > { %v2237_v14 = vpop.f32.mrb[44].mxu1 }
 0x28f   : > { %v1267_v34 = vadd.f32 %v2237_v14, %v2836_v3  ;;  %v1258_v19 = vpop.f32.mrb[45].mxu1 }
 0x290   : > { %v1259_v15 = vadd.f32 %v2836_v3, %v1258_v19  ;;  %v2238_v54 = vpop.f32.mrb[46].mxu1 }
 0x291   : > { %v1270_v36 = vadd.f32 %v2238_v54, %v2836_v3  ;;  %v1261_v58 = vpop.f32.mrb[47].mxu1  ;;  %v1371_v31 = vmax.f32 %v1267_v34, 0.0 }
 0x292   : > { %v1262_v37 = vadd.f32 %v2836_v3, %v1261_v58  ;;  %v1369_v16 = vmax.f32 %v1259_v15, 0.0 }
 0x293   : > { %v1372_v11 = vmax.f32 %v1270_v36, 0.0 }
 0x294   : > { %v1370_v4 = vmax.f32 %v1262_v37, 0.0 }
 0x295   : > { %v1427_v25 = vpack.c.bf16 %v1372_v11, %v1371_v31 }
 0x296   : > { %v1426_v52 = vpack.c.bf16 %v1370_v4, %v1369_v16 }
 0x298   : > { %2315 = vmatprep.mubr.bf16.mxu1 %v1426_v52 }
 0x299   : > { %2316 = vmatmul.mubr.bf16.gmra.mrb[108].mxu1 %v1427_v25 }
 0x29e   : > { %v2241_v47 = vpop.f32.mrb[48].mxu1 }
 0x29f   : > { %v1283_v45 = vadd.f32 %v2241_v47, %v2836_v3  ;;  %v1274_v33 = vpop.f32.mrb[49].mxu1 }
 0x2a0   : > { %v1275_v2 = vadd.f32 %v2836_v3, %v1274_v33  ;;  %v2242_v24 = vpop.f32.mrb[50].mxu1 }
 0x2a1   : > { %v1286_v56 = vadd.f32 %v2242_v24, %v2836_v3  ;;  %v1277_v20 = vpop.f32.mrb[51].mxu1  ;;  %v1375_v14 = vmax.f32 %v1283_v45, 0.0 }
 0x2a2   : > { %v1278_v61 = vadd.f32 %v2836_v3, %v1277_v20  ;;  %v1373_v19 = vmax.f32 %v1275_v2, 0.0 }
 0x2a3   : > { %v1376_v34 = vmax.f32 %v1286_v56, 0.0 }
 0x2a4   : > { %v1374_v15 = vmax.f32 %v1278_v61, 0.0 }
 0x2a5   : > { %v1429_v54 = vpack.c.bf16 %v1376_v34, %v1375_v14 }
 0x2a6   : > { %v1428_v36 = vpack.c.bf16 %v1374_v15, %v1373_v19 }
 0x2a8   : > { %2319 = vmatprep.mubr.bf16.mxu1 %v1428_v36 }
 0x2a9   : > { %2320 = vmatmul.mubr.bf16.gmra.mrb[112].mxu1 %v1429_v54 }
 0x2ae   : > { %v2245_v58 = vpop.f32.mrb[52].mxu1 }
 0x2af   : > { %v1299_v37 = vadd.f32 %v2245_v58, %v2836_v3  ;;  %v1290_v31 = vpop.f32.mrb[53].mxu1 }
 0x2b0   : > { %v1291_v11 = vadd.f32 %v2836_v3, %v1290_v31  ;;  %v2246_v16 = vpop.f32.mrb[54].mxu1 }
 0x2b1   : > { %v1302_v4 = vadd.f32 %v2246_v16, %v2836_v3  ;;  %v1293_v25 = vpop.f32.mrb[55].mxu1  ;;  %v1379_v47 = vmax.f32 %v1299_v37, 0.0 }
 0x2b2   : > { %v1294_v52 = vadd.f32 %v2836_v3, %v1293_v25  ;;  %v1377_v33 = vmax.f32 %v1291_v11, 0.0 }
 0x2b3   : > { %v1380_v45 = vmax.f32 %v1302_v4, 0.0  ;;  %v2912_v4 = vld [vmem:[%s3250_s6] ss:$0 sm:$0xff] }
 0x2b4   : > { %v1378_v2 = vmax.f32 %v1294_v52, 0.0 }
 0x2b5   : > { %v1431_v24 = vpack.c.bf16 %v1380_v45, %v1379_v47  ;;  %v557_v47 = vadd.f32 %v2617_v53, %v2525_v48  ;;  %v551_v53 = vadd.f32 %v2610_v46, %v2525_v48 }
 0x2b6   : > { %v1430_v56 = vpack.c.bf16 %v1378_v2, %v1377_v33 }
 0x2b8   : > { %2323 = vmatprep.mubr.bf16.mxu1 %v1430_v56  ;;  %v561_v56 = vadd.f32 %v2620_v57, %v2525_v48 }
 0x2b9   : > { %2324 = vmatmul.mubr.bf16.gmra.mrb[116].mxu1 %v1431_v24 }
 0x2be   : > { %v2249_v20 = vpop.f32.mrb[56].mxu1 }
 0x2bf   : > { %v1315_v61 = vadd.f32 %v2249_v20, %v2836_v3  ;;  %v1306_v14 = vpop.f32.mrb[57].mxu1 }
 0x2c0   : > { %v1307_v34 = vadd.f32 %v2836_v3, %v1306_v14  ;;  %v2250_v19 = vpop.f32.mrb[58].mxu1 }
 0x2c1   : > { %v1318_v15 = vadd.f32 %v2250_v19, %v2836_v3  ;;  %v1309_v54 = vpop.f32.mrb[59].mxu1  ;;  %v1383_v58 = vmax.f32 %v1315_v61, 0.0 }
 0x2c2   : > { %v1310_v36 = vadd.f32 %v2836_v3, %v1309_v54  ;;  %v1381_v31 = vmax.f32 %v1307_v34, 0.0  ;;  %v547_v3 = vadd.f32 %v2607_v40, %v2525_v48 }
 0x2c3   : > { %v1384_v37 = vmax.f32 %v1318_v15, 0.0 }
 0x2c4   : > { %v1382_v11 = vmax.f32 %v1310_v36, 0.0 }
 0x2c5   : > { %v1433_v16 = vpack.c.bf16 %v1384_v37, %v1383_v58  ;;  %v577_v37 = vadd.f32 %v2637_v13, %v2525_v48 }
 0x2c6   : > { %v1432_v25 = vpack.c.bf16 %v1382_v11, %v1381_v31 }
 0x2c7   : > { %v2269_v52 = vpop.f32.mrb[60].mxu1 }
 0x2c8   : > { %v1531_v45 = vadd.f32 %v2269_v52, %v2912_v4  ;;  %v1522_v33 = vpop.f32.mrb[61].mxu1  ;;  %2327 = vmatprep.mubr.bf16.mxu1 %v1432_v25 }
 0x2c9   : > { %v1523_v2 = vadd.f32 %v2912_v4, %v1522_v33  ;;  %v2270_v24 = vpop.f32.mrb[62].mxu1  ;;  %2328 = vmatmul.mubr.bf16.gmra.mrb[120].mxu1 %v1433_v16  ;;  %v567_v16 = vadd.f32 %v2627_v1, %v2525_v48 }
 0x2ca   : > { %v1779_v20 = vadd.f32 %v1531_v45, %v557_v47  ;;  %v1534_v61 = vadd.f32 %v2270_v24, %v2912_v4  ;;  %v1525_v14 = vpop.f32.mrb[63].mxu1  ;;  %v581_v47 = vadd.f32 %v2640_v18, %v2525_v48 }
 0x2cb   : > { %v1777_v40 = vadd.f32 %v1523_v2, %v547_v3  ;;  %v1526_v57 = vadd.f32 %v2912_v4, %v1525_v14  ;;  %v571_v3 = vadd.f32 %v2630_v6, %v2525_v48 }
 0x2cc   : > { %v1843_v34 = vmax.f32 %v1779_v20, 0.0  ;;  %v1780_v19 = vadd.f32 %v1534_v61, %v561_v56 }
 0x2cd   : > { %v1841_v15 = vmax.f32 %v1777_v40, 0.0  ;;  %v1778_v54 = vadd.f32 %v1526_v57, %v551_v53  ;;  %v597_v40 = vadd.f32 %v2654_v35, %v2525_v48 }
 0x2ce   : > { %1908 = vst.msk [vmem:[%s2930_s15 + $0x10] sm:$0xff] %vm1905_vm1, %v1843_v34  ;;  %v1844_v46 = vmax.f32 %v1780_v19, 0.0  ;;  %v587_v34 = vadd.f32 %v2647_v26, %v2525_v48 }
 0x2cf   : > { %1906 = vst.msk [vmem:[%s2930_s15] sm:$0xff] %vm1905_vm1, %v1841_v15  ;;  %v1842_v36 = vmax.f32 %v1778_v54, 0.0  ;;  %v2273_v58 = vpop.f32.mrb[64].mxu1  ;;  %v601_v54 = vadd.f32 %v2657_v39, %v2525_v48 }
 0x2d0   : > { %1909 = vst.msk [vmem:[%s2930_s15 + $0x18] sm:$0xff] %vm1905_vm1, %v1844_v46  ;;  %v1547_v31 = vadd.f32 %v2273_v58, %v2912_v4  ;;  %v1538_v11 = vpop.f32.mrb[65].mxu1  ;;  %v591_v58 = vadd.f32 %v2650_v30, %v2525_v48 }
 0x2d1   : > { %1907 = vst.msk [vmem:[%s2930_s15 + $0x8] sm:$0xff] %vm1905_vm1, %v1842_v36  ;;  %v1539_v25 = vadd.f32 %v2912_v4, %v1538_v11  ;;  %v2274_v52 = vpop.f32.mrb[66].mxu1 }
 0x2d2   : > { %v1783_v45 = vadd.f32 %v1547_v31, %v577_v37  ;;  %v1550_v13 = vadd.f32 %v2274_v52, %v2912_v4  ;;  %v1541_v33 = vpop.f32.mrb[67].mxu1 }
 0x2d3   : > { %v1781_v2 = vadd.f32 %v1539_v25, %v567_v16  ;;  %v1542_v1 = vadd.f32 %v2912_v4, %v1541_v33  ;;  %v607_v33 = vadd.f32 %v2660_v44, %v2525_v48 }
 0x2d4   : > { %v1847_v24 = vmax.f32 %v1783_v45, 0.0  ;;  %v1784_v56 = vadd.f32 %v1550_v13, %v581_v47  ;;  %v617_v45 = vadd.f32 %v2666_v59, %v2525_v48 }
 0x2d5   : > { %v1845_v20 = vmax.f32 %v1781_v2, 0.0  ;;  %v1782_v61 = vadd.f32 %v1542_v1, %v571_v3  ;;  %v621_v1 = vadd.f32 %v2669_v62, %v2525_v48 }
 0x2d6   : > { %1912 = vst.msk [vmem:[%s2930_s15 + $0x30] sm:$0xff] %vm1905_vm1, %v1847_v24  ;;  %v1848_v14 = vmax.f32 %v1784_v56, 0.0 }
 0x2d7   : > { %1910 = vst.msk [vmem:[%s2930_s15 + $0x20] sm:$0xff] %vm1905_vm1, %v1845_v20  ;;  %v1846_v18 = vmax.f32 %v1782_v61, 0.0  ;;  %v2277_v53 = vpop.f32.mrb[68].mxu1  ;;  %v611_v20 = vadd.f32 %v2663_v51, %v2525_v48  ;;  %v637_v51 = vadd.f32 %v2678_v17, %v2525_v48 }
 0x2d8   : > { %1913 = vst.msk [vmem:[%s2930_s15 + $0x38] sm:$0xff] %vm1905_vm1, %v1848_v14  ;;  %v1563_v6 = vadd.f32 %v2277_v53, %v2912_v4  ;;  %v1554_v57 = vpop.f32.mrb[69].mxu1 }
 0x2d9   : > { %1911 = vst.msk [vmem:[%s2930_s15 + $0x28] sm:$0xff] %vm1905_vm1, %v1846_v18  ;;  %v1555_v19 = vadd.f32 %v2912_v4, %v1554_v57  ;;  %v2278_v15 = vpop.f32.mrb[70].mxu1 }
 0x2da   : > { %v1787_v46 = vadd.f32 %v1563_v6, %v597_v40  ;;  %v1566_v35 = vadd.f32 %v2278_v15, %v2912_v4  ;;  %v1557_v36 = vpop.f32.mrb[71].mxu1  ;;  %v627_v15 = vadd.f32 %v2672_v7, %v2525_v48 }
 0x2db   : > { %v1785_v37 = vadd.f32 %v1555_v19, %v587_v34  ;;  %v1558_v26 = vadd.f32 %v2912_v4, %v1557_v36 }
 0x2dc   : > { %v1851_v31 = vmax.f32 %v1787_v46, 0.0  ;;  %v1788_v11 = vadd.f32 %v1566_v35, %v601_v54  ;;  %v641_v35 = vadd.f32 %v2681_v21, %v2525_v48 }
 0x2dd   : > { %v1849_v16 = vmax.f32 %v1785_v37, 0.0  ;;  %v1786_v25 = vadd.f32 %v1558_v26, %v591_v58  ;;  %v631_v37 = vadd.f32 %v2675_v10, %v2525_v48  ;;  %v657_v10 = vadd.f32 %v2690_v41, %v2525_v48 }
 0x2de   : > { %1916 = vst.msk [vmem:[%s2930_s15 + $0x50] sm:$0xff] %vm1905_vm1, %v1851_v31  ;;  %v1852_v52 = vmax.f32 %v1788_v11, 0.0 }
 0x2df   : > { %1914 = vst.msk [vmem:[%s2930_s15 + $0x40] sm:$0xff] %vm1905_vm1, %v1849_v16  ;;  %v1850_v39 = vmax.f32 %v1786_v25, 0.0  ;;  %v2281_v47 = vpop.f32.mrb[72].mxu1 }
 0x2e0   : > { %1917 = vst.msk [vmem:[%s2930_s15 + $0x58] sm:$0xff] %vm1905_vm1, %v1852_v52  ;;  %v1579_v30 = vadd.f32 %v2281_v47, %v2912_v4  ;;  %v1570_v13 = vpop.f32.mrb[73].mxu1 }
 0x2e1   : > { %1915 = vst.msk [vmem:[%s2930_s15 + $0x48] sm:$0xff] %vm1905_vm1, %v1850_v39  ;;  %v1571_v3 = vadd.f32 %v2912_v4, %v1570_v13  ;;  %v2282_v2 = vpop.f32.mrb[74].mxu1 }
 0x2e2   : > { %v1791_v59 = vadd.f32 %v1579_v30, %v617_v45  ;;  %v1582_v24 = vadd.f32 %v2282_v2, %v2912_v4  ;;  %v1573_v56 = vpop.f32.mrb[75].mxu1  ;;  %v647_v30 = vadd.f32 %v2684_v28, %v2525_v48 }
 0x2e3   : > { %v1789_v61 = vadd.f32 %v1571_v3, %v607_v33  ;;  %v1574_v44 = vadd.f32 %v2912_v4, %v1573_v56  ;;  %v661_v3 = vadd.f32 %v2693_v43, %v2525_v48 }
 0x2e4   : > { %v1855_v14 = vmax.f32 %v1791_v59, 0.0  ;;  %v1792_v18 = vadd.f32 %v1582_v24, %v621_v1  ;;  %v651_v59 = vadd.f32 %v2687_v32, %v2525_v48  ;;  %v677_v32 = vadd.f32 %v2702_v5, %v2525_v48 }
 0x2e5   : > { %v1853_v53 = vmax.f32 %v1789_v61, 0.0  ;;  %v1790_v40 = vadd.f32 %v1574_v44, %v611_v20 }
 0x2e6   : > { %1920 = vst.msk [vmem:[%s2930_s15 + $0x70] sm:$0xff] %vm1905_vm1, %v1855_v14  ;;  %v1856_v6 = vmax.f32 %v1792_v18, 0.0 }
 0x2e7   : > { %1918 = vst.msk [vmem:[%s2930_s15 + $0x60] sm:$0xff] %vm1905_vm1, %v1853_v53  ;;  %v1854_v62 = vmax.f32 %v1790_v40, 0.0 }
 0x2e8   : > { %1921 = vst.msk [vmem:[%s2930_s15 + $0x78] sm:$0xff] %vm1905_vm1, %v1856_v6  ;;  %v667_v6 = vadd.f32 %v2696_v55, %v2525_v48 }
 0x2e9   : > { %1919 = vst.msk [vmem:[%s2930_s15 + $0x68] sm:$0xff] %vm1905_vm1, %v1854_v62 }
 0x2ec   : > { %v2285_v57 = vpop.f32.mrb[76].mxu1 }
 0x2ed   : > { %v1595_v34 = vadd.f32 %v2285_v57, %v2912_v4  ;;  %v1586_v19 = vpop.f32.mrb[77].mxu1 }
 0x2ee   : > { %v1587_v54 = vadd.f32 %v2912_v4, %v1586_v19  ;;  %v2286_v46 = vpop.f32.mrb[78].mxu1 }
 0x2ef   : > { %v1795_v36 = vadd.f32 %v1595_v34, %v637_v51  ;;  %v1598_v58 = vadd.f32 %v2286_v46, %v2912_v4  ;;  %v1589_v17 = vpop.f32.mrb[79].mxu1  ;;  %v681_v51 = vadd.f32 %v2708_v12, %v2525_v48 }
 0x2f0   : > { %v1793_v26 = vadd.f32 %v1587_v54, %v627_v15  ;;  %v1590_v31 = vadd.f32 %v2912_v4, %v1589_v17  ;;  %v671_v15 = vadd.f32 %v2699_v60, %v2525_v48  ;;  %v697_v60 = vadd.f32 %v2726_v42, %v2525_v48 }
 0x2f1   : > { %v1859_v7 = vmax.f32 %v1795_v36, 0.0  ;;  %v1796_v11 = vadd.f32 %v1598_v58, %v641_v35 }
 0x2f2   : > { %v1857_v16 = vmax.f32 %v1793_v26, 0.0  ;;  %v1794_v25 = vadd.f32 %v1590_v31, %v631_v37 }
 0x2f3   : > { %1924 = vst.msk [vmem:[%s2930_s15 + $0x90] sm:$0xff] %vm1905_vm1, %v1859_v7  ;;  %v1860_v52 = vmax.f32 %v1796_v11, 0.0  ;;  %v687_v7 = vadd.f32 %v2714_v23, %v2525_v48 }
 0x2f4   : > { %1922 = vst.msk [vmem:[%s2930_s15 + $0x80] sm:$0xff] %vm1905_vm1, %v1857_v16  ;;  %v1858_v21 = vmax.f32 %v1794_v25, 0.0  ;;  %v701_v25 = vadd.f32 %v2732_v50, %v2525_v48 }
 0x2f5   : > { %1925 = vst.msk [vmem:[%s2930_s15 + $0x98] sm:$0xff] %vm1905_vm1, %v1860_v52 }
 0x2f6   : > { %1923 = vst.msk [vmem:[%s2930_s15 + $0x88] sm:$0xff] %vm1905_vm1, %v1858_v21 }
 0x2fc   : > { %v2289_v39 = vpop.f32.mrb[80].mxu1 }
 0x2fd   : > { %v1611_v47 = vadd.f32 %v2289_v39, %v2912_v4  ;;  %v1602_v45 = vpop.f32.mrb[81].mxu1  ;;  %v691_v39 = vadd.f32 %v2720_v29, %v2525_v48  ;;  %v717_v29 = vadd.f32 %v2750_v22, %v2525_v48 }
 0x2fe   : > { %v1603_v13 = vadd.f32 %v2912_v4, %v1602_v45  ;;  %v2290_v33 = vpop.f32.mrb[82].mxu1 }
 0x2ff   : > { %v1799_v2 = vadd.f32 %v1611_v47, %v657_v10  ;;  %v1614_v1 = vadd.f32 %v2290_v33, %v2912_v4  ;;  %v1605_v41 = vpop.f32.mrb[83].mxu1 }
 0x300   : > { %v1797_v24 = vadd.f32 %v1603_v13, %v647_v30  ;;  %v1606_v56 = vadd.f32 %v2912_v4, %v1605_v41  ;;  %v707_v41 = vadd.f32 %v2738_v0, %v2525_v48 }
 0x301   : > { %v1863_v28 = vmax.f32 %v1799_v2, 0.0  ;;  %v1800_v20 = vadd.f32 %v1614_v1, %v661_v3 }
 0x302   : > { %v1861_v61 = vmax.f32 %v1797_v24, 0.0  ;;  %v1798_v44 = vadd.f32 %v1606_v56, %v651_v59  ;;  %v721_v56 = vadd.f32 %v2753_v27, %v2525_v48 }
 0x303   : > { %1928 = vst.msk [vmem:[%s2930_s15 + $0xb0] sm:$0xff] %vm1905_vm1, %v1863_v28  ;;  %v1864_v14 = vmax.f32 %v1800_v20, 0.0 }
 0x304   : > { %1926 = vst.msk [vmem:[%s2930_s15 + $0xa0] sm:$0xff] %vm1905_vm1, %v1861_v61  ;;  %v1862_v43 = vmax.f32 %v1798_v44, 0.0  ;;  %v711_v61 = vadd.f32 %v2744_v9, %v2525_v48  ;;  %v737_v9 = vadd.f32 %v2762_v63, %v2525_v48 }
 0x305   : > { %1929 = vst.msk [vmem:[%s2930_s15 + $0xb8] sm:$0xff] %vm1905_vm1, %v1864_v14 }
 0x306   : > { %1927 = vst.msk [vmem:[%s2930_s15 + $0xa8] sm:$0xff] %vm1905_vm1, %v1862_v43 }
 0x30c   : > { %v2293_v18 = vpop.f32.mrb[84].mxu1 }
 0x30d   : > { %v1627_v53 = vadd.f32 %v2293_v18, %v2912_v4  ;;  %v1618_v40 = vpop.f32.mrb[85].mxu1 }
 0x30e   : > { %v1619_v62 = vadd.f32 %v2912_v4, %v1618_v40  ;;  %v2294_v57 = vpop.f32.mrb[86].mxu1 }
 0x30f   : > { %v1803_v34 = vadd.f32 %v1627_v53, %v677_v32  ;;  %v1630_v19 = vadd.f32 %v2294_v57, %v2912_v4  ;;  %v1621_v5 = vpop.f32.mrb[87].mxu1  ;;  %v727_v57 = vadd.f32 %v2756_v38, %v2525_v48 }
 0x310   : > { %v1801_v54 = vadd.f32 %v1619_v62, %v667_v6  ;;  %v1622_v46 = vadd.f32 %v2912_v4, %v1621_v5 }
 0x311   : > { %v1867_v55 = vmax.f32 %v1803_v34, 0.0  ;;  %v1804_v35 = vadd.f32 %v1630_v19, %v681_v51  ;;  %v741_v19 = vadd.f32 %v2765_v8, %v2525_v48 }
 0x312   : > { %v1865_v36 = vmax.f32 %v1801_v54, 0.0  ;;  %v1802_v58 = vadd.f32 %v1622_v46, %v671_v15  ;;  %v731_v54 = vadd.f32 %v2759_v49, %v2525_v48  ;;  %v3276_v49 = vld [vmem:[#allocation4_spill] sm:$0xff] }
 0x313   : > { %1932 = vst.msk [vmem:[%s2930_s15 + $0xd0] sm:$0xff] %vm1905_vm1, %v1867_v55  ;;  %v1868_v17 = vmax.f32 %v1804_v35, 0.0 }
 0x314   : > { %1930 = vst.msk [vmem:[%s2930_s15 + $0xc0] sm:$0xff] %vm1905_vm1, %v1865_v36  ;;  %v1866_v12 = vmax.f32 %v1802_v58, 0.0 }
 0x315   : > { %1933 = vst.msk [vmem:[%s2930_s15 + $0xd8] sm:$0xff] %vm1905_vm1, %v1868_v17 }
 0x316   : > { %1931 = vst.msk [vmem:[%s2930_s15 + $0xc8] sm:$0xff] %vm1905_vm1, %v1866_v12 }
 0x31c   : > { %v2297_v37 = vpop.f32.mrb[88].mxu1 }
 0x31d   : > { %v1643_v26 = vadd.f32 %v2297_v37, %v2912_v4  ;;  %v1634_v31 = vpop.f32.mrb[89].mxu1  ;;  %v757_v37 = vadd.f32 %v3276_v49, %v2525_v48 }
 0x31e   : > { %v1635_v11 = vadd.f32 %v2912_v4, %v1634_v31  ;;  %v2298_v16 = vpop.f32.mrb[90].mxu1  ;;  %v3277_v31 = vld [vmem:[#allocation2_spill] sm:$0xff] }
 0x31f   : > { %v1807_v52 = vadd.f32 %v1643_v26, %v697_v60  ;;  %v1646_v21 = vadd.f32 %v2298_v16, %v2912_v4  ;;  %v1637_v42 = vpop.f32.mrb[91].mxu1 }
 0x320   : > { %v1805_v10 = vadd.f32 %v1635_v11, %v687_v7  ;;  %v1638_v47 = vadd.f32 %v2912_v4, %v1637_v42  ;;  %v747_v7 = vadd.f32 %v3277_v31, %v2525_v48 }
 0x321   : > { %v1871_v23 = vmax.f32 %v1807_v52, 0.0  ;;  %v1808_v45 = vadd.f32 %v1646_v21, %v701_v25  ;;  %v3278_v25 = vld [vmem:[#allocation5_spill] sm:$0xff] }
 0x322   : > { %v1869_v30 = vmax.f32 %v1805_v10, 0.0  ;;  %v1806_v13 = vadd.f32 %v1638_v47, %v691_v39  ;;  %v761_v52 = vadd.f32 %v3278_v25, %v2525_v48  ;;  %v3279_v10 = vld [vmem:[#allocation3_spill] sm:$0xff] }
 0x323   : > { %1936 = vst.msk [vmem:[%s2930_s15 + $0xf0] sm:$0xff] %vm1905_vm1, %v1871_v23  ;;  %v1872_v33 = vmax.f32 %v1808_v45, 0.0  ;;  %v751_v47 = vadd.f32 %v3279_v10, %v2525_v48 }
 0x324   : > { %1934 = vst.msk [vmem:[%s2930_s15 + $0xe0] sm:$0xff] %vm1905_vm1, %v1869_v30  ;;  %v1870_v50 = vmax.f32 %v1806_v13, 0.0 }
 0x325   : > { %1937 = vst.msk [vmem:[%s2930_s15 + $0xf8] sm:$0xff] %vm1905_vm1, %v1872_v33 }
 0x326   : > { %1935 = vst.msk [vmem:[%s2930_s15 + $0xe8] sm:$0xff] %vm1905_vm1, %v1870_v50 }
 0x32c   : > { %v2301_v3 = vpop.f32.mrb[92].mxu1 }
 0x32d   : > { %v1659_v2 = vadd.f32 %v2301_v3, %v2912_v4  ;;  %v1650_v1 = vpop.f32.mrb[93].mxu1 }
 0x32e   : > { %v1651_v59 = vadd.f32 %v2912_v4, %v1650_v1  ;;  %v2302_v24 = vpop.f32.mrb[94].mxu1  ;;  %v3280_v1 = vld [vmem:[#allocation8_spill] sm:$0xff] }
 0x32f   : > { %v1811_v28 = vadd.f32 %v1659_v2, %v717_v29  ;;  %v1662_v20 = vadd.f32 %v2302_v24, %v2912_v4  ;;  %v1653_v22 = vpop.f32.mrb[95].mxu1 }
 0x330   : > { %v1809_v44 = vadd.f32 %v1651_v59, %v707_v41  ;;  %v1654_v14 = vadd.f32 %v2912_v4, %v1653_v22  ;;  %v777_v41 = vadd.f32 %v3280_v1, %v2525_v48 }
 0x331   : > { %v1875_v0 = vmax.f32 %v1811_v28, 0.0  ;;  %v1812_v43 = vadd.f32 %v1662_v20, %v721_v56  ;;  %v3281_v56 = vld [vmem:[#allocation6_spill] sm:$0xff] }
 0x332   : > { %v1873_v18 = vmax.f32 %v1809_v44, 0.0  ;;  %v1810_v32 = vadd.f32 %v1654_v14, %v711_v61  ;;  %v767_v28 = vadd.f32 %v3281_v56, %v2525_v48  ;;  %v3282_v61 = vld [vmem:[#allocation9_spill] sm:$0xff] }
 0x333   : > { %1940 = vst.msk [vmem:[%s2930_s15 + $0x110] sm:$0xff] %vm1905_vm1, %v1875_v0  ;;  %v1876_v53 = vmax.f32 %v1812_v43, 0.0  ;;  %v781_v44 = vadd.f32 %v3282_v61, %v2525_v48 }
 0x334   : > { %1938 = vst.msk [vmem:[%s2930_s15 + $0x100] sm:$0xff] %vm1905_vm1, %v1873_v18  ;;  %v1874_v27 = vmax.f32 %v1810_v32, 0.0  ;;  %v3283_v18 = vld [vmem:[#allocation7_spill] sm:$0xff] }
 0x335   : > { %1941 = vst.msk [vmem:[%s2930_s15 + $0x118] sm:$0xff] %vm1905_vm1, %v1876_v53  ;;  %v771_v32 = vadd.f32 %v3283_v18, %v2525_v48 }
 0x336   : > { %1939 = vst.msk [vmem:[%s2930_s15 + $0x108] sm:$0xff] %vm1905_vm1, %v1874_v27 }
 0x33c   : > { %v2305_v40 = vpop.f32.mrb[96].mxu1 }
 0x33d   : > { %v1675_v6 = vadd.f32 %v2305_v40, %v2912_v4  ;;  %v1666_v62 = vpop.f32.mrb[97].mxu1 }
 0x33e   : > { %v1667_v51 = vadd.f32 %v2912_v4, %v1666_v62  ;;  %v2306_v34 = vpop.f32.mrb[98].mxu1 }
 0x33f   : > { %v1815_v5 = vadd.f32 %v1675_v6, %v737_v9  ;;  %v1678_v15 = vadd.f32 %v2306_v34, %v2912_v4  ;;  %v1669_v63 = vpop.f32.mrb[99].mxu1 }
 0x340   : > { %v1813_v46 = vadd.f32 %v1667_v51, %v727_v57  ;;  %v1670_v55 = vadd.f32 %v2912_v4, %v1669_v63 }
 0x341   : > { %v1879_v38 = vmax.f32 %v1815_v5, 0.0  ;;  %v1816_v35 = vadd.f32 %v1678_v15, %v741_v19  ;;  %v3284_v19 = vld [vmem:[#allocation12_spill] sm:$0xff] }
 0x342   : > { %v1877_v36 = vmax.f32 %v1813_v46, 0.0  ;;  %v1814_v58 = vadd.f32 %v1670_v55, %v731_v54  ;;  %v797_v5 = vadd.f32 %v3284_v19, %v2525_v48  ;;  %v3285_v54 = vld [vmem:[#allocation10_spill] sm:$0xff] }
 0x343   : > { %1944 = vst.msk [vmem:[%s2930_s15 + $0x130] sm:$0xff] %vm1905_vm1, %v1879_v38  ;;  %v1880_v17 = vmax.f32 %v1816_v35, 0.0  ;;  %v787_v46 = vadd.f32 %v3285_v54, %v2525_v48  ;;  %v3286_v35 = vld [vmem:[#allocation13_spill] sm:$0xff] }
 0x344   : > { %1942 = vst.msk [vmem:[%s2930_s15 + $0x120] sm:$0xff] %vm1905_vm1, %v1877_v36  ;;  %v1878_v8 = vmax.f32 %v1814_v58, 0.0  ;;  %v801_v36 = vadd.f32 %v3286_v35, %v2525_v48 }
 0x345   : > { %1945 = vst.msk [vmem:[%s2930_s15 + $0x138] sm:$0xff] %vm1905_vm1, %v1880_v17 }
 0x346   : > { %1943 = vst.msk [vmem:[%s2930_s15 + $0x128] sm:$0xff] %vm1905_vm1, %v1878_v8 }
 0x34c   : > { %v2309_v12 = vpop.f32.mrb[100].mxu1 }
 0x34d   : > { %v1691_v60 = vadd.f32 %v2309_v12, %v2912_v4  ;;  %v1682_v26 = vpop.f32.mrb[101].mxu1  ;;  %v3287_v12 = vld [vmem:[#allocation11_spill] sm:$0xff] }
 0x34e   : > { %v1683_v11 = vadd.f32 %v2912_v4, %v1682_v26  ;;  %v2310_v16 = vpop.f32.mrb[102].mxu1  ;;  %v791_v49 = vadd.f32 %v3287_v12, %v2525_v48 }
 0x34f   : > { %v1819_v21 = vadd.f32 %v1691_v60, %v757_v37  ;;  %v1694_v42 = vadd.f32 %v2310_v16, %v2912_v4  ;;  %v1685_v39 = vpop.f32.mrb[103].mxu1 }
 0x350   : > { %v1817_v23 = vadd.f32 %v1683_v11, %v747_v7  ;;  %v1686_v45 = vadd.f32 %v2912_v4, %v1685_v39 }
 0x351   : > { %v1883_v30 = vmax.f32 %v1819_v21, 0.0  ;;  %v1820_v13 = vadd.f32 %v1694_v42, %v761_v52  ;;  %v3288_v21 = vld [vmem:[#allocation16_spill] sm:$0xff] }
 0x352   : > { %v1881_v33 = vmax.f32 %v1817_v23, 0.0  ;;  %v1818_v50 = vadd.f32 %v1686_v45, %v751_v47  ;;  %v817_v42 = vadd.f32 %v3288_v21, %v2525_v48  ;;  %v3289_v47 = vld [vmem:[#allocation14_spill] sm:$0xff] }
 0x353   : > { %1948 = vst.msk [vmem:[%s2930_s15 + $0x150] sm:$0xff] %vm1905_vm1, %v1883_v30  ;;  %v1884_v3 = vmax.f32 %v1820_v13, 0.0  ;;  %v807_v23 = vadd.f32 %v3289_v47, %v2525_v48  ;;  %v3290_v13 = vld [vmem:[#allocation17_spill] sm:$0xff] }
 0x354   : > { %1946 = vst.msk [vmem:[%s2930_s15 + $0x140] sm:$0xff] %vm1905_vm1, %v1881_v33  ;;  %v1882_v29 = vmax.f32 %v1818_v50, 0.0  ;;  %v821_v33 = vadd.f32 %v3290_v13, %v2525_v48 }
 0x355   : > { %1949 = vst.msk [vmem:[%s2930_s15 + $0x158] sm:$0xff] %vm1905_vm1, %v1884_v3 }
 0x356   : > { %1947 = vst.msk [vmem:[%s2930_s15 + $0x148] sm:$0xff] %vm1905_vm1, %v1882_v29 }
 0x35c   : > { %v2313_v2 = vpop.f32.mrb[104].mxu1 }
 0x35d   : > { %v1707_v59 = vadd.f32 %v2313_v2, %v2912_v4  ;;  %v1698_v24 = vpop.f32.mrb[105].mxu1  ;;  %v3291_v2 = vld [vmem:[#allocation15_spill] sm:$0xff] }
 0x35e   : > { %v1699_v20 = vadd.f32 %v2912_v4, %v1698_v24  ;;  %v2314_v22 = vpop.f32.mrb[106].mxu1  ;;  %v811_v1 = vadd.f32 %v3291_v2, %v2525_v48 }
 0x35f   : > { %v1823_v14 = vadd.f32 %v1707_v59, %v777_v41  ;;  %v1710_v0 = vadd.f32 %v2314_v22, %v2912_v4  ;;  %v1701_v43 = vpop.f32.mrb[107].mxu1 }
 0x360   : > { %v1821_v53 = vadd.f32 %v1699_v20, %v767_v28  ;;  %v1702_v27 = vadd.f32 %v2912_v4, %v1701_v43 }
 0x361   : > { %v1887_v40 = vmax.f32 %v1823_v14, 0.0  ;;  %v1824_v9 = vadd.f32 %v1710_v0, %v781_v44  ;;  %v3292_v14 = vld [vmem:[#allocation20_spill] sm:$0xff] }
 0x362   : > { %v1885_v6 = vmax.f32 %v1821_v53, 0.0  ;;  %v1822_v62 = vadd.f32 %v1702_v27, %v771_v32  ;;  %v837_v0 = vadd.f32 %v3292_v14, %v2525_v48  ;;  %v3293_v32 = vld [vmem:[#allocation18_spill] sm:$0xff] }
 0x363   : > { %1952 = vst.msk [vmem:[%s2930_s15 + $0x170] sm:$0xff] %vm1905_vm1, %v1887_v40  ;;  %v1888_v57 = vmax.f32 %v1824_v9, 0.0  ;;  %v827_v53 = vadd.f32 %v3293_v32, %v2525_v48  ;;  %v3294_v9 = vld [vmem:[#allocation21_spill] sm:$0xff] }
 0x364   : > { %1950 = vst.msk [vmem:[%s2930_s15 + $0x160] sm:$0xff] %vm1905_vm1, %v1885_v6  ;;  %v1886_v51 = vmax.f32 %v1822_v62, 0.0  ;;  %v841_v6 = vadd.f32 %v3294_v9, %v2525_v48 }
 0x365   : > { %1953 = vst.msk [vmem:[%s2930_s15 + $0x178] sm:$0xff] %vm1905_vm1, %v1888_v57 }
 0x366   : > { %1951 = vst.msk [vmem:[%s2930_s15 + $0x168] sm:$0xff] %vm1905_vm1, %v1886_v51 }
 0x36c   : > { %v2317_v34 = vpop.f32.mrb[108].mxu1 }
 0x36d   : > { %v1723_v15 = vadd.f32 %v2317_v34, %v2912_v4  ;;  %v1714_v63 = vpop.f32.mrb[109].mxu1  ;;  %v3295_v34 = vld [vmem:[#allocation19_spill] sm:$0xff] }
 0x36e   : > { %v1715_v55 = vadd.f32 %v2912_v4, %v1714_v63  ;;  %v2318_v38 = vpop.f32.mrb[110].mxu1  ;;  %v831_v19 = vadd.f32 %v3295_v34, %v2525_v48 }
 0x36f   : > { %v1827_v58 = vadd.f32 %v1723_v15, %v797_v5  ;;  %v1726_v17 = vadd.f32 %v2318_v38, %v2912_v4  ;;  %v1717_v8 = vpop.f32.mrb[111].mxu1 }
 0x370   : > { %v1825_v37 = vadd.f32 %v1715_v55, %v787_v46  ;;  %v1718_v60 = vadd.f32 %v2912_v4, %v1717_v8 }
 0x371   : > { %v1891_v26 = vmax.f32 %v1827_v58, 0.0  ;;  %v1828_v31 = vadd.f32 %v1726_v17, %v801_v36  ;;  %v3296_v58 = vld [vmem:[#allocation24_spill] sm:$0xff] }
 0x372   : > { %v1889_v7 = vmax.f32 %v1825_v37, 0.0  ;;  %v1826_v11 = vadd.f32 %v1718_v60, %v791_v49  ;;  %v857_v17 = vadd.f32 %v3296_v58, %v2525_v48  ;;  %v3297_v49 = vld [vmem:[#allocation22_spill] sm:$0xff] }
 0x373   : > { %1956 = vst.msk [vmem:[%s2930_s15 + $0x190] sm:$0xff] %vm1905_vm1, %v1891_v26  ;;  %v1892_v16 = vmax.f32 %v1828_v31, 0.0  ;;  %v847_v37 = vadd.f32 %v3297_v49, %v2525_v48  ;;  %v3298_v31 = vld [vmem:[#allocation25_spill] sm:$0xff] }
 0x374   : > { %1954 = vst.msk [vmem:[%s2930_s15 + $0x180] sm:$0xff] %vm1905_vm1, %v1889_v7  ;;  %v1890_v25 = vmax.f32 %v1826_v11, 0.0  ;;  %v861_v7 = vadd.f32 %v3298_v31, %v2525_v48 }
 0x375   : > { %1957 = vst.msk [vmem:[%s2930_s15 + $0x198] sm:$0xff] %vm1905_vm1, %v1892_v16 }
 0x376   : > { %1955 = vst.msk [vmem:[%s2930_s15 + $0x188] sm:$0xff] %vm1905_vm1, %v1890_v25 }
 0x37c   : > { %v2321_v52 = vpop.f32.mrb[112].mxu1 }
 0x37d   : > { %v1739_v39 = vadd.f32 %v2321_v52, %v2912_v4  ;;  %v1730_v10 = vpop.f32.mrb[113].mxu1  ;;  %v3299_v52 = vld [vmem:[#allocation23_spill] sm:$0xff] }
 0x37e   : > { %v1731_v45 = vadd.f32 %v2912_v4, %v1730_v10  ;;  %v2322_v30 = vpop.f32.mrb[114].mxu1  ;;  %v851_v21 = vadd.f32 %v3299_v52, %v2525_v48 }
 0x37f   : > { %v1831_v50 = vadd.f32 %v1739_v39, %v817_v42  ;;  %v1742_v3 = vadd.f32 %v2322_v30, %v2912_v4  ;;  %v1733_v29 = vpop.f32.mrb[115].mxu1 }
 0x380   : > { %v1829_v41 = vadd.f32 %v1731_v45, %v807_v23  ;;  %v1734_v59 = vadd.f32 %v2912_v4, %v1733_v29 }
 0x381   : > { %v1895_v24 = vmax.f32 %v1831_v50, 0.0  ;;  %v1832_v56 = vadd.f32 %v1742_v3, %v821_v33 }
 0x382   : > { %v1893_v28 = vmax.f32 %v1829_v41, 0.0  ;;  %v1830_v20 = vadd.f32 %v1734_v59, %v811_v1 }
 0x383   : > { %1960 = vst.msk [vmem:[%s2930_s15 + $0x1b0] sm:$0xff] %vm1905_vm1, %v1895_v24  ;;  %v1896_v22 = vmax.f32 %v1832_v56, 0.0 }
 0x384   : > { %1958 = vst.msk [vmem:[%s2930_s15 + $0x1a0] sm:$0xff] %vm1905_vm1, %v1893_v28  ;;  %v1894_v61 = vmax.f32 %v1830_v20, 0.0 }
 0x385   : > { %1961 = vst.msk [vmem:[%s2930_s15 + $0x1b8] sm:$0xff] %vm1905_vm1, %v1896_v22 }
 0x386   : > { %1959 = vst.msk [vmem:[%s2930_s15 + $0x1a8] sm:$0xff] %vm1905_vm1, %v1894_v61 }
 0x38c   : > { %v2325_v44 = vpop.f32.mrb[116].mxu1 }
 0x38d   : > { %v1755_v43 = vadd.f32 %v2325_v44, %v2912_v4  ;;  %v1746_v18 = vpop.f32.mrb[117].mxu1 }
 0x38e   : > { %v1747_v27 = vadd.f32 %v2912_v4, %v1746_v18  ;;  %v2326_v40 = vpop.f32.mrb[118].mxu1 }
 0x38f   : > { %v1835_v62 = vadd.f32 %v1755_v43, %v837_v0  ;;  %v1758_v57 = vadd.f32 %v2326_v40, %v2912_v4  ;;  %v1749_v51 = vpop.f32.mrb[119].mxu1 }
 0x390   : > { %v1833_v5 = vadd.f32 %v1747_v27, %v827_v53  ;;  %v1750_v15 = vadd.f32 %v2912_v4, %v1749_v51 }
 0x391   : > { %v1899_v63 = vmax.f32 %v1835_v62, 0.0  ;;  %v1836_v54 = vadd.f32 %v1758_v57, %v841_v6 }
 0x392   : > { %v1897_v46 = vmax.f32 %v1833_v5, 0.0  ;;  %v1834_v55 = vadd.f32 %v1750_v15, %v831_v19 }
 0x393   : > { %1964 = vst.msk [vmem:[%s2930_s15 + $0x1d0] sm:$0xff] %vm1905_vm1, %v1899_v63  ;;  %v1900_v38 = vmax.f32 %v1836_v54, 0.0 }
 0x394   : > { %1962 = vst.msk [vmem:[%s2930_s15 + $0x1c0] sm:$0xff] %vm1905_vm1, %v1897_v46  ;;  %v1898_v35 = vmax.f32 %v1834_v55, 0.0 }
 0x395   : > { %1965 = vst.msk [vmem:[%s2930_s15 + $0x1d8] sm:$0xff] %vm1905_vm1, %v1900_v38 }
 0x396   : > { %1963 = vst.msk [vmem:[%s2930_s15 + $0x1c8] sm:$0xff] %vm1905_vm1, %v1898_v35 }
 0x39c   : > { %v2329_v36 = vpop.f32.mrb[120].mxu1 }
 0x39d   : > { %v1771_v8 = vadd.f32 %v2329_v36, %v2912_v4  ;;  %v1762_v12 = vpop.f32.mrb[121].mxu1 }
 0x39e   : > { %v1763_v60 = vadd.f32 %v2912_v4, %v1762_v12  ;;  %v2330_v26 = vpop.f32.mrb[122].mxu1 }
 0x39f   : > { %v1839_v11 = vadd.f32 %v1771_v8, %v857_v17  ;;  %v1774_v16 = vadd.f32 %v2330_v26, %v2912_v4  ;;  %v1765_v25 = vpop.f32.mrb[123].mxu1 }
 0x3a0   : > { %v1837_v42 = vadd.f32 %v1763_v60, %v847_v37  ;;  %v1766_v39 = vadd.f32 %v2912_v4, %v1765_v25 }
 0x3a1   : > { %v1903_v10 = vmax.f32 %v1839_v11, 0.0  ;;  %v1840_v47 = vadd.f32 %v1774_v16, %v861_v7 }
 0x3a2   : > { %v1901_v23 = vmax.f32 %v1837_v42, 0.0  ;;  %v1838_v45 = vadd.f32 %v1766_v39, %v851_v21 }
 0x3a3   : > { %1968 = vst.msk [vmem:[%s2930_s15 + $0x1f0] sm:$0xff] %vm1905_vm1, %v1903_v10  ;;  %v1904_v30 = vmax.f32 %v1840_v47, 0.0 }
 0x3a4   : > { %1966 = vst.msk [vmem:[%s2930_s15 + $0x1e0] sm:$0xff] %vm1905_vm1, %v1901_v23  ;;  %v1902_v13 = vmax.f32 %v1838_v45, 0.0 }
 0x3a5   : > { %1969 = vst.msk [vmem:[%s2930_s15 + $0x1f8] sm:$0xff] %vm1905_vm1, %v1904_v30 }
 0x3a6   : > { %1967 = vst.msk [vmem:[%s2930_s15 + $0x1e8] sm:$0xff] %vm1905_vm1, %v1902_v13 }
 0x3a7 PF: > { %s17_s24 = sadd.s32 1, %s2384_s24  }
 0x3a8   : > { %p14_p4 = scmp.ge.s32.totalorder %s17_s24, 4  }
 0x3aa   :  { %16 = sbr.rel (!%p14_p4) target bundleno = 1 (0x1), region = 78 }

</bundles_post_ra>
